<compile_context>
chip_gen: v7x
topology: tpu7x:2x2x1
jax: 0.10.0
libtpu: 0.0.40
codegen_flags: <defaults>
</compile_context>

<pallas_src>
import jax
import jax.numpy as jnp
from jax import lax
from jax.experimental import pallas as pl
from jax.experimental.pallas import tpu as pltpu

EPS = 1e-6
HIST = 8      # sublane-aligned causal-conv history rows carried across chunks
GROUP = 8     # timesteps per scan group (one sublane tile)


def _softplus(x):
    # numerically stable softplus, same formula in kernel and reference
    return jnp.maximum(x, 0.0) + jnp.log(1.0 + jnp.exp(-jnp.abs(x)))


def _rmsnorm(x, w):
    # TODO(synk): models.decoder.RMSNorm assumed = x * rsqrt(mean(x^2)+eps) * w
    return x * lax.rsqrt(jnp.mean(x * x, axis=-1, keepdims=True) + EPS) * w


def _pick_dtile(d, target=512):
    """Largest lane-dim (D) tile <= target that divides D, for the scan."""
    if d <= target:
        return d
    for cand in range(target, 127, -128):
        if cand % 128 == 0 and d % cand == 0:
            return cand
    return d  # TODO(synk): no 128-multiple divisor <= target; one big tile


def mamba_block_kernel(
    x_ref, rmsw_ref, win_ref, bin_ref, wconv_ref, bconv_ref,
    wig_ref, bdt_ref, alphalogt_ref, delta_ref, wout_ref, bout_ref,
    o_ref,
    dt_ref, xa_ref, zeta_ref, beta_ref, gamma_ref, outbuf_ref,
    state_ref, tail_ref,
):
    TL = x_ref.shape[1]
    D = delta_ref.shape[1]
    N = alphalogt_ref.shape[0]
    K = wconv_ref.shape[0]

    # Reset the cross-chunk carries (SSM state + conv history) at chunk 0.
    @pl.when(pl.program_id(1) == 0)
    def _():
        state_ref[...] = jnp.zeros_like(state_ref)
        tail_ref[...] = jnp.zeros_like(tail_ref)

    x = x_ref[0]                                                   # (TL, E)
    xn = _rmsnorm(x, rmsw_ref[...])                                # (TL, E)

    # input projection -> conv branch (xc) and gate (zeta)
    xz = jnp.dot(xn.astype(win_ref.dtype), win_ref[...],
                 preferred_element_type=jnp.float32) + bin_ref[...]
    xc = xz[:, :D]                                                 # (TL, D)
    zeta_ref[...] = xz[:, D:]                                      # (TL, D)

    # causal depthwise conv; HIST=8 rows of history keep the concat tile
    # aligned and the shifted slices inside the first 8-row sublane tile.
    xfull = jnp.concatenate([tail_ref[...], xc], axis=0)           # (HIST+TL, D)
    tail_ref[...] = xc[TL - HIST:TL]                               # next history
    wconv = wconv_ref[...]                                         # (K, D)
    y = xc * wconv[K - 1:K, :]                                     # k=K-1 term (aligned)
    for k in range(K - 1):
        off = HIST - (K - 1) + k
        y = y + xfull[off:off + TL] * wconv[k:k + 1, :]
    y = y + bconv_ref[...]
    xa = y * pl.reciprocal(1.0 + jnp.exp(-y), approx=True)         # SiLU via EUP
    xa_ref[...] = xa

    # inner projection with w_dt folded: columns = [dt (D) | beta (N) | gamma (N)]
    dbg = jnp.dot(xa.astype(wig_ref.dtype), wig_ref[...],
                  preferred_element_type=jnp.float32)
    dt_ref[...] = _softplus(dbg[:, :D] + bdt_ref[...])             # (TL, D)
    beta_ref[...] = dbg[:, D:D + N]                                # (TL, N)
    gamma_ref[...] = dbg[:, D + N:D + 2 * N]                       # (TL, N)

    alphaT = -jnp.exp(alphalogt_ref[...])                          # (N, D), D on lanes
    delta = delta_ref[...]                                         # (1, D)

    # Selective scan, tiled over D (recurrence independent per channel).
    # State layout (N, Dt): D on lanes, N on sublanes; da/db built on the fly.
    n_groups = TL // GROUP
    DT = _pick_dtile(D)
    for d0 in range(0, D, DT):                                     # static D-tiling
        a_tile = alphaT[:, d0:d0 + DT]                             # (N, DT)
        d_tile = delta[:, d0:d0 + DT]                              # (1, DT)

        def group_body(g, st, d0=d0, a_tile=a_tile, d_tile=d_tile):
            base = pl.multiple_of(g * GROUP, GROUP)
            dt_g = dt_ref[pl.ds(base, GROUP), d0:d0 + DT]          # (G, DT)
            xa_g = xa_ref[pl.ds(base, GROUP), d0:d0 + DT]          # (G, DT)
            zeta_g = zeta_ref[pl.ds(base, GROUP), d0:d0 + DT]      # (G, DT)
            beta_g = beta_ref[pl.ds(base, GROUP), :]               # (G, N)
            gamma_g = gamma_ref[pl.ds(base, GROUP), :]             # (G, N)

            da_g = jnp.exp(dt_g[:, None, :] * a_tile[None, :, :])  # (G, N, DT)
            db_g = (dt_g * xa_g)[:, None, :] * beta_g[:, :, None]  # (G, N, DT)
            gm_g = gamma_g[:, :, None]                             # (G, N, 1)

            ys_rows = []
            for j in range(GROUP):        # static unroll; serial dep on st only
                st = da_g[j] * st + db_g[j]                        # (N, DT)
                # gamma contraction = sublane reduce over N
                ys_rows.append(jnp.sum(st * gm_g[j], axis=0, keepdims=True))
            ys_g = jnp.concatenate(ys_rows, axis=0)                # (G, DT)

            # fused epilogue: (ys + xa*delta) * zeta, written once
            out_g = (ys_g + xa_g * d_tile) * zeta_g
            outbuf_ref[pl.ds(base, GROUP), d0:d0 + DT] = out_g
            return st

        st = lax.fori_loop(0, n_groups, group_body, state_ref[:, d0:d0 + DT])
        state_ref[:, d0:d0 + DT] = st

    # output projection + residual (the reference adds the *normalized* input,
    # matching the provided PyTorch forward which reassigns input_tensor).
    o_ref[0] = (jnp.dot(outbuf_ref[...].astype(wout_ref.dtype), wout_ref[...],
                        preferred_element_type=jnp.float32)
                + bout_ref[...] + xn)


def mamba_block(x, params, *, tl=128, matmul_dtype=jnp.float32):
    B, L, E = x.shape
    D = params['delta'].shape[-1]
    N = params['alpha_log'].shape[1]
    K = params['w_conv'].shape[0]
    dt_size = params['w_dt'].shape[0]

    tl = min(tl, L)
    assert L % tl == 0, "seq_len must be divisible by the L-chunk size"
    assert tl % 8 == 0 and tl >= 8, "chunk size must be a multiple of 8 (>=8)"
    assert K - 1 <= HIST, "conv kernel longer than the carried 8-row history"
    num_chunks = L // tl

    # Fold dt_linear's weight into the inner projection: one lane-dense matmul
    # with output columns [dt (D) | beta (N) | gamma (N)].
    w_inner = params['w_inner']
    w_ig = jnp.concatenate(
        [w_inner[:, :dt_size] @ params['w_dt'], w_inner[:, dt_size:]], axis=1)

    mm = matmul_dtype
    weights = [
        params['rms_w'],
        params['w_in'].astype(mm), params['b_in'],
        params['w_conv'], params['b_conv'],
        w_ig.astype(mm), params['b_dt'],
        params['alpha_log'].T,                      # (N, D): D on lanes in-kernel
        params['delta'].reshape(1, D),
        params['w_out'].astype(mm), params['b_out'],
    ]

    # Explicit VMEM budget (single-buffered weights + double-buffered x/out
    # blocks + scratch + headroom), capped at 60 MiB for v7x's 64 MiB VMEM.
    weight_bytes = sum(int(w.size) * w.dtype.itemsize for w in weights)
    io_bytes = 2 * 2 * tl * E * 4
    scratch_bytes = (4 * tl * D + 2 * tl * N + N * D + HIST * D) * 4
    vmem_limit = int(min(max(2 * weight_bytes + io_bytes + scratch_bytes
                             + (4 << 20), 32 << 20), 60 << 20))

    def run(resident_weights):
        if resident_weights:
            # Whole weight resident in VMEM for the entire call: single buffer,
            # no per-chunk re-DMA, no double-buffering of constant blocks.
            w_specs = [pl.BlockSpec(memory_space=pltpu.MemorySpace.VMEM)
                       for _ in weights]
        else:
            # Fallback: full-array blocks with constant index maps.
            w_specs = [pl.BlockSpec(w.shape, lambda b, c, nd=w.ndim: (0,) * nd)
                       for w in weights]
        return pl.pallas_call(
            mamba_block_kernel,
            out_shape=jax.ShapeDtypeStruct((B, L, E), jnp.float32),
            grid=(B, num_chunks),
            in_specs=[pl.BlockSpec((1, tl, E), lambda b, c: (b, c, 0))] + w_specs,
            out_specs=pl.BlockSpec((1, tl, E), lambda b, c: (b, c, 0)),
            scratch_shapes=[
                pltpu.VMEM((tl, D), jnp.float32),    # dt
                pltpu.VMEM((tl, D), jnp.float32),    # xa (conv + SiLU output)
                pltpu.VMEM((tl, D), jnp.float32),    # zeta (gate)
                pltpu.VMEM((tl, N), jnp.float32),    # beta
                pltpu.VMEM((tl, N), jnp.float32),    # gamma
                pltpu.VMEM((tl, D), jnp.float32),    # fused (ys+xa*delta)*zeta
                pltpu.VMEM((N, D), jnp.float32),     # SSM state  (carried over chunks)
                pltpu.VMEM((HIST, D), jnp.float32),  # conv history (carried over chunks)
            ],
            compiler_params=pltpu.CompilerParams(
                # batch across TensorCores; L-chunks MUST stay sequential per
                # core (innermost, "arbitrary") because state/tail scratch is
                # carried chunk-to-chunk.
                dimension_semantics=("parallel", "arbitrary"),
                vmem_limit_bytes=vmem_limit),
        )(x, *weights)

    try:
        return run(True)
    except Exception:
        # TODO(synk): untiled VMEM-resident operands unsupported on this JAX
        # version; fall back to constant-index (double-buffered) weight blocks.
        return run(False)


def reference(x, params):
    B, L, E = x.shape
    D = params['delta'].shape[-1]
    K = params['w_conv'].shape[0]
    dt_size = params['w_dt'].shape[0]
    N = params['alpha_log'].shape[1]

    xn = _rmsnorm(x, params['rms_w'])
    xz = xn @ params['w_in'] + params['b_in']
    xc, zeta = xz[..., :D], xz[..., D:]
    y = jnp.zeros_like(xc)
    for k in range(K):
        shift = K - 1 - k
        xs = xc if shift == 0 else jnp.pad(xc, ((0, 0), (shift, 0), (0, 0)))[:, :L]
        y = y + xs * params['w_conv'][k][None, None, :]
    y = y + params['b_conv']
    xa = y * (1.0 / (1.0 + jnp.exp(-y)))

    dbg = xa @ params['w_inner']
    dt_in = dbg[..., :dt_size]
    beta = dbg[..., dt_size:dt_size + N]
    gamma = dbg[..., dt_size + N:]
    dt = _softplus(dt_in @ params['w_dt'] + params['b_dt'])
    alpha = -jnp.exp(params['alpha_log'])
    dta = jnp.exp(jnp.einsum('bld,dn->bldn', dt, alpha))
    dtbi = jnp.einsum('bld,bln,bld->bldn', dt, beta, xa)
    st = jnp.zeros((B, D, N), jnp.float32)
    ys = []
    for i in range(L):
        st = dta[:, i] * st + dtbi[:, i]
        ys.append(jnp.einsum('bdn,bn->bd', st, gamma[:, i]))
    ys = jnp.stack(ys, axis=1) + xa * params['delta']
    out = ys * zeta
    return out @ params['w_out'] + params['b_out'] + xn


if __name__ == "__main__":
    B, L, E = 2, 32, 32
    D, K, dt_size, N = 16, 4, 8, 16   # state_dim == inner_dim (required by torch split)
    TL = 16                           # L-chunk size -> grid (B, L//TL) = (2, 2)

    key = jax.random.PRNGKey(0)
    ks = jax.random.split(key, 10)
    params = {
        'rms_w': jnp.ones((1, E), jnp.float32),
        'w_in': 0.1 * jax.random.normal(ks[0], (E, 2 * D), jnp.float32),
        'b_in': 0.1 * jax.random.normal(ks[1], (1, 2 * D), jnp.float32),
        'w_conv': 0.1 * jax.random.normal(ks[2], (K, D), jnp.float32),
        'b_conv': 0.1 * jax.random.normal(ks[3], (1, D), jnp.float32),
        'w_inner': 0.1 * jax.random.normal(ks[4], (D, dt_size + 2 * N), jnp.float32),
        'w_dt': 0.1 * jax.random.normal(ks[5], (dt_size, D), jnp.float32),
        'b_dt': 0.1 * jax.random.normal(ks[6], (1, D), jnp.float32),
        'alpha_log': jnp.log(jnp.tile(
            jnp.arange(1, N + 1, dtype=jnp.float32)[None, :], (D, 1))),
        'delta': jnp.ones((1, D), jnp.float32),
        'w_out': 0.1 * jax.random.normal(ks[7], (D, E), jnp.float32),
        'b_out': 0.1 * jax.random.normal(ks[8], (1, E), jnp.float32),
    }
    x = jax.random.normal(ks[9], (B, L, E), jnp.float32)

    ref = reference(x, params)

    # f32 MXU operands: tight tolerance.
    out = jax.block_until_ready(mamba_block(x, params, tl=TL))
    assert out.shape == (B, L, E)
    err = float(jnp.max(jnp.abs(out - ref)))
    assert jnp.allclose(out, ref, atol=1e-3, rtol=1e-3), err

    # bf16 MXU operands (production path on v5e/v6e/v7x): looser tolerance,
    # scan/elementwise math and accumulation stay f32.
    out_bf16 = jax.block_until_ready(
        mamba_block(x, params, tl=TL, matmul_dtype=jnp.bfloat16))
    err_bf = float(jnp.max(jnp.abs(out_bf16 - ref)))
    assert jnp.allclose(out_bf16, ref, atol=5e-2, rtol=5e-2), err_bf

    print("KERNEL_OK")
</pallas_src>

<mosaic_0001>
module attributes {stable_mosaic.version = 11 : i64} {
  func.func @mamba_block_kernel(%arg0: i32, %arg1: i32, %arg2: memref<1x16x32xf32, #tpu.memory_space<vmem>>, %arg3: memref<1x32xf32, #tpu.memory_space<vmem>>, %arg4: memref<32x32xf32, #tpu.memory_space<vmem>>, %arg5: memref<1x32xf32, #tpu.memory_space<vmem>>, %arg6: memref<4x16xf32, #tpu.memory_space<vmem>>, %arg7: memref<1x16xf32, #tpu.memory_space<vmem>>, %arg8: memref<16x48xf32, #tpu.memory_space<vmem>>, %arg9: memref<1x16xf32, #tpu.memory_space<vmem>>, %arg10: memref<16x16xf32, #tpu.memory_space<vmem>>, %arg11: memref<1x16xf32, #tpu.memory_space<vmem>>, %arg12: memref<16x32xf32, #tpu.memory_space<vmem>>, %arg13: memref<1x32xf32, #tpu.memory_space<vmem>>, %arg14: memref<1x16x32xf32, #tpu.memory_space<vmem>>, %arg15: memref<16x16xf32, #tpu.memory_space<vmem>>, %arg16: memref<16x16xf32, #tpu.memory_space<vmem>>, %arg17: memref<16x16xf32, #tpu.memory_space<vmem>>, %arg18: memref<16x16xf32, #tpu.memory_space<vmem>>, %arg19: memref<16x16xf32, #tpu.memory_space<vmem>>, %arg20: memref<16x16xf32, #tpu.memory_space<vmem>>, %arg21: memref<16x16xf32, #tpu.memory_space<vmem>>, %arg22: memref<8x16xf32, #tpu.memory_space<vmem>>) attributes {dimension_semantics = [#tpu.dimension_semantics<parallel>, #tpu.dimension_semantics<arbitrary>], iteration_bounds = array<i64: 2, 2>, scalar_prefetch = 0 : i64, scratch_operands = 8 : i64, tpu.core_type = #tpu.core_type<tc>, window_params = [{transform_indices = @transform_0, window_bounds = array<i64: 1, 16, 32>}, {pipeline_mode = #tpu.pipeline_mode<synchronous>, transform_indices = @transform_1, window_bounds = array<i64: 1, 32>}, {pipeline_mode = #tpu.pipeline_mode<synchronous>, transform_indices = @transform_2, window_bounds = array<i64: 32, 32>}, {pipeline_mode = #tpu.pipeline_mode<synchronous>, transform_indices = @transform_3, window_bounds = array<i64: 1, 32>}, {pipeline_mode = #tpu.pipeline_mode<synchronous>, transform_indices = @transform_4, window_bounds = array<i64: 4, 16>}, {pipeline_mode = #tpu.pipeline_mode<synchronous>, transform_indices = @transform_5, window_bounds = array<i64: 1, 16>}, {pipeline_mode = #tpu.pipeline_mode<synchronous>, transform_indices = @transform_6, window_bounds = array<i64: 16, 48>}, {pipeline_mode = #tpu.pipeline_mode<synchronous>, transform_indices = @transform_7, window_bounds = array<i64: 1, 16>}, {pipeline_mode = #tpu.pipeline_mode<synchronous>, transform_indices = @transform_8, window_bounds = array<i64: 16, 16>}, {pipeline_mode = #tpu.pipeline_mode<synchronous>, transform_indices = @transform_9, window_bounds = array<i64: 1, 16>}, {pipeline_mode = #tpu.pipeline_mode<synchronous>, transform_indices = @transform_10, window_bounds = array<i64: 16, 32>}, {pipeline_mode = #tpu.pipeline_mode<synchronous>, transform_indices = @transform_11, window_bounds = array<i64: 1, 32>}, {transform_indices = @transform_12, window_bounds = array<i64: 1, 16, 32>}]} {
    %c0_i32 = arith.constant 0 : i32
    %0 = arith.cmpi eq, %arg1, %c0_i32 : i32
    %1 = arith.extui %0 : i1 to i32
    %c0_i32_0 = arith.constant 0 : i32
    %2 = arith.cmpi ne, %1, %c0_i32_0 : i32
    scf.if %2 {
      %cst_61 = arith.constant 0.000000e+00 : f32
      %100 = vector.broadcast %cst_61 : f32 to vector<16x16xf32>
      %c0_62 = arith.constant 0 : index
      %c0_63 = arith.constant 0 : index
      %101 = vector.load %arg21[%c0_62, %c0_63] : memref<16x16xf32, #tpu.memory_space<vmem>>, vector<16x16xf32>
      tpu.vector_store %arg21[%c0_62, %c0_63], %100 {strides = array<i32>} : memref<16x16xf32, #tpu.memory_space<vmem>>, vector<16x16xf32>,
      %cst_64 = arith.constant 0.000000e+00 : f32
      %102 = vector.broadcast %cst_64 : f32 to vector<8x16xf32>
      %c0_65 = arith.constant 0 : index
      %c0_66 = arith.constant 0 : index
      %103 = vector.load %arg22[%c0_65, %c0_66] : memref<8x16xf32, #tpu.memory_space<vmem>>, vector<8x16xf32>
      tpu.vector_store %arg22[%c0_65, %c0_66], %102 {strides = array<i32>} : memref<8x16xf32, #tpu.memory_space<vmem>>, vector<8x16xf32>,
    } else {
    }
    %c0 = arith.constant 0 : index
    %c0_1 = arith.constant 0 : index
    %c0_2 = arith.constant 0 : index
    %3 = vector.load %arg2[%c0, %c0_1, %c0_2] : memref<1x16x32xf32, #tpu.memory_space<vmem>>, vector<1x16x32xf32>
    %4 = vector.shape_cast %3 : vector<1x16x32xf32> to vector<16x32xf32>
    %c0_3 = arith.constant 0 : index
    %c0_4 = arith.constant 0 : index
    %5 = vector.load %arg3[%c0_3, %c0_4] : memref<1x32xf32, #tpu.memory_space<vmem>>, vector<1x32xf32>
    %6 = arith.mulf %4, %4 : vector<16x32xf32>
    %cst = arith.constant dense<0.000000e+00> : vector<16xf32>
    %7 = vector.multi_reduction <add>, %6, %cst [1] : vector<16x32xf32> to vector<16xf32>
    %8 = vector.shape_cast %7 : vector<16xf32> to vector<16x1xf32>
    %cst_5 = arith.constant 3.200000e+01 : f32
    %9 = vector.broadcast %cst_5 : f32 to vector<16x1xf32>
    %10 = arith.divf %8, %9 : vector<16x1xf32>
    %cst_6 = arith.constant 9.99999997E-7 : f32
    %11 = vector.broadcast %cst_6 : f32 to vector<16x1xf32>
    %12 = arith.addf %10, %11 : vector<16x1xf32>
    %13 = math.rsqrt %12 : vector<16x1xf32>
    %14 = vector.broadcast %13 : vector<16x1xf32> to vector<16x32xf32>
    %15 = arith.mulf %4, %14 : vector<16x32xf32>
    %16 = vector.broadcast %5 : vector<1x32xf32> to vector<16x32xf32>
    %17 = arith.mulf %15, %16 : vector<16x32xf32>
    %c0_7 = arith.constant 0 : index
    %c0_8 = arith.constant 0 : index
    %18 = vector.load %arg4[%c0_7, %c0_8] : memref<32x32xf32, #tpu.memory_space<vmem>>, vector<32x32xf32>
    %cst_9 = arith.constant dense<0.000000e+00> : vector<16x32xf32>
    %19 = tpu.matmul %17, %18, %cst_9 {dimension_numbers = #tpu.dot_dimension_numbers<[1], [0], [0], [1], [0, 0, 1, 1], [], []>} : vector<16x32xf32>, vector<32x32xf32>, vector<16x32xf32> -> vector<16x32xf32>
    %c0_10 = arith.constant 0 : index
    %c0_11 = arith.constant 0 : index
    %20 = vector.load %arg5[%c0_10, %c0_11] : memref<1x32xf32, #tpu.memory_space<vmem>>, vector<1x32xf32>
    %21 = vector.broadcast %20 : vector<1x32xf32> to vector<16x32xf32>
    %22 = arith.addf %19, %21 : vector<16x32xf32>
    %23 = vector.extract_strided_slice %22 {offsets = [0, 0], sizes = [16, 16], strides = [1, 1]} : vector<16x32xf32> to vector<16x16xf32>
    %24 = vector.extract_strided_slice %22 {offsets = [0, 16], sizes = [16, 16], strides = [1, 1]} : vector<16x32xf32> to vector<16x16xf32>
    %c0_12 = arith.constant 0 : index
    %c0_13 = arith.constant 0 : index
    %25 = vector.load %arg17[%c0_12, %c0_13] : memref<16x16xf32, #tpu.memory_space<vmem>>, vector<16x16xf32>
    tpu.vector_store %arg17[%c0_12, %c0_13], %24 {strides = array<i32>} : memref<16x16xf32, #tpu.memory_space<vmem>>, vector<16x16xf32>,
    %c0_14 = arith.constant 0 : index
    %c0_15 = arith.constant 0 : index
    %26 = vector.load %arg22[%c0_14, %c0_15] : memref<8x16xf32, #tpu.memory_space<vmem>>, vector<8x16xf32>
    %27 = tpu.concatenate %26, %23 in 0 : vector<8x16xf32>, vector<16x16xf32> -> vector<24x16xf32>
    %28 = vector.extract_strided_slice %23 {offsets = [8, 0], sizes = [8, 16], strides = [1, 1]} : vector<16x16xf32> to vector<8x16xf32>
    %c0_16 = arith.constant 0 : index
    %c0_17 = arith.constant 0 : index
    %29 = vector.load %arg22[%c0_16, %c0_17] : memref<8x16xf32, #tpu.memory_space<vmem>>, vector<8x16xf32>
    tpu.vector_store %arg22[%c0_16, %c0_17], %28 {strides = array<i32>} : memref<8x16xf32, #tpu.memory_space<vmem>>, vector<8x16xf32>,
    %c0_18 = arith.constant 0 : index
    %c0_19 = arith.constant 0 : index
    %30 = vector.load %arg6[%c0_18, %c0_19] : memref<4x16xf32, #tpu.memory_space<vmem>>, vector<4x16xf32>
    %31 = vector.extract_strided_slice %30 {offsets = [3, 0], sizes = [1, 16], strides = [1, 1]} : vector<4x16xf32> to vector<1x16xf32>
    %32 = vector.broadcast %31 : vector<1x16xf32> to vector<16x16xf32>
    %33 = arith.mulf %23, %32 : vector<16x16xf32>
    %34 = vector.extract_strided_slice %27 {offsets = [5, 0], sizes = [16, 16], strides = [1, 1]} : vector<24x16xf32> to vector<16x16xf32>
    %35 = vector.extract_strided_slice %30 {offsets = [0, 0], sizes = [1, 16], strides = [1, 1]} : vector<4x16xf32> to vector<1x16xf32>
    %36 = vector.broadcast %35 : vector<1x16xf32> to vector<16x16xf32>
    %37 = arith.mulf %34, %36 : vector<16x16xf32>
    %38 = arith.addf %33, %37 : vector<16x16xf32>
    %39 = vector.extract_strided_slice %27 {offsets = [6, 0], sizes = [16, 16], strides = [1, 1]} : vector<24x16xf32> to vector<16x16xf32>
    %40 = vector.extract_strided_slice %30 {offsets = [1, 0], sizes = [1, 16], strides = [1, 1]} : vector<4x16xf32> to vector<1x16xf32>
    %41 = vector.broadcast %40 : vector<1x16xf32> to vector<16x16xf32>
    %42 = arith.mulf %39, %41 : vector<16x16xf32>
    %43 = arith.addf %38, %42 : vector<16x16xf32>
    %44 = vector.extract_strided_slice %27 {offsets = [7, 0], sizes = [16, 16], strides = [1, 1]} : vector<24x16xf32> to vector<16x16xf32>
    %45 = vector.extract_strided_slice %30 {offsets = [2, 0], sizes = [1, 16], strides = [1, 1]} : vector<4x16xf32> to vector<1x16xf32>
    %46 = vector.broadcast %45 : vector<1x16xf32> to vector<16x16xf32>
    %47 = arith.mulf %44, %46 : vector<16x16xf32>
    %48 = arith.addf %43, %47 : vector<16x16xf32>
    %c0_20 = arith.constant 0 : index
    %c0_21 = arith.constant 0 : index
    %49 = vector.load %arg7[%c0_20, %c0_21] : memref<1x16xf32, #tpu.memory_space<vmem>>, vector<1x16xf32>
    %50 = vector.broadcast %49 : vector<1x16xf32> to vector<16x16xf32>
    %51 = arith.addf %48, %50 : vector<16x16xf32>
    %cst_22 = arith.constant 0.000000e+00 : f32
    %52 = vector.broadcast %cst_22 : f32 to vector<16x16xf32>
    %53 = arith.subf %52, %51 : vector<16x16xf32>
    %54 = math.exp %53 : vector<16x16xf32>
    %cst_23 = arith.constant 1.000000e+00 : f32
    %55 = vector.broadcast %cst_23 : f32 to vector<16x16xf32>
    %56 = arith.addf %55, %54 : vector<16x16xf32>
    %57 = tpu.reciprocal %56 {approx = true} : vector<16x16xf32> -> vector<16x16xf32>
    %58 = arith.mulf %51, %57 : vector<16x16xf32>
    %c0_24 = arith.constant 0 : index
    %c0_25 = arith.constant 0 : index
    %59 = vector.load %arg16[%c0_24, %c0_25] : memref<16x16xf32, #tpu.memory_space<vmem>>, vector<16x16xf32>
    tpu.vector_store %arg16[%c0_24, %c0_25], %58 {strides = array<i32>} : memref<16x16xf32, #tpu.memory_space<vmem>>, vector<16x16xf32>,
    %c0_26 = arith.constant 0 : index
    %c0_27 = arith.constant 0 : index
    %60 = vector.load %arg8[%c0_26, %c0_27] : memref<16x48xf32, #tpu.memory_space<vmem>>, vector<16x48xf32>
    %cst_28 = arith.constant dense<0.000000e+00> : vector<16x48xf32>
    %61 = tpu.matmul %58, %60, %cst_28 {dimension_numbers = #tpu.dot_dimension_numbers<[1], [0], [0], [1], [0, 0, 1, 1], [], []>} : vector<16x16xf32>, vector<16x48xf32>, vector<16x48xf32> -> vector<16x48xf32>
    %62 = vector.extract_strided_slice %61 {offsets = [0, 0], sizes = [16, 16], strides = [1, 1]} : vector<16x48xf32> to vector<16x16xf32>
    %c0_29 = arith.constant 0 : index
    %c0_30 = arith.constant 0 : index
    %63 = vector.load %arg9[%c0_29, %c0_30] : memref<1x16xf32, #tpu.memory_space<vmem>>, vector<1x16xf32>
    %64 = vector.broadcast %63 : vector<1x16xf32> to vector<16x16xf32>
    %65 = arith.addf %62, %64 : vector<16x16xf32>
    %cst_31 = arith.constant 0.000000e+00 : f32
    %66 = vector.broadcast %cst_31 : f32 to vector<16x16xf32>
    %67 = arith.maximumf %65, %66 : vector<16x16xf32>
    %68 = math.absf %65 : vector<16x16xf32>
    %cst_32 = arith.constant 0.000000e+00 : f32
    %69 = vector.broadcast %cst_32 : f32 to vector<16x16xf32>
    %70 = arith.subf %69, %68 : vector<16x16xf32>
    %71 = math.exp %70 : vector<16x16xf32>
    %cst_33 = arith.constant 1.000000e+00 : f32
    %72 = vector.broadcast %cst_33 : f32 to vector<16x16xf32>
    %73 = arith.addf %72, %71 : vector<16x16xf32>
    %74 = math.log %73 : vector<16x16xf32>
    %75 = arith.addf %67, %74 : vector<16x16xf32>
    %c0_34 = arith.constant 0 : index
    %c0_35 = arith.constant 0 : index
    %76 = vector.load %arg15[%c0_34, %c0_35] : memref<16x16xf32, #tpu.memory_space<vmem>>, vector<16x16xf32>
    tpu.vector_store %arg15[%c0_34, %c0_35], %75 {strides = array<i32>} : memref<16x16xf32, #tpu.memory_space<vmem>>, vector<16x16xf32>,
    %77 = vector.extract_strided_slice %61 {offsets = [0, 16], sizes = [16, 16], strides = [1, 1]} : vector<16x48xf32> to vector<16x16xf32>
    %c0_36 = arith.constant 0 : index
    %c0_37 = arith.constant 0 : index
    %78 = vector.load %arg18[%c0_36, %c0_37] : memref<16x16xf32, #tpu.memory_space<vmem>>, vector<16x16xf32>
    tpu.vector_store %arg18[%c0_36, %c0_37], %77 {strides = array<i32>} : memref<16x16xf32, #tpu.memory_space<vmem>>, vector<16x16xf32>,
    %79 = vector.extract_strided_slice %61 {offsets = [0, 32], sizes = [16, 16], strides = [1, 1]} : vector<16x48xf32> to vector<16x16xf32>
    %c0_38 = arith.constant 0 : index
    %c0_39 = arith.constant 0 : index
    %80 = vector.load %arg19[%c0_38, %c0_39] : memref<16x16xf32, #tpu.memory_space<vmem>>, vector<16x16xf32>
    tpu.vector_store %arg19[%c0_38, %c0_39], %79 {strides = array<i32>} : memref<16x16xf32, #tpu.memory_space<vmem>>, vector<16x16xf32>,
    %c0_40 = arith.constant 0 : index
    %c0_41 = arith.constant 0 : index
    %81 = vector.load %arg10[%c0_40, %c0_41] : memref<16x16xf32, #tpu.memory_space<vmem>>, vector<16x16xf32>
    %82 = math.exp %81 : vector<16x16xf32>
    %cst_42 = arith.constant 0.000000e+00 : f32
    %83 = vector.broadcast %cst_42 : f32 to vector<16x16xf32>
    %84 = arith.subf %83, %82 : vector<16x16xf32>
    %c0_43 = arith.constant 0 : index
    %c0_44 = arith.constant 0 : index
    %85 = vector.load %arg11[%c0_43, %c0_44] : memref<1x16xf32, #tpu.memory_space<vmem>>, vector<1x16xf32>
    %c0_45 = arith.constant 0 : index
    %c0_46 = arith.constant 0 : index
    %86 = vector.load %arg21[%c0_45, %c0_46] : memref<16x16xf32, #tpu.memory_space<vmem>>, vector<16x16xf32>
    %c0_i32_47 = arith.constant 0 : i32
    %c2_i32 = arith.constant 2 : i32
    %87 = arith.addi %c0_i32_47, %c2_i32 : i32
    %c1_i32 = arith.constant 1 : i32
    %88 = scf.for %arg23 = %c0_i32_47 to %87 step %c1_i32 iter_args(%arg24 = %86) -> (vector<16x16xf32>)  : i32 {
      %c8_i32 = arith.constant 8 : i32
      %100 = arith.muli %arg23, %c8_i32 : i32
      %101 = tpu.assume_multiple %100, 8 : i32
      %102 = arith.index_cast %101 : i32 to index
      %c0_61 = arith.constant 0 : index
      %103 = vector.load %arg15[%102, %c0_61] : memref<16x16xf32, #tpu.memory_space<vmem>>, vector<8x16xf32>
      %104 = arith.index_cast %101 : i32 to index
      %c0_62 = arith.constant 0 : index
      %105 = vector.load %arg16[%104, %c0_62] : memref<16x16xf32, #tpu.memory_space<vmem>>, vector<8x16xf32>
      %106 = arith.index_cast %101 : i32 to index
      %c0_63 = arith.constant 0 : index
      %107 = vector.load %arg17[%106, %c0_63] : memref<16x16xf32, #tpu.memory_space<vmem>>, vector<8x16xf32>
      %108 = arith.index_cast %101 : i32 to index
      %c0_64 = arith.constant 0 : index
      %109 = vector.load %arg18[%108, %c0_64] : memref<16x16xf32, #tpu.memory_space<vmem>>, vector<8x16xf32>
      %110 = arith.index_cast %101 : i32 to index
      %c0_65 = arith.constant 0 : index
      %111 = vector.load %arg19[%110, %c0_65] : memref<16x16xf32, #tpu.memory_space<vmem>>, vector<8x16xf32>
      %112 = vector.shape_cast %103 : vector<8x16xf32> to vector<8x1x16xf32>
      %113 = vector.shape_cast %84 : vector<16x16xf32> to vector<1x16x16xf32>
      %114 = vector.broadcast %112 : vector<8x1x16xf32> to vector<8x16x16xf32>
      %115 = vector.broadcast %113 : vector<1x16x16xf32> to vector<8x16x16xf32>
      %116 = arith.mulf %114, %115 : vector<8x16x16xf32>
      %117 = math.exp %116 : vector<8x16x16xf32>
      %118 = arith.mulf %103, %105 : vector<8x16xf32>
      %119 = vector.shape_cast %118 : vector<8x16xf32> to vector<8x1x16xf32>
      %120 = vector.shape_cast %109 : vector<8x16xf32> to vector<8x16x1xf32>
      %121 = vector.broadcast %119 : vector<8x1x16xf32> to vector<8x16x16xf32>
      %122 = vector.broadcast %120 : vector<8x16x1xf32> to vector<8x16x16xf32>
      %123 = arith.mulf %121, %122 : vector<8x16x16xf32>
      %124 = vector.shape_cast %111 : vector<8x16xf32> to vector<8x16x1xf32>
      %125 = vector.extract_strided_slice %117 {offsets = [0, 0, 0], sizes = [1, 16, 16], strides = [1, 1, 1]} : vector<8x16x16xf32> to vector<1x16x16xf32>
      %126 = vector.shape_cast %125 : vector<1x16x16xf32> to vector<16x16xf32>
      %127 = arith.mulf %126, %arg24 : vector<16x16xf32>
      %128 = vector.extract_strided_slice %123 {offsets = [0, 0, 0], sizes = [1, 16, 16], strides = [1, 1, 1]} : vector<8x16x16xf32> to vector<1x16x16xf32>
      %129 = vector.shape_cast %128 : vector<1x16x16xf32> to vector<16x16xf32>
      %130 = arith.addf %127, %129 : vector<16x16xf32>
      %131 = vector.extract_strided_slice %124 {offsets = [0, 0, 0], sizes = [1, 16, 1], strides = [1, 1, 1]} : vector<8x16x1xf32> to vector<1x16x1xf32>
      %132 = vector.shape_cast %131 : vector<1x16x1xf32> to vector<16x1xf32>
      %133 = vector.broadcast %132 : vector<16x1xf32> to vector<16x16xf32>
      %134 = arith.mulf %130, %133 : vector<16x16xf32>
      %cst_66 = arith.constant dense<0.000000e+00> : vector<16xf32>
      %135 = vector.multi_reduction <add>, %134, %cst_66 [0] : vector<16x16xf32> to vector<16xf32>
      %136 = vector.shape_cast %135 : vector<16xf32> to vector<1x16xf32>
      %137 = vector.extract_strided_slice %117 {offsets = [1, 0, 0], sizes = [1, 16, 16], strides = [1, 1, 1]} : vector<8x16x16xf32> to vector<1x16x16xf32>
      %138 = vector.shape_cast %137 : vector<1x16x16xf32> to vector<16x16xf32>
      %139 = arith.mulf %138, %130 : vector<16x16xf32>
      %140 = vector.extract_strided_slice %123 {offsets = [1, 0, 0], sizes = [1, 16, 16], strides = [1, 1, 1]} : vector<8x16x16xf32> to vector<1x16x16xf32>
      %141 = vector.shape_cast %140 : vector<1x16x16xf32> to vector<16x16xf32>
      %142 = arith.addf %139, %141 : vector<16x16xf32>
      %143 = vector.extract_strided_slice %124 {offsets = [1, 0, 0], sizes = [1, 16, 1], strides = [1, 1, 1]} : vector<8x16x1xf32> to vector<1x16x1xf32>
      %144 = vector.shape_cast %143 : vector<1x16x1xf32> to vector<16x1xf32>
      %145 = vector.broadcast %144 : vector<16x1xf32> to vector<16x16xf32>
      %146 = arith.mulf %142, %145 : vector<16x16xf32>
      %cst_67 = arith.constant dense<0.000000e+00> : vector<16xf32>
      %147 = vector.multi_reduction <add>, %146, %cst_67 [0] : vector<16x16xf32> to vector<16xf32>
      %148 = vector.shape_cast %147 : vector<16xf32> to vector<1x16xf32>
      %149 = vector.extract_strided_slice %117 {offsets = [2, 0, 0], sizes = [1, 16, 16], strides = [1, 1, 1]} : vector<8x16x16xf32> to vector<1x16x16xf32>
      %150 = vector.shape_cast %149 : vector<1x16x16xf32> to vector<16x16xf32>
      %151 = arith.mulf %150, %142 : vector<16x16xf32>
      %152 = vector.extract_strided_slice %123 {offsets = [2, 0, 0], sizes = [1, 16, 16], strides = [1, 1, 1]} : vector<8x16x16xf32> to vector<1x16x16xf32>
      %153 = vector.shape_cast %152 : vector<1x16x16xf32> to vector<16x16xf32>
      %154 = arith.addf %151, %153 : vector<16x16xf32>
      %155 = vector.extract_strided_slice %124 {offsets = [2, 0, 0], sizes = [1, 16, 1], strides = [1, 1, 1]} : vector<8x16x1xf32> to vector<1x16x1xf32>
      %156 = vector.shape_cast %155 : vector<1x16x1xf32> to vector<16x1xf32>
      %157 = vector.broadcast %156 : vector<16x1xf32> to vector<16x16xf32>
      %158 = arith.mulf %154, %157 : vector<16x16xf32>
      %cst_68 = arith.constant dense<0.000000e+00> : vector<16xf32>
      %159 = vector.multi_reduction <add>, %158, %cst_68 [0] : vector<16x16xf32> to vector<16xf32>
      %160 = vector.shape_cast %159 : vector<16xf32> to vector<1x16xf32>
      %161 = vector.extract_strided_slice %117 {offsets = [3, 0, 0], sizes = [1, 16, 16], strides = [1, 1, 1]} : vector<8x16x16xf32> to vector<1x16x16xf32>
      %162 = vector.shape_cast %161 : vector<1x16x16xf32> to vector<16x16xf32>
      %163 = arith.mulf %162, %154 : vector<16x16xf32>
      %164 = vector.extract_strided_slice %123 {offsets = [3, 0, 0], sizes = [1, 16, 16], strides = [1, 1, 1]} : vector<8x16x16xf32> to vector<1x16x16xf32>
      %165 = vector.shape_cast %164 : vector<1x16x16xf32> to vector<16x16xf32>
      %166 = arith.addf %163, %165 : vector<16x16xf32>
      %167 = vector.extract_strided_slice %124 {offsets = [3, 0, 0], sizes = [1, 16, 1], strides = [1, 1, 1]} : vector<8x16x1xf32> to vector<1x16x1xf32>
      %168 = vector.shape_cast %167 : vector<1x16x1xf32> to vector<16x1xf32>
      %169 = vector.broadcast %168 : vector<16x1xf32> to vector<16x16xf32>
      %170 = arith.mulf %166, %169 : vector<16x16xf32>
      %cst_69 = arith.constant dense<0.000000e+00> : vector<16xf32>
      %171 = vector.multi_reduction <add>, %170, %cst_69 [0] : vector<16x16xf32> to vector<16xf32>
      %172 = vector.shape_cast %171 : vector<16xf32> to vector<1x16xf32>
      %173 = vector.extract_strided_slice %117 {offsets = [4, 0, 0], sizes = [1, 16, 16], strides = [1, 1, 1]} : vector<8x16x16xf32> to vector<1x16x16xf32>
      %174 = vector.shape_cast %173 : vector<1x16x16xf32> to vector<16x16xf32>
      %175 = arith.mulf %174, %166 : vector<16x16xf32>
      %176 = vector.extract_strided_slice %123 {offsets = [4, 0, 0], sizes = [1, 16, 16], strides = [1, 1, 1]} : vector<8x16x16xf32> to vector<1x16x16xf32>
      %177 = vector.shape_cast %176 : vector<1x16x16xf32> to vector<16x16xf32>
      %178 = arith.addf %175, %177 : vector<16x16xf32>
      %179 = vector.extract_strided_slice %124 {offsets = [4, 0, 0], sizes = [1, 16, 1], strides = [1, 1, 1]} : vector<8x16x1xf32> to vector<1x16x1xf32>
      %180 = vector.shape_cast %179 : vector<1x16x1xf32> to vector<16x1xf32>
      %181 = vector.broadcast %180 : vector<16x1xf32> to vector<16x16xf32>
      %182 = arith.mulf %178, %181 : vector<16x16xf32>
      %cst_70 = arith.constant dense<0.000000e+00> : vector<16xf32>
      %183 = vector.multi_reduction <add>, %182, %cst_70 [0] : vector<16x16xf32> to vector<16xf32>
      %184 = vector.shape_cast %183 : vector<16xf32> to vector<1x16xf32>
      %185 = vector.extract_strided_slice %117 {offsets = [5, 0, 0], sizes = [1, 16, 16], strides = [1, 1, 1]} : vector<8x16x16xf32> to vector<1x16x16xf32>
      %186 = vector.shape_cast %185 : vector<1x16x16xf32> to vector<16x16xf32>
      %187 = arith.mulf %186, %178 : vector<16x16xf32>
      %188 = vector.extract_strided_slice %123 {offsets = [5, 0, 0], sizes = [1, 16, 16], strides = [1, 1, 1]} : vector<8x16x16xf32> to vector<1x16x16xf32>
      %189 = vector.shape_cast %188 : vector<1x16x16xf32> to vector<16x16xf32>
      %190 = arith.addf %187, %189 : vector<16x16xf32>
      %191 = vector.extract_strided_slice %124 {offsets = [5, 0, 0], sizes = [1, 16, 1], strides = [1, 1, 1]} : vector<8x16x1xf32> to vector<1x16x1xf32>
      %192 = vector.shape_cast %191 : vector<1x16x1xf32> to vector<16x1xf32>
      %193 = vector.broadcast %192 : vector<16x1xf32> to vector<16x16xf32>
      %194 = arith.mulf %190, %193 : vector<16x16xf32>
      %cst_71 = arith.constant dense<0.000000e+00> : vector<16xf32>
      %195 = vector.multi_reduction <add>, %194, %cst_71 [0] : vector<16x16xf32> to vector<16xf32>
      %196 = vector.shape_cast %195 : vector<16xf32> to vector<1x16xf32>
      %197 = vector.extract_strided_slice %117 {offsets = [6, 0, 0], sizes = [1, 16, 16], strides = [1, 1, 1]} : vector<8x16x16xf32> to vector<1x16x16xf32>
      %198 = vector.shape_cast %197 : vector<1x16x16xf32> to vector<16x16xf32>
      %199 = arith.mulf %198, %190 : vector<16x16xf32>
      %200 = vector.extract_strided_slice %123 {offsets = [6, 0, 0], sizes = [1, 16, 16], strides = [1, 1, 1]} : vector<8x16x16xf32> to vector<1x16x16xf32>
      %201 = vector.shape_cast %200 : vector<1x16x16xf32> to vector<16x16xf32>
      %202 = arith.addf %199, %201 : vector<16x16xf32>
      %203 = vector.extract_strided_slice %124 {offsets = [6, 0, 0], sizes = [1, 16, 1], strides = [1, 1, 1]} : vector<8x16x1xf32> to vector<1x16x1xf32>
      %204 = vector.shape_cast %203 : vector<1x16x1xf32> to vector<16x1xf32>
      %205 = vector.broadcast %204 : vector<16x1xf32> to vector<16x16xf32>
      %206 = arith.mulf %202, %205 : vector<16x16xf32>
      %cst_72 = arith.constant dense<0.000000e+00> : vector<16xf32>
      %207 = vector.multi_reduction <add>, %206, %cst_72 [0] : vector<16x16xf32> to vector<16xf32>
      %208 = vector.shape_cast %207 : vector<16xf32> to vector<1x16xf32>
      %209 = vector.extract_strided_slice %117 {offsets = [7, 0, 0], sizes = [1, 16, 16], strides = [1, 1, 1]} : vector<8x16x16xf32> to vector<1x16x16xf32>
      %210 = vector.shape_cast %209 : vector<1x16x16xf32> to vector<16x16xf32>
      %211 = arith.mulf %210, %202 : vector<16x16xf32>
      %212 = vector.extract_strided_slice %123 {offsets = [7, 0, 0], sizes = [1, 16, 16], strides = [1, 1, 1]} : vector<8x16x16xf32> to vector<1x16x16xf32>
      %213 = vector.shape_cast %212 : vector<1x16x16xf32> to vector<16x16xf32>
      %214 = arith.addf %211, %213 : vector<16x16xf32>
      %215 = vector.extract_strided_slice %124 {offsets = [7, 0, 0], sizes = [1, 16, 1], strides = [1, 1, 1]} : vector<8x16x1xf32> to vector<1x16x1xf32>
      %216 = vector.shape_cast %215 : vector<1x16x1xf32> to vector<16x1xf32>
      %217 = vector.broadcast %216 : vector<16x1xf32> to vector<16x16xf32>
      %218 = arith.mulf %214, %217 : vector<16x16xf32>
      %cst_73 = arith.constant dense<0.000000e+00> : vector<16xf32>
      %219 = vector.multi_reduction <add>, %218, %cst_73 [0] : vector<16x16xf32> to vector<16xf32>
      %220 = vector.shape_cast %219 : vector<16xf32> to vector<1x16xf32>
      %221 = tpu.concatenate %136, %148, %160, %172, %184, %196, %208, %220 in 0 : vector<1x16xf32>, vector<1x16xf32>, vector<1x16xf32>, vector<1x16xf32>, vector<1x16xf32>, vector<1x16xf32>, vector<1x16xf32>, vector<1x16xf32> -> vector<8x16xf32>
      %222 = vector.broadcast %85 : vector<1x16xf32> to vector<8x16xf32>
      %223 = arith.mulf %105, %222 : vector<8x16xf32>
      %224 = arith.addf %221, %223 : vector<8x16xf32>
      %225 = arith.mulf %224, %107 : vector<8x16xf32>
      %226 = arith.index_cast %101 : i32 to index
      %c0_74 = arith.constant 0 : index
      %227 = vector.load %arg20[%226, %c0_74] : memref<16x16xf32, #tpu.memory_space<vmem>>, vector<8x16xf32>
      tpu.vector_store %arg20[%226, %c0_74], %225 {strides = array<i32>} : memref<16x16xf32, #tpu.memory_space<vmem>>, vector<8x16xf32>,
      scf.yield %214 : vector<16x16xf32>
    }
    %c2_i32_48 = arith.constant 2 : i32
    %c0_49 = arith.constant 0 : index
    %c0_50 = arith.constant 0 : index
    %89 = vector.load %arg21[%c0_49, %c0_50] : memref<16x16xf32, #tpu.memory_space<vmem>>, vector<16x16xf32>
    tpu.vector_store %arg21[%c0_49, %c0_50], %88 {strides = array<i32>} : memref<16x16xf32, #tpu.memory_space<vmem>>, vector<16x16xf32>,
    %c0_51 = arith.constant 0 : index
    %c0_52 = arith.constant 0 : index
    %90 = vector.load %arg20[%c0_51, %c0_52] : memref<16x16xf32, #tpu.memory_space<vmem>>, vector<16x16xf32>
    %c0_53 = arith.constant 0 : index
    %c0_54 = arith.constant 0 : index
    %91 = vector.load %arg12[%c0_53, %c0_54] : memref<16x32xf32, #tpu.memory_space<vmem>>, vector<16x32xf32>
    %cst_55 = arith.constant dense<0.000000e+00> : vector<16x32xf32>
    %92 = tpu.matmul %90, %91, %cst_55 {dimension_numbers = #tpu.dot_dimension_numbers<[1], [0], [0], [1], [0, 0, 1, 1], [], []>} : vector<16x16xf32>, vector<16x32xf32>, vector<16x32xf32> -> vector<16x32xf32>
    %c0_56 = arith.constant 0 : index
    %c0_57 = arith.constant 0 : index
    %93 = vector.load %arg13[%c0_56, %c0_57] : memref<1x32xf32, #tpu.memory_space<vmem>>, vector<1x32xf32>
    %94 = vector.broadcast %93 : vector<1x32xf32> to vector<16x32xf32>
    %95 = arith.addf %92, %94 : vector<16x32xf32>
    %96 = arith.addf %95, %17 : vector<16x32xf32>
    %c0_58 = arith.constant 0 : index
    %c0_59 = arith.constant 0 : index
    %c0_60 = arith.constant 0 : index
    %97 = vector.load %arg14[%c0_58, %c0_59, %c0_60] : memref<1x16x32xf32, #tpu.memory_space<vmem>>, vector<1x16x32xf32>
    %98 = vector.shape_cast %97 : vector<1x16x32xf32> to vector<16x32xf32>
    %99 = vector.shape_cast %96 : vector<16x32xf32> to vector<1x16x32xf32>
    tpu.vector_store %arg14[%c0_58, %c0_59, %c0_60], %99 {strides = array<i32>} : memref<1x16x32xf32, #tpu.memory_space<vmem>>, vector<1x16x32xf32>,
    return
  }
  func.func @transform_0(%arg0: i32, %arg1: i32) -> (i32, i32, i32) {
    %c0_i32 = arith.constant 0 : i32
    %c0_i32_0 = arith.constant 0 : i32
    return %arg0, %arg1, %c0_i32 : i32, i32, i32
  }
  func.func @transform_1(%arg0: i32, %arg1: i32) -> (i32, i32) {
    %c0_i32 = arith.constant 0 : i32
    %c0_i32_0 = arith.constant 0 : i32
    %c0_i32_1 = arith.constant 0 : i32
    return %c0_i32, %c0_i32_0 : i32, i32
  }
  func.func @transform_2(%arg0: i32, %arg1: i32) -> (i32, i32) {
    %c0_i32 = arith.constant 0 : i32
    %c0_i32_0 = arith.constant 0 : i32
    %c0_i32_1 = arith.constant 0 : i32
    return %c0_i32, %c0_i32_0 : i32, i32
  }
  func.func @transform_3(%arg0: i32, %arg1: i32) -> (i32, i32) {
    %c0_i32 = arith.constant 0 : i32
    %c0_i32_0 = arith.constant 0 : i32
    %c0_i32_1 = arith.constant 0 : i32
    return %c0_i32, %c0_i32_0 : i32, i32
  }
  func.func @transform_4(%arg0: i32, %arg1: i32) -> (i32, i32) {
    %c0_i32 = arith.constant 0 : i32
    %c0_i32_0 = arith.constant 0 : i32
    %c0_i32_1 = arith.constant 0 : i32
    return %c0_i32, %c0_i32_0 : i32, i32
  }
  func.func @transform_5(%arg0: i32, %arg1: i32) -> (i32, i32) {
    %c0_i32 = arith.constant 0 : i32
    %c0_i32_0 = arith.constant 0 : i32
    %c0_i32_1 = arith.constant 0 : i32
    return %c0_i32, %c0_i32_0 : i32, i32
  }
  func.func @transform_6(%arg0: i32, %arg1: i32) -> (i32, i32) {
    %c0_i32 = arith.constant 0 : i32
    %c0_i32_0 = arith.constant 0 : i32
    %c0_i32_1 = arith.constant 0 : i32
    return %c0_i32, %c0_i32_0 : i32, i32
  }
  func.func @transform_7(%arg0: i32, %arg1: i32) -> (i32, i32) {
    %c0_i32 = arith.constant 0 : i32
    %c0_i32_0 = arith.constant 0 : i32
    %c0_i32_1 = arith.constant 0 : i32
    return %c0_i32, %c0_i32_0 : i32, i32
  }
  func.func @transform_8(%arg0: i32, %arg1: i32) -> (i32, i32) {
    %c0_i32 = arith.constant 0 : i32
    %c0_i32_0 = arith.constant 0 : i32
    %c0_i32_1 = arith.constant 0 : i32
    return %c0_i32, %c0_i32_0 : i32, i32
  }
  func.func @transform_9(%arg0: i32, %arg1: i32) -> (i32, i32) {
    %c0_i32 = arith.constant 0 : i32
    %c0_i32_0 = arith.constant 0 : i32
    %c0_i32_1 = arith.constant 0 : i32
    return %c0_i32, %c0_i32_0 : i32, i32
  }
  func.func @transform_10(%arg0: i32, %arg1: i32) -> (i32, i32) {
    %c0_i32 = arith.constant 0 : i32
    %c0_i32_0 = arith.constant 0 : i32
    %c0_i32_1 = arith.constant 0 : i32
    return %c0_i32, %c0_i32_0 : i32, i32
  }
  func.func @transform_11(%arg0: i32, %arg1: i32) -> (i32, i32) {
    %c0_i32 = arith.constant 0 : i32
    %c0_i32_0 = arith.constant 0 : i32
    %c0_i32_1 = arith.constant 0 : i32
    return %c0_i32, %c0_i32_0 : i32, i32
  }
  func.func @transform_12(%arg0: i32, %arg1: i32) -> (i32, i32, i32) {
    %c0_i32 = arith.constant 0 : i32
    %c0_i32_0 = arith.constant 0 : i32
    return %arg0, %arg1, %c0_i32 : i32, i32, i32
  }
}

module attributes {stable_mosaic.version = 11 : i64} {
  func.func @mamba_block_kernel(%arg0: i32, %arg1: i32, %arg2: memref<1x16x32xf32, #tpu.memory_space<vmem>>, %arg3: memref<1x32xf32, #tpu.memory_space<vmem>>, %arg4: memref<32x32xf32, #tpu.memory_space<vmem>>, %arg5: memref<1x32xf32, #tpu.memory_space<vmem>>, %arg6: memref<4x16xf32, #tpu.memory_space<vmem>>, %arg7: memref<1x16xf32, #tpu.memory_space<vmem>>, %arg8: memref<16x48xf32, #tpu.memory_space<vmem>>, %arg9: memref<1x16xf32, #tpu.memory_space<vmem>>, %arg10: memref<16x16xf32, #tpu.memory_space<vmem>>, %arg11: memref<1x16xf32, #tpu.memory_space<vmem>>, %arg12: memref<16x32xf32, #tpu.memory_space<vmem>>, %arg13: memref<1x32xf32, #tpu.memory_space<vmem>>, %arg14: memref<1x16x32xf32, #tpu.memory_space<vmem>>, %arg15: memref<16x16xf32, #tpu.memory_space<vmem>>, %arg16: memref<16x16xf32, #tpu.memory_space<vmem>>, %arg17: memref<16x16xf32, #tpu.memory_space<vmem>>, %arg18: memref<16x16xf32, #tpu.memory_space<vmem>>, %arg19: memref<16x16xf32, #tpu.memory_space<vmem>>, %arg20: memref<16x16xf32, #tpu.memory_space<vmem>>, %arg21: memref<16x16xf32, #tpu.memory_space<vmem>>, %arg22: memref<8x16xf32, #tpu.memory_space<vmem>>) attributes {dimension_semantics = [#tpu.dimension_semantics<parallel>, #tpu.dimension_semantics<arbitrary>], iteration_bounds = array<i64: 2, 2>, scalar_prefetch = 0 : i64, scratch_operands = 8 : i64, tpu.core_type = #tpu.core_type<tc>, window_params = [{transform_indices = @transform_0, window_bounds = array<i64: 1, 16, 32>}, {pipeline_mode = #tpu.pipeline_mode<synchronous>, transform_indices = @transform_1, window_bounds = array<i64: 1, 32>}, {pipeline_mode = #tpu.pipeline_mode<synchronous>, transform_indices = @transform_2, window_bounds = array<i64: 32, 32>}, {pipeline_mode = #tpu.pipeline_mode<synchronous>, transform_indices = @transform_3, window_bounds = array<i64: 1, 32>}, {pipeline_mode = #tpu.pipeline_mode<synchronous>, transform_indices = @transform_4, window_bounds = array<i64: 4, 16>}, {pipeline_mode = #tpu.pipeline_mode<synchronous>, transform_indices = @transform_5, window_bounds = array<i64: 1, 16>}, {pipeline_mode = #tpu.pipeline_mode<synchronous>, transform_indices = @transform_6, window_bounds = array<i64: 16, 48>}, {pipeline_mode = #tpu.pipeline_mode<synchronous>, transform_indices = @transform_7, window_bounds = array<i64: 1, 16>}, {pipeline_mode = #tpu.pipeline_mode<synchronous>, transform_indices = @transform_8, window_bounds = array<i64: 16, 16>}, {pipeline_mode = #tpu.pipeline_mode<synchronous>, transform_indices = @transform_9, window_bounds = array<i64: 1, 16>}, {pipeline_mode = #tpu.pipeline_mode<synchronous>, transform_indices = @transform_10, window_bounds = array<i64: 16, 32>}, {pipeline_mode = #tpu.pipeline_mode<synchronous>, transform_indices = @transform_11, window_bounds = array<i64: 1, 32>}, {transform_indices = @transform_12, window_bounds = array<i64: 1, 16, 32>}]} {
    %c0_i32 = arith.constant 0 : i32
    %0 = arith.cmpi eq, %arg1, %c0_i32 : i32
    %1 = arith.extui %0 : i1 to i32
    %c0_i32_0 = arith.constant 0 : i32
    %2 = arith.cmpi ne, %1, %c0_i32_0 : i32
    scf.if %2 {
      %cst_61 = arith.constant 0.000000e+00 : f32
      %100 = vector.broadcast %cst_61 : f32 to vector<16x16xf32>
      %c0_62 = arith.constant 0 : index
      %c0_63 = arith.constant 0 : index
      %101 = vector.load %arg21[%c0_62, %c0_63] : memref<16x16xf32, #tpu.memory_space<vmem>>, vector<16x16xf32>
      tpu.vector_store %arg21[%c0_62, %c0_63], %100 {strides = array<i32>} : memref<16x16xf32, #tpu.memory_space<vmem>>, vector<16x16xf32>,
      %cst_64 = arith.constant 0.000000e+00 : f32
      %102 = vector.broadcast %cst_64 : f32 to vector<8x16xf32>
      %c0_65 = arith.constant 0 : index
      %c0_66 = arith.constant 0 : index
      %103 = vector.load %arg22[%c0_65, %c0_66] : memref<8x16xf32, #tpu.memory_space<vmem>>, vector<8x16xf32>
      tpu.vector_store %arg22[%c0_65, %c0_66], %102 {strides = array<i32>} : memref<8x16xf32, #tpu.memory_space<vmem>>, vector<8x16xf32>,
    } else {
    }
    %c0 = arith.constant 0 : index
    %c0_1 = arith.constant 0 : index
    %c0_2 = arith.constant 0 : index
    %3 = vector.load %arg2[%c0, %c0_1, %c0_2] : memref<1x16x32xf32, #tpu.memory_space<vmem>>, vector<1x16x32xf32>
    %4 = vector.shape_cast %3 : vector<1x16x32xf32> to vector<16x32xf32>
    %c0_3 = arith.constant 0 : index
    %c0_4 = arith.constant 0 : index
    %5 = vector.load %arg3[%c0_3, %c0_4] : memref<1x32xf32, #tpu.memory_space<vmem>>, vector<1x32xf32>
    %6 = arith.mulf %4, %4 : vector<16x32xf32>
    %cst = arith.constant dense<0.000000e+00> : vector<16xf32>
    %7 = vector.multi_reduction <add>, %6, %cst [1] : vector<16x32xf32> to vector<16xf32>
    %8 = vector.shape_cast %7 : vector<16xf32> to vector<16x1xf32>
    %cst_5 = arith.constant 3.200000e+01 : f32
    %9 = vector.broadcast %cst_5 : f32 to vector<16x1xf32>
    %10 = arith.divf %8, %9 : vector<16x1xf32>
    %cst_6 = arith.constant 9.99999997E-7 : f32
    %11 = vector.broadcast %cst_6 : f32 to vector<16x1xf32>
    %12 = arith.addf %10, %11 : vector<16x1xf32>
    %13 = math.rsqrt %12 : vector<16x1xf32>
    %14 = vector.broadcast %13 : vector<16x1xf32> to vector<16x32xf32>
    %15 = arith.mulf %4, %14 : vector<16x32xf32>
    %16 = vector.broadcast %5 : vector<1x32xf32> to vector<16x32xf32>
    %17 = arith.mulf %15, %16 : vector<16x32xf32>
    %c0_7 = arith.constant 0 : index
    %c0_8 = arith.constant 0 : index
    %18 = vector.load %arg4[%c0_7, %c0_8] : memref<32x32xf32, #tpu.memory_space<vmem>>, vector<32x32xf32>
    %cst_9 = arith.constant dense<0.000000e+00> : vector<16x32xf32>
    %19 = tpu.matmul %17, %18, %cst_9 {dimension_numbers = #tpu.dot_dimension_numbers<[1], [0], [0], [1], [0, 0, 1, 1], [], []>} : vector<16x32xf32>, vector<32x32xf32>, vector<16x32xf32> -> vector<16x32xf32>
    %c0_10 = arith.constant 0 : index
    %c0_11 = arith.constant 0 : index
    %20 = vector.load %arg5[%c0_10, %c0_11] : memref<1x32xf32, #tpu.memory_space<vmem>>, vector<1x32xf32>
    %21 = vector.broadcast %20 : vector<1x32xf32> to vector<16x32xf32>
    %22 = arith.addf %19, %21 : vector<16x32xf32>
    %23 = vector.extract_strided_slice %22 {offsets = [0, 0], sizes = [16, 16], strides = [1, 1]} : vector<16x32xf32> to vector<16x16xf32>
    %24 = vector.extract_strided_slice %22 {offsets = [0, 16], sizes = [16, 16], strides = [1, 1]} : vector<16x32xf32> to vector<16x16xf32>
    %c0_12 = arith.constant 0 : index
    %c0_13 = arith.constant 0 : index
    %25 = vector.load %arg17[%c0_12, %c0_13] : memref<16x16xf32, #tpu.memory_space<vmem>>, vector<16x16xf32>
    tpu.vector_store %arg17[%c0_12, %c0_13], %24 {strides = array<i32>} : memref<16x16xf32, #tpu.memory_space<vmem>>, vector<16x16xf32>,
    %c0_14 = arith.constant 0 : index
    %c0_15 = arith.constant 0 : index
    %26 = vector.load %arg22[%c0_14, %c0_15] : memref<8x16xf32, #tpu.memory_space<vmem>>, vector<8x16xf32>
    %27 = tpu.concatenate %26, %23 in 0 : vector<8x16xf32>, vector<16x16xf32> -> vector<24x16xf32>
    %28 = vector.extract_strided_slice %23 {offsets = [8, 0], sizes = [8, 16], strides = [1, 1]} : vector<16x16xf32> to vector<8x16xf32>
    %c0_16 = arith.constant 0 : index
    %c0_17 = arith.constant 0 : index
    %29 = vector.load %arg22[%c0_16, %c0_17] : memref<8x16xf32, #tpu.memory_space<vmem>>, vector<8x16xf32>
    tpu.vector_store %arg22[%c0_16, %c0_17], %28 {strides = array<i32>} : memref<8x16xf32, #tpu.memory_space<vmem>>, vector<8x16xf32>,
    %c0_18 = arith.constant 0 : index
    %c0_19 = arith.constant 0 : index
    %30 = vector.load %arg6[%c0_18, %c0_19] : memref<4x16xf32, #tpu.memory_space<vmem>>, vector<4x16xf32>
    %31 = vector.extract_strided_slice %30 {offsets = [3, 0], sizes = [1, 16], strides = [1, 1]} : vector<4x16xf32> to vector<1x16xf32>
    %32 = vector.broadcast %31 : vector<1x16xf32> to vector<16x16xf32>
    %33 = arith.mulf %23, %32 : vector<16x16xf32>
    %34 = vector.extract_strided_slice %27 {offsets = [5, 0], sizes = [16, 16], strides = [1, 1]} : vector<24x16xf32> to vector<16x16xf32>
    %35 = vector.extract_strided_slice %30 {offsets = [0, 0], sizes = [1, 16], strides = [1, 1]} : vector<4x16xf32> to vector<1x16xf32>
    %36 = vector.broadcast %35 : vector<1x16xf32> to vector<16x16xf32>
    %37 = arith.mulf %34, %36 : vector<16x16xf32>
    %38 = arith.addf %33, %37 : vector<16x16xf32>
    %39 = vector.extract_strided_slice %27 {offsets = [6, 0], sizes = [16, 16], strides = [1, 1]} : vector<24x16xf32> to vector<16x16xf32>
    %40 = vector.extract_strided_slice %30 {offsets = [1, 0], sizes = [1, 16], strides = [1, 1]} : vector<4x16xf32> to vector<1x16xf32>
    %41 = vector.broadcast %40 : vector<1x16xf32> to vector<16x16xf32>
    %42 = arith.mulf %39, %41 : vector<16x16xf32>
    %43 = arith.addf %38, %42 : vector<16x16xf32>
    %44 = vector.extract_strided_slice %27 {offsets = [7, 0], sizes = [16, 16], strides = [1, 1]} : vector<24x16xf32> to vector<16x16xf32>
    %45 = vector.extract_strided_slice %30 {offsets = [2, 0], sizes = [1, 16], strides = [1, 1]} : vector<4x16xf32> to vector<1x16xf32>
    %46 = vector.broadcast %45 : vector<1x16xf32> to vector<16x16xf32>
    %47 = arith.mulf %44, %46 : vector<16x16xf32>
    %48 = arith.addf %43, %47 : vector<16x16xf32>
    %c0_20 = arith.constant 0 : index
    %c0_21 = arith.constant 0 : index
    %49 = vector.load %arg7[%c0_20, %c0_21] : memref<1x16xf32, #tpu.memory_space<vmem>>, vector<1x16xf32>
    %50 = vector.broadcast %49 : vector<1x16xf32> to vector<16x16xf32>
    %51 = arith.addf %48, %50 : vector<16x16xf32>
    %cst_22 = arith.constant 0.000000e+00 : f32
    %52 = vector.broadcast %cst_22 : f32 to vector<16x16xf32>
    %53 = arith.subf %52, %51 : vector<16x16xf32>
    %54 = math.exp %53 : vector<16x16xf32>
    %cst_23 = arith.constant 1.000000e+00 : f32
    %55 = vector.broadcast %cst_23 : f32 to vector<16x16xf32>
    %56 = arith.addf %55, %54 : vector<16x16xf32>
    %57 = tpu.reciprocal %56 {approx = true} : vector<16x16xf32> -> vector<16x16xf32>
    %58 = arith.mulf %51, %57 : vector<16x16xf32>
    %c0_24 = arith.constant 0 : index
    %c0_25 = arith.constant 0 : index
    %59 = vector.load %arg16[%c0_24, %c0_25] : memref<16x16xf32, #tpu.memory_space<vmem>>, vector<16x16xf32>
    tpu.vector_store %arg16[%c0_24, %c0_25], %58 {strides = array<i32>} : memref<16x16xf32, #tpu.memory_space<vmem>>, vector<16x16xf32>,
    %c0_26 = arith.constant 0 : index
    %c0_27 = arith.constant 0 : index
    %60 = vector.load %arg8[%c0_26, %c0_27] : memref<16x48xf32, #tpu.memory_space<vmem>>, vector<16x48xf32>
    %cst_28 = arith.constant dense<0.000000e+00> : vector<16x48xf32>
    %61 = tpu.matmul %58, %60, %cst_28 {dimension_numbers = #tpu.dot_dimension_numbers<[1], [0], [0], [1], [0, 0, 1, 1], [], []>} : vector<16x16xf32>, vector<16x48xf32>, vector<16x48xf32> -> vector<16x48xf32>
    %62 = vector.extract_strided_slice %61 {offsets = [0, 0], sizes = [16, 16], strides = [1, 1]} : vector<16x48xf32> to vector<16x16xf32>
    %c0_29 = arith.constant 0 : index
    %c0_30 = arith.constant 0 : index
    %63 = vector.load %arg9[%c0_29, %c0_30] : memref<1x16xf32, #tpu.memory_space<vmem>>, vector<1x16xf32>
    %64 = vector.broadcast %63 : vector<1x16xf32> to vector<16x16xf32>
    %65 = arith.addf %62, %64 : vector<16x16xf32>
    %cst_31 = arith.constant 0.000000e+00 : f32
    %66 = vector.broadcast %cst_31 : f32 to vector<16x16xf32>
    %67 = arith.maximumf %65, %66 : vector<16x16xf32>
    %68 = math.absf %65 : vector<16x16xf32>
    %cst_32 = arith.constant 0.000000e+00 : f32
    %69 = vector.broadcast %cst_32 : f32 to vector<16x16xf32>
    %70 = arith.subf %69, %68 : vector<16x16xf32>
    %71 = math.exp %70 : vector<16x16xf32>
    %cst_33 = arith.constant 1.000000e+00 : f32
    %72 = vector.broadcast %cst_33 : f32 to vector<16x16xf32>
    %73 = arith.addf %72, %71 : vector<16x16xf32>
    %74 = math.log %73 : vector<16x16xf32>
    %75 = arith.addf %67, %74 : vector<16x16xf32>
    %c0_34 = arith.constant 0 : index
    %c0_35 = arith.constant 0 : index
    %76 = vector.load %arg15[%c0_34, %c0_35] : memref<16x16xf32, #tpu.memory_space<vmem>>, vector<16x16xf32>
    tpu.vector_store %arg15[%c0_34, %c0_35], %75 {strides = array<i32>} : memref<16x16xf32, #tpu.memory_space<vmem>>, vector<16x16xf32>,
    %77 = vector.extract_strided_slice %61 {offsets = [0, 16], sizes = [16, 16], strides = [1, 1]} : vector<16x48xf32> to vector<16x16xf32>
    %c0_36 = arith.constant 0 : index
    %c0_37 = arith.constant 0 : index
    %78 = vector.load %arg18[%c0_36, %c0_37] : memref<16x16xf32, #tpu.memory_space<vmem>>, vector<16x16xf32>
    tpu.vector_store %arg18[%c0_36, %c0_37], %77 {strides = array<i32>} : memref<16x16xf32, #tpu.memory_space<vmem>>, vector<16x16xf32>,
    %79 = vector.extract_strided_slice %61 {offsets = [0, 32], sizes = [16, 16], strides = [1, 1]} : vector<16x48xf32> to vector<16x16xf32>
    %c0_38 = arith.constant 0 : index
    %c0_39 = arith.constant 0 : index
    %80 = vector.load %arg19[%c0_38, %c0_39] : memref<16x16xf32, #tpu.memory_space<vmem>>, vector<16x16xf32>
    tpu.vector_store %arg19[%c0_38, %c0_39], %79 {strides = array<i32>} : memref<16x16xf32, #tpu.memory_space<vmem>>, vector<16x16xf32>,
    %c0_40 = arith.constant 0 : index
    %c0_41 = arith.constant 0 : index
    %81 = vector.load %arg10[%c0_40, %c0_41] : memref<16x16xf32, #tpu.memory_space<vmem>>, vector<16x16xf32>
    %82 = math.exp %81 : vector<16x16xf32>
    %cst_42 = arith.constant 0.000000e+00 : f32
    %83 = vector.broadcast %cst_42 : f32 to vector<16x16xf32>
    %84 = arith.subf %83, %82 : vector<16x16xf32>
    %c0_43 = arith.constant 0 : index
    %c0_44 = arith.constant 0 : index
    %85 = vector.load %arg11[%c0_43, %c0_44] : memref<1x16xf32, #tpu.memory_space<vmem>>, vector<1x16xf32>
    %c0_45 = arith.constant 0 : index
    %c0_46 = arith.constant 0 : index
    %86 = vector.load %arg21[%c0_45, %c0_46] : memref<16x16xf32, #tpu.memory_space<vmem>>, vector<16x16xf32>
    %c0_i32_47 = arith.constant 0 : i32
    %c2_i32 = arith.constant 2 : i32
    %87 = arith.addi %c0_i32_47, %c2_i32 : i32
    %c1_i32 = arith.constant 1 : i32
    %88 = scf.for %arg23 = %c0_i32_47 to %87 step %c1_i32 iter_args(%arg24 = %86) -> (vector<16x16xf32>)  : i32 {
      %c8_i32 = arith.constant 8 : i32
      %100 = arith.muli %arg23, %c8_i32 : i32
      %101 = tpu.assume_multiple %100, 8 : i32
      %102 = arith.index_cast %101 : i32 to index
      %c0_61 = arith.constant 0 : index
      %103 = vector.load %arg15[%102, %c0_61] : memref<16x16xf32, #tpu.memory_space<vmem>>, vector<8x16xf32>
      %104 = arith.index_cast %101 : i32 to index
      %c0_62 = arith.constant 0 : index
      %105 = vector.load %arg16[%104, %c0_62] : memref<16x16xf32, #tpu.memory_space<vmem>>, vector<8x16xf32>
      %106 = arith.index_cast %101 : i32 to index
      %c0_63 = arith.constant 0 : index
      %107 = vector.load %arg17[%106, %c0_63] : memref<16x16xf32, #tpu.memory_space<vmem>>, vector<8x16xf32>
      %108 = arith.index_cast %101 : i32 to index
      %c0_64 = arith.constant 0 : index
      %109 = vector.load %arg18[%108, %c0_64] : memref<16x16xf32, #tpu.memory_space<vmem>>, vector<8x16xf32>
      %110 = arith.index_cast %101 : i32 to index
      %c0_65 = arith.constant 0 : index
      %111 = vector.load %arg19[%110, %c0_65] : memref<16x16xf32, #tpu.memory_space<vmem>>, vector<8x16xf32>
      %112 = vector.shape_cast %103 : vector<8x16xf32> to vector<8x1x16xf32>
      %113 = vector.shape_cast %84 : vector<16x16xf32> to vector<1x16x16xf32>
      %114 = vector.broadcast %112 : vector<8x1x16xf32> to vector<8x16x16xf32>
      %115 = vector.broadcast %113 : vector<1x16x16xf32> to vector<8x16x16xf32>
      %116 = arith.mulf %114, %115 : vector<8x16x16xf32>
      %117 = math.exp %116 : vector<8x16x16xf32>
      %118 = arith.mulf %103, %105 : vector<8x16xf32>
      %119 = vector.shape_cast %118 : vector<8x16xf32> to vector<8x1x16xf32>
      %120 = vector.shape_cast %109 : vector<8x16xf32> to vector<8x16x1xf32>
      %121 = vector.broadcast %119 : vector<8x1x16xf32> to vector<8x16x16xf32>
      %122 = vector.broadcast %120 : vector<8x16x1xf32> to vector<8x16x16xf32>
      %123 = arith.mulf %121, %122 : vector<8x16x16xf32>
      %124 = vector.shape_cast %111 : vector<8x16xf32> to vector<8x16x1xf32>
      %125 = vector.extract_strided_slice %117 {offsets = [0, 0, 0], sizes = [1, 16, 16], strides = [1, 1, 1]} : vector<8x16x16xf32> to vector<1x16x16xf32>
      %126 = vector.shape_cast %125 : vector<1x16x16xf32> to vector<16x16xf32>
      %127 = arith.mulf %126, %arg24 : vector<16x16xf32>
      %128 = vector.extract_strided_slice %123 {offsets = [0, 0, 0], sizes = [1, 16, 16], strides = [1, 1, 1]} : vector<8x16x16xf32> to vector<1x16x16xf32>
      %129 = vector.shape_cast %128 : vector<1x16x16xf32> to vector<16x16xf32>
      %130 = arith.addf %127, %129 : vector<16x16xf32>
      %131 = vector.extract_strided_slice %124 {offsets = [0, 0, 0], sizes = [1, 16, 1], strides = [1, 1, 1]} : vector<8x16x1xf32> to vector<1x16x1xf32>
      %132 = vector.shape_cast %131 : vector<1x16x1xf32> to vector<16x1xf32>
      %133 = vector.broadcast %132 : vector<16x1xf32> to vector<16x16xf32>
      %134 = arith.mulf %130, %133 : vector<16x16xf32>
      %cst_66 = arith.constant dense<0.000000e+00> : vector<16xf32>
      %135 = vector.multi_reduction <add>, %134, %cst_66 [0] : vector<16x16xf32> to vector<16xf32>
      %136 = vector.shape_cast %135 : vector<16xf32> to vector<1x16xf32>
      %137 = vector.extract_strided_slice %117 {offsets = [1, 0, 0], sizes = [1, 16, 16], strides = [1, 1, 1]} : vector<8x16x16xf32> to vector<1x16x16xf32>
      %138 = vector.shape_cast %137 : vector<1x16x16xf32> to vector<16x16xf32>
      %139 = arith.mulf %138, %130 : vector<16x16xf32>
      %140 = vector.extract_strided_slice %123 {offsets = [1, 0, 0], sizes = [1, 16, 16], strides = [1, 1, 1]} : vector<8x16x16xf32> to vector<1x16x16xf32>
      %141 = vector.shape_cast %140 : vector<1x16x16xf32> to vector<16x16xf32>
      %142 = arith.addf %139, %141 : vector<16x16xf32>
      %143 = vector.extract_strided_slice %124 {offsets = [1, 0, 0], sizes = [1, 16, 1], strides = [1, 1, 1]} : vector<8x16x1xf32> to vector<1x16x1xf32>
      %144 = vector.shape_cast %143 : vector<1x16x1xf32> to vector<16x1xf32>
      %145 = vector.broadcast %144 : vector<16x1xf32> to vector<16x16xf32>
      %146 = arith.mulf %142, %145 : vector<16x16xf32>
      %cst_67 = arith.constant dense<0.000000e+00> : vector<16xf32>
      %147 = vector.multi_reduction <add>, %146, %cst_67 [0] : vector<16x16xf32> to vector<16xf32>
      %148 = vector.shape_cast %147 : vector<16xf32> to vector<1x16xf32>
      %149 = vector.extract_strided_slice %117 {offsets = [2, 0, 0], sizes = [1, 16, 16], strides = [1, 1, 1]} : vector<8x16x16xf32> to vector<1x16x16xf32>
      %150 = vector.shape_cast %149 : vector<1x16x16xf32> to vector<16x16xf32>
      %151 = arith.mulf %150, %142 : vector<16x16xf32>
      %152 = vector.extract_strided_slice %123 {offsets = [2, 0, 0], sizes = [1, 16, 16], strides = [1, 1, 1]} : vector<8x16x16xf32> to vector<1x16x16xf32>
      %153 = vector.shape_cast %152 : vector<1x16x16xf32> to vector<16x16xf32>
      %154 = arith.addf %151, %153 : vector<16x16xf32>
      %155 = vector.extract_strided_slice %124 {offsets = [2, 0, 0], sizes = [1, 16, 1], strides = [1, 1, 1]} : vector<8x16x1xf32> to vector<1x16x1xf32>
      %156 = vector.shape_cast %155 : vector<1x16x1xf32> to vector<16x1xf32>
      %157 = vector.broadcast %156 : vector<16x1xf32> to vector<16x16xf32>
      %158 = arith.mulf %154, %157 : vector<16x16xf32>
      %cst_68 = arith.constant dense<0.000000e+00> : vector<16xf32>
      %159 = vector.multi_reduction <add>, %158, %cst_68 [0] : vector<16x16xf32> to vector<16xf32>
      %160 = vector.shape_cast %159 : vector<16xf32> to vector<1x16xf32>
      %161 = vector.extract_strided_slice %117 {offsets = [3, 0, 0], sizes = [1, 16, 16], strides = [1, 1, 1]} : vector<8x16x16xf32> to vector<1x16x16xf32>
      %162 = vector.shape_cast %161 : vector<1x16x16xf32> to vector<16x16xf32>
      %163 = arith.mulf %162, %154 : vector<16x16xf32>
      %164 = vector.extract_strided_slice %123 {offsets = [3, 0, 0], sizes = [1, 16, 16], strides = [1, 1, 1]} : vector<8x16x16xf32> to vector<1x16x16xf32>
      %165 = vector.shape_cast %164 : vector<1x16x16xf32> to vector<16x16xf32>
      %166 = arith.addf %163, %165 : vector<16x16xf32>
      %167 = vector.extract_strided_slice %124 {offsets = [3, 0, 0], sizes = [1, 16, 1], strides = [1, 1, 1]} : vector<8x16x1xf32> to vector<1x16x1xf32>
      %168 = vector.shape_cast %167 : vector<1x16x1xf32> to vector<16x1xf32>
      %169 = vector.broadcast %168 : vector<16x1xf32> to vector<16x16xf32>
      %170 = arith.mulf %166, %169 : vector<16x16xf32>
      %cst_69 = arith.constant dense<0.000000e+00> : vector<16xf32>
      %171 = vector.multi_reduction <add>, %170, %cst_69 [0] : vector<16x16xf32> to vector<16xf32>
      %172 = vector.shape_cast %171 : vector<16xf32> to vector<1x16xf32>
      %173 = vector.extract_strided_slice %117 {offsets = [4, 0, 0], sizes = [1, 16, 16], strides = [1, 1, 1]} : vector<8x16x16xf32> to vector<1x16x16xf32>
      %174 = vector.shape_cast %173 : vector<1x16x16xf32> to vector<16x16xf32>
      %175 = arith.mulf %174, %166 : vector<16x16xf32>
      %176 = vector.extract_strided_slice %123 {offsets = [4, 0, 0], sizes = [1, 16, 16], strides = [1, 1, 1]} : vector<8x16x16xf32> to vector<1x16x16xf32>
      %177 = vector.shape_cast %176 : vector<1x16x16xf32> to vector<16x16xf32>
      %178 = arith.addf %175, %177 : vector<16x16xf32>
      %179 = vector.extract_strided_slice %124 {offsets = [4, 0, 0], sizes = [1, 16, 1], strides = [1, 1, 1]} : vector<8x16x1xf32> to vector<1x16x1xf32>
      %180 = vector.shape_cast %179 : vector<1x16x1xf32> to vector<16x1xf32>
      %181 = vector.broadcast %180 : vector<16x1xf32> to vector<16x16xf32>
      %182 = arith.mulf %178, %181 : vector<16x16xf32>
      %cst_70 = arith.constant dense<0.000000e+00> : vector<16xf32>
      %183 = vector.multi_reduction <add>, %182, %cst_70 [0] : vector<16x16xf32> to vector<16xf32>
      %184 = vector.shape_cast %183 : vector<16xf32> to vector<1x16xf32>
      %185 = vector.extract_strided_slice %117 {offsets = [5, 0, 0], sizes = [1, 16, 16], strides = [1, 1, 1]} : vector<8x16x16xf32> to vector<1x16x16xf32>
      %186 = vector.shape_cast %185 : vector<1x16x16xf32> to vector<16x16xf32>
      %187 = arith.mulf %186, %178 : vector<16x16xf32>
      %188 = vector.extract_strided_slice %123 {offsets = [5, 0, 0], sizes = [1, 16, 16], strides = [1, 1, 1]} : vector<8x16x16xf32> to vector<1x16x16xf32>
      %189 = vector.shape_cast %188 : vector<1x16x16xf32> to vector<16x16xf32>
      %190 = arith.addf %187, %189 : vector<16x16xf32>
      %191 = vector.extract_strided_slice %124 {offsets = [5, 0, 0], sizes = [1, 16, 1], strides = [1, 1, 1]} : vector<8x16x1xf32> to vector<1x16x1xf32>
      %192 = vector.shape_cast %191 : vector<1x16x1xf32> to vector<16x1xf32>
      %193 = vector.broadcast %192 : vector<16x1xf32> to vector<16x16xf32>
      %194 = arith.mulf %190, %193 : vector<16x16xf32>
      %cst_71 = arith.constant dense<0.000000e+00> : vector<16xf32>
      %195 = vector.multi_reduction <add>, %194, %cst_71 [0] : vector<16x16xf32> to vector<16xf32>
      %196 = vector.shape_cast %195 : vector<16xf32> to vector<1x16xf32>
      %197 = vector.extract_strided_slice %117 {offsets = [6, 0, 0], sizes = [1, 16, 16], strides = [1, 1, 1]} : vector<8x16x16xf32> to vector<1x16x16xf32>
      %198 = vector.shape_cast %197 : vector<1x16x16xf32> to vector<16x16xf32>
      %199 = arith.mulf %198, %190 : vector<16x16xf32>
      %200 = vector.extract_strided_slice %123 {offsets = [6, 0, 0], sizes = [1, 16, 16], strides = [1, 1, 1]} : vector<8x16x16xf32> to vector<1x16x16xf32>
      %201 = vector.shape_cast %200 : vector<1x16x16xf32> to vector<16x16xf32>
      %202 = arith.addf %199, %201 : vector<16x16xf32>
      %203 = vector.extract_strided_slice %124 {offsets = [6, 0, 0], sizes = [1, 16, 1], strides = [1, 1, 1]} : vector<8x16x1xf32> to vector<1x16x1xf32>
      %204 = vector.shape_cast %203 : vector<1x16x1xf32> to vector<16x1xf32>
      %205 = vector.broadcast %204 : vector<16x1xf32> to vector<16x16xf32>
      %206 = arith.mulf %202, %205 : vector<16x16xf32>
      %cst_72 = arith.constant dense<0.000000e+00> : vector<16xf32>
      %207 = vector.multi_reduction <add>, %206, %cst_72 [0] : vector<16x16xf32> to vector<16xf32>
      %208 = vector.shape_cast %207 : vector<16xf32> to vector<1x16xf32>
      %209 = vector.extract_strided_slice %117 {offsets = [7, 0, 0], sizes = [1, 16, 16], strides = [1, 1, 1]} : vector<8x16x16xf32> to vector<1x16x16xf32>
      %210 = vector.shape_cast %209 : vector<1x16x16xf32> to vector<16x16xf32>
      %211 = arith.mulf %210, %202 : vector<16x16xf32>
      %212 = vector.extract_strided_slice %123 {offsets = [7, 0, 0], sizes = [1, 16, 16], strides = [1, 1, 1]} : vector<8x16x16xf32> to vector<1x16x16xf32>
      %213 = vector.shape_cast %212 : vector<1x16x16xf32> to vector<16x16xf32>
      %214 = arith.addf %211, %213 : vector<16x16xf32>
      %215 = vector.extract_strided_slice %124 {offsets = [7, 0, 0], sizes = [1, 16, 1], strides = [1, 1, 1]} : vector<8x16x1xf32> to vector<1x16x1xf32>
      %216 = vector.shape_cast %215 : vector<1x16x1xf32> to vector<16x1xf32>
      %217 = vector.broadcast %216 : vector<16x1xf32> to vector<16x16xf32>
      %218 = arith.mulf %214, %217 : vector<16x16xf32>
      %cst_73 = arith.constant dense<0.000000e+00> : vector<16xf32>
      %219 = vector.multi_reduction <add>, %218, %cst_73 [0] : vector<16x16xf32> to vector<16xf32>
      %220 = vector.shape_cast %219 : vector<16xf32> to vector<1x16xf32>
      %221 = tpu.concatenate %136, %148, %160, %172, %184, %196, %208, %220 in 0 : vector<1x16xf32>, vector<1x16xf32>, vector<1x16xf32>, vector<1x16xf32>, vector<1x16xf32>, vector<1x16xf32>, vector<1x16xf32>, vector<1x16xf32> -> vector<8x16xf32>
      %222 = vector.broadcast %85 : vector<1x16xf32> to vector<8x16xf32>
      %223 = arith.mulf %105, %222 : vector<8x16xf32>
      %224 = arith.addf %221, %223 : vector<8x16xf32>
      %225 = arith.mulf %224, %107 : vector<8x16xf32>
      %226 = arith.index_cast %101 : i32 to index
      %c0_74 = arith.constant 0 : index
      %227 = vector.load %arg20[%226, %c0_74] : memref<16x16xf32, #tpu.memory_space<vmem>>, vector<8x16xf32>
      tpu.vector_store %arg20[%226, %c0_74], %225 {strides = array<i32>} : memref<16x16xf32, #tpu.memory_space<vmem>>, vector<8x16xf32>,
      scf.yield %214 : vector<16x16xf32>
    }
    %c2_i32_48 = arith.constant 2 : i32
    %c0_49 = arith.constant 0 : index
    %c0_50 = arith.constant 0 : index
    %89 = vector.load %arg21[%c0_49, %c0_50] : memref<16x16xf32, #tpu.memory_space<vmem>>, vector<16x16xf32>
    tpu.vector_store %arg21[%c0_49, %c0_50], %88 {strides = array<i32>} : memref<16x16xf32, #tpu.memory_space<vmem>>, vector<16x16xf32>,
    %c0_51 = arith.constant 0 : index
    %c0_52 = arith.constant 0 : index
    %90 = vector.load %arg20[%c0_51, %c0_52] : memref<16x16xf32, #tpu.memory_space<vmem>>, vector<16x16xf32>
    %c0_53 = arith.constant 0 : index
    %c0_54 = arith.constant 0 : index
    %91 = vector.load %arg12[%c0_53, %c0_54] : memref<16x32xf32, #tpu.memory_space<vmem>>, vector<16x32xf32>
    %cst_55 = arith.constant dense<0.000000e+00> : vector<16x32xf32>
    %92 = tpu.matmul %90, %91, %cst_55 {dimension_numbers = #tpu.dot_dimension_numbers<[1], [0], [0], [1], [0, 0, 1, 1], [], []>} : vector<16x16xf32>, vector<16x32xf32>, vector<16x32xf32> -> vector<16x32xf32>
    %c0_56 = arith.constant 0 : index
    %c0_57 = arith.constant 0 : index
    %93 = vector.load %arg13[%c0_56, %c0_57] : memref<1x32xf32, #tpu.memory_space<vmem>>, vector<1x32xf32>
    %94 = vector.broadcast %93 : vector<1x32xf32> to vector<16x32xf32>
    %95 = arith.addf %92, %94 : vector<16x32xf32>
    %96 = arith.addf %95, %17 : vector<16x32xf32>
    %c0_58 = arith.constant 0 : index
    %c0_59 = arith.constant 0 : index
    %c0_60 = arith.constant 0 : index
    %97 = vector.load %arg14[%c0_58, %c0_59, %c0_60] : memref<1x16x32xf32, #tpu.memory_space<vmem>>, vector<1x16x32xf32>
    %98 = vector.shape_cast %97 : vector<1x16x32xf32> to vector<16x32xf32>
    %99 = vector.shape_cast %96 : vector<16x32xf32> to vector<1x16x32xf32>
    tpu.vector_store %arg14[%c0_58, %c0_59, %c0_60], %99 {strides = array<i32>} : memref<1x16x32xf32, #tpu.memory_space<vmem>>, vector<1x16x32xf32>,
    return
  }
  func.func @transform_0(%arg0: i32, %arg1: i32) -> (i32, i32, i32) {
    %c0_i32 = arith.constant 0 : i32
    %c0_i32_0 = arith.constant 0 : i32
    return %arg0, %arg1, %c0_i32 : i32, i32, i32
  }
  func.func @transform_1(%arg0: i32, %arg1: i32) -> (i32, i32) {
    %c0_i32 = arith.constant 0 : i32
    %c0_i32_0 = arith.constant 0 : i32
    %c0_i32_1 = arith.constant 0 : i32
    return %c0_i32, %c0_i32_0 : i32, i32
  }
  func.func @transform_2(%arg0: i32, %arg1: i32) -> (i32, i32) {
    %c0_i32 = arith.constant 0 : i32
    %c0_i32_0 = arith.constant 0 : i32
    %c0_i32_1 = arith.constant 0 : i32
    return %c0_i32, %c0_i32_0 : i32, i32
  }
  func.func @transform_3(%arg0: i32, %arg1: i32) -> (i32, i32) {
    %c0_i32 = arith.constant 0 : i32
    %c0_i32_0 = arith.constant 0 : i32
    %c0_i32_1 = arith.constant 0 : i32
    return %c0_i32, %c0_i32_0 : i32, i32
  }
  func.func @transform_4(%arg0: i32, %arg1: i32) -> (i32, i32) {
    %c0_i32 = arith.constant 0 : i32
    %c0_i32_0 = arith.constant 0 : i32
    %c0_i32_1 = arith.constant 0 : i32
    return %c0_i32, %c0_i32_0 : i32, i32
  }
  func.func @transform_5(%arg0: i32, %arg1: i32) -> (i32, i32) {
    %c0_i32 = arith.constant 0 : i32
    %c0_i32_0 = arith.constant 0 : i32
    %c0_i32_1 = arith.constant 0 : i32
    return %c0_i32, %c0_i32_0 : i32, i32
  }
  func.func @transform_6(%arg0: i32, %arg1: i32) -> (i32, i32) {
    %c0_i32 = arith.constant 0 : i32
    %c0_i32_0 = arith.constant 0 : i32
    %c0_i32_1 = arith.constant 0 : i32
    return %c0_i32, %c0_i32_0 : i32, i32
  }
  func.func @transform_7(%arg0: i32, %arg1: i32) -> (i32, i32) {
    %c0_i32 = arith.constant 0 : i32
    %c0_i32_0 = arith.constant 0 : i32
    %c0_i32_1 = arith.constant 0 : i32
    return %c0_i32, %c0_i32_0 : i32, i32
  }
  func.func @transform_8(%arg0: i32, %arg1: i32) -> (i32, i32) {
    %c0_i32 = arith.constant 0 : i32
    %c0_i32_0 = arith.constant 0 : i32
    %c0_i32_1 = arith.constant 0 : i32
    return %c0_i32, %c0_i32_0 : i32, i32
  }
  func.func @transform_9(%arg0: i32, %arg1: i32) -> (i32, i32) {
    %c0_i32 = arith.constant 0 : i32
    %c0_i32_0 = arith.constant 0 : i32
    %c0_i32_1 = arith.constant 0 : i32
    return %c0_i32, %c0_i32_0 : i32, i32
  }
  func.func @transform_10(%arg0: i32, %arg1: i32) -> (i32, i32) {
    %c0_i32 = arith.constant 0 : i32
    %c0_i32_0 = arith.constant 0 : i32
    %c0_i32_1 = arith.constant 0 : i32
    return %c0_i32, %c0_i32_0 : i32, i32
  }
  func.func @transform_11(%arg0: i32, %arg1: i32) -> (i32, i32) {
    %c0_i32 = arith.constant 0 : i32
    %c0_i32_0 = arith.constant 0 : i32
    %c0_i32_1 = arith.constant 0 : i32
    return %c0_i32, %c0_i32_0 : i32, i32
  }
  func.func @transform_12(%arg0: i32, %arg1: i32) -> (i32, i32, i32) {
    %c0_i32 = arith.constant 0 : i32
    %c0_i32_0 = arith.constant 0 : i32
    return %arg0, %arg1, %c0_i32 : i32, i32, i32
  }
}

</mosaic_0001>

<bundles_post_ra>
// kernel: tpu_custom_call.1
= control target key start
LH: loop header
LB: loop body
LE: loop exit
PB: predicated region body
PF: predicated region fallthrough
CT: control target
= control target key end

     0   :  { %s3147_s0 = inlined_call_operand.hbm [shape: f32[2,32,32], index: 0, kind: input, shape index: {}]   ;;  %s3148_s1 = inlined_call_operand.vmem [shape: f32[1,32], index: 1, kind: input, shape index: {}]   ;;  %s3149_s2 = inlined_call_operand.hbm [shape: f32[32,32], index: 2, kind: input, shape index: {}]   ;;  %s3150_s3 = inlined_call_operand.vmem [shape: f32[1,32], index: 3, kind: input, shape index: {}]   ;;  %s3151_s4 = inlined_call_operand.hbm [shape: f32[4,16], index: 4, kind: input, shape index: {}]   ;;  %s3152_s5 = inlined_call_operand.hbm [shape: f32[1,16], index: 5, kind: input, shape index: {}]   ;;  %s3153_s6 = inlined_call_operand.vmem [shape: f32[16,48], index: 6, kind: input, shape index: {}]   ;;  %s3154_s7 = inlined_call_operand.hbm [shape: f32[1,16], index: 7, kind: input, shape index: {}]   ;;  %s3155_s8 = inlined_call_operand.hbm [shape: f32[16,16], index: 8, kind: input, shape index: {}]   ;;  %s3156_s9 = inlined_call_operand.hbm [shape: f32[1,16], index: 9, kind: input, shape index: {}]   ;;  %s3157_s10 = inlined_call_operand.vmem [shape: f32[16,32], index: 10, kind: input, shape index: {}]   ;;  %s3158_s11 = inlined_call_operand.vmem [shape: f32[1,32], index: 11, kind: input, shape index: {}]   ;;  %s3159_s12 = inlined_call_operand.hbm [shape: f32[2,32,32], index: 12, kind: output, shape index: {}]  }
   0x1   :  { %3170 = sst [smem:[#allocation30_spill]] %s3148_s1 }
   0x2   :  { %3171 = sst [smem:[#allocation31_spill]] %s3149_s2 }
   0x3   :  { %3172 = sst [smem:[#allocation32_spill]] %s3150_s3 }
   0x4   :  { %3173 = sst [smem:[#allocation33_spill]] %s3151_s4 }
   0x5   :  { %3174 = sst [smem:[#allocation34_spill]] %s3152_s5 }
   0x6   :  { %3175 = sst [smem:[#allocation35_spill]] %s3153_s6 }
   0x7   :  { %3176 = sst [smem:[#allocation36_spill]] %s3154_s7 }
   0x8   :  { %3177 = sst [smem:[#allocation37_spill]] %s3157_s10 }
   0x9   :  { %3178 = sst [smem:[#allocation38_spill]] %s3158_s11 }
   0xa   :  { %3179 = sst [smem:[#allocation39_spill]] %s3159_s12 }
   0xb   :  { %17 = vsyncpa [#allocation11], 0 }
   0xc   :  { %19 = vsyncpa [#allocation11 + $0x1], 0 }
   0xd   :  { %20 = vsyncpa [#allocation14], 0 }
   0xe   :  { %21 = vsyncpa [#allocation17], 0 }
   0xf   :  { %22 = vsyncpa [#allocation20], 0 }
  0x10   :  { %23 = vsyncpa [#allocation12], 0 }
  0x11   :  { %25 = vsyncpa [#allocation12 + $0x1], 0  ;;  %s2511_s21 = smov 0   ;;  %s2513_s22 = smov 0  }
  0x12   :  { %s2515_s23 = smov 0   ;;  %s2517_s24 = smov 0  }
  0x13   :  { %s2519_s25 = smov 0   ;;  %s2521_s26 = smov 0  }
  0x14   :  { %s2523_s27 = smov 0   ;;  %s2525_s28 = smov 0  }
  0x15 LB: > { %3180 = sst [smem:[#allocation28_spill]] %s2400_s24  ;;  %s3160_s29 = sadd.s32 4294967295, %s2416_s28   ;;  %s2416_s28 = sphi %s2525_s28, %s31_s28   ;;  %s2412_s27 = sphi %s2523_s27, %s3223_s27   ;;  %s2408_s26 = sphi %s2521_s26, %s3222_s26   ;;  %s2404_s25 = sphi %s2519_s25, %s3221_s25   ;;  %s2400_s24 = sphi %s2517_s24, %s3220_s24   ;;  %s2396_s23 = sphi %s2515_s23, %s3219_s23   ;;  %s2392_s22 = sphi %s2513_s22, %s3218_s22   ;;  %s2388_s21 = sphi %s2511_s21, %s3217_s21  }
  0x16   : > { %3181 = sst [smem:[#allocation29_spill]] %s2404_s25  ;;  %p1772_p0 = scmp.ge.s32.totalorder %s2416_s28, 1 }
  0x17   : > { %p2555_p1 = scmp.eq.s32.totalorder %s3160_s29, 0  ;;  %p335_p2 = scmp.lt.s32.totalorder %s2416_s28, 5 }
  0x18   : > { %s2430_s14 = smov [#allocation13]   ;;  %s2431_s17 = smov [#allocation16]  }
  0x19   : > { %s3182_s30 = scalar_select %p2555_p1, 1, 0 }
  0x1a   : > { %p2560_p3 = pnand %p1772_p0, %p335_p2  ;;  %s350_s15 = sshll.u32 %s2430_s14, 4  ;;  %s2564_s15 = int_to_ptr.vmem [resolvable:$true] %s350_s15 }
  0x1b   : > { %s378_s18 = sshll.u32 %s2431_s17, 4  ;;  %s2432_s19 = smov [#allocation19]   ;;  %s2574_s18 = int_to_ptr.vmem [resolvable:$true] %s378_s18 }
  0x1c   : > { %s3183_s13 = scalar_select %p2560_p3, 1, 0 }
  0x1d   : > { %p1896_p4 = pneg %p2560_p3  ;;  %s2576_s20 = sshll.u32 %s2432_s19, 4  ;;  %s403_s20 = int_to_ptr.vmem [resolvable:$true] %s2576_s20 }
  0x1e   : > { %s3185_s2 = sld [smem:[#allocation31_spill]] }
  0x1f   : > { %p2570_p5 = pnand %p1896_p4, %p2555_p1 }
  0x21   : > { %p2586_p7 = pneg %p2570_p5 }
  0x24   : > { %s2096_s14 = scalar_lea.hbm %s3185_s2, 512 }
  0x25   : > { %p2097_p6 = scmp.ne.s32.totalorder %s3185_s2, %s2096_s14  ;;  %p2103_p10 = scmp.lt.u32.totalorder %s2096_s14, %s3185_s2 }
  0x27   : > { %p2099_p8 = pnand %p2586_p7, %p2097_p6 }
  0x29   : > { %p2100_p9 = pneg %p2099_p8 }
  0x2b   : > { %p2105_p11 = pnand %p2103_p10, %p2100_p9 }
  0x2d   : > { %2108 = shalt.err (!%p2105_p11)
}
  0x2e   : > { %s2109_s10 = scalar_lea.vmem %s2564_s15, 512  ;;  %p2117_p2 = scmp.lt.s32.totalorder %s2564_s15, %s2564_s15 }
  0x2f   : > { %p2110_p12 = scmp.ne.s32.totalorder %s2564_s15, %s2109_s10  ;;  %p2118_p4 = scmp.lt.s32.totalorder %s2109_s10, %s2109_s10 }
  0x31   : > { %p2112_p13 = pnand %p2110_p12, %p2586_p7  ;;  %p2119_p6 = por %p2118_p4, %p2117_p2 }
  0x33   : > { %p2113_p0 = pneg %p2112_p13 }
  0x35   : > { %p2120_p8 = pnand %p2119_p6, %p2113_p0 }
  0x37   : > { %2123 = shalt.err (!%p2120_p8)
}
  0x38   : > { %s3167_s11 = smov 128   ;;  %s3168_s12 = smov 8  }
  0x39   : > { %1899 = dma.hbm_to_vmem [thread:$0]  (!%p2570_p5), %s3185_s2, 512, %s2564_s15, [#allocation14], %s3167_s11, %s3167_s11, %s3168_s12  }
  0x3a   : > { %s3187_s5 = sld [smem:[#allocation34_spill]] }
  0x40   : > { %s2124_s10 = scalar_lea.hbm %s3187_s5, 16 }
  0x41   : > { %p2125_p9 = scmp.ne.s32.totalorder %s3187_s5, %s2124_s10  ;;  %p2131_p12 = scmp.lt.u32.totalorder %s2124_s10, %s3187_s5 }
  0x43   : > { %p2127_p10 = pnand %p2125_p9, %p2586_p7 }
  0x45   : > { %p2128_p11 = pneg %p2127_p10 }
  0x47   : > { %p2133_p13 = pnand %p2131_p12, %p2128_p11 }
  0x49   : > { %2136 = shalt.err (!%p2133_p13)
}
  0x4a   : > { %s2137_s15 = scalar_lea.vmem %s2574_s18, 16  ;;  %s2144_s3 = scalar_lea.vmem %s2574_s18, 32 }
  0x4b   : > { %p2138_p0 = scmp.ne.s32.totalorder %s2574_s18, %s2137_s15  ;;  %p2145_p6 = scmp.lt.s32.totalorder %s2574_s18, %s2574_s18 }
  0x4c   : > { %p2146_p8 = scmp.lt.s32.totalorder %s2144_s3, %s2137_s15 }
  0x4d   : > { %p2140_p2 = pnand %p2138_p0, %p2586_p7 }
  0x4e   : > { %p2147_p9 = por %p2146_p8, %p2145_p6 }
  0x4f   : > { %p2141_p4 = pneg %p2140_p2 }
  0x51   : > { %p2148_p10 = pnand %p2147_p9, %p2141_p4 }
  0x53   : > { %2151 = shalt.err (!%p2148_p10)
}
  0x54   : > { %1905 = dma.hbm_to_vmem [thread:$0]  (!%p2570_p5), %s3187_s5, 16, %s2574_s18, [#allocation17]  }
  0x55   : > { %s2152_s14 = scalar_lea.hbm %s3155_s8, 256 }
  0x56   : > { %p2153_p11 = scmp.ne.s32.totalorder %s3155_s8, %s2152_s14  ;;  %p2159_p0 = scmp.lt.u32.totalorder %s2152_s14, %s3155_s8 }
  0x58   : > { %p2155_p12 = pnand %p2153_p11, %p2586_p7 }
  0x5a   : > { %p2156_p13 = pneg %p2155_p12 }
  0x5c   : > { %p2161_p2 = pnand %p2159_p0, %p2156_p13 }
  0x5e   : > { %2164 = shalt.err (!%p2161_p2)
}
  0x5f   : > { %s2165_s3 = scalar_lea.vmem %s403_s20, 256  ;;  %p2173_p9 = scmp.lt.s32.totalorder %s403_s20, %s403_s20 }
  0x60   : > { %p2166_p4 = scmp.ne.s32.totalorder %s403_s20, %s2165_s3  ;;  %p2174_p10 = scmp.lt.s32.totalorder %s2165_s3, %s2165_s3 }
  0x62   : > { %p2168_p6 = pnand %p2166_p4, %p2586_p7  ;;  %p2175_p3 = por %p2174_p10, %p2173_p9 }
  0x64   : > { %p2169_p8 = pneg %p2168_p6 }
  0x66   : > { %p2176_p1 = pnand %p2175_p3, %p2169_p8 }
  0x68   : > { %2179 = shalt.err (!%p2176_p1)
}
  0x69   : > { %1911 = dma.hbm_to_vmem [thread:$0]  (!%p2570_p5), %s3155_s8, 256, %s403_s20, [#allocation20], %s3167_s11, %s3167_s11, %s3168_s12  }
  0x6a   : > { %s2435_s6 = smov [#allocation15]   ;;  %s2436_s29 = smov [#allocation18]  }
  0x6b   : > { %s367_s24 = sshll.u32 %s2435_s6, 4  ;;  %s392_s14 = sshll.u32 %s2436_s29, 4  ;;  %s368_s24 = int_to_ptr.vmem [resolvable:$true] %s367_s24  ;;  %s393_s14 = int_to_ptr.vmem [resolvable:$true] %s392_s14 }
  0x6c   : > { %s3188_s4 = sld [smem:[#allocation33_spill]] }
  0x72   : > { %s2180_s10 = scalar_lea.hbm %s3188_s4, 64 }
  0x73   : > { %p2181_p1 = scmp.ne.s32.totalorder %s3188_s4, %s2180_s10  ;;  %p2187_p12 = scmp.lt.u32.totalorder %s2180_s10, %s3188_s4 }
  0x75   : > { %p2183_p3 = pnand %p2181_p1, %p2586_p7 }
  0x77   : > { %p2184_p11 = pneg %p2183_p3 }
  0x79   : > { %p2189_p13 = pnand %p2187_p12, %p2184_p11 }
  0x7b   : > { %2192 = shalt.err (!%p2189_p13)
}
  0x7c   : > { %s2193_s20 = scalar_lea.vmem %s368_s24, 64  ;;  %p2201_p6 = scmp.lt.s32.totalorder %s368_s24, %s368_s24 }
  0x7d   : > { %p2194_p0 = scmp.ne.s32.totalorder %s368_s24, %s2193_s20  ;;  %p2202_p8 = scmp.lt.s32.totalorder %s2193_s20, %s2193_s20 }
  0x7f   : > { %p2196_p2 = pnand %p2194_p0, %p2586_p7  ;;  %p2203_p9 = por %p2202_p8, %p2201_p6 }
  0x81   : > { %p2197_p4 = pneg %p2196_p2 }
  0x83   : > { %p2204_p10 = pnand %p2203_p9, %p2197_p4 }
  0x85   : > { %2207 = shalt.err (!%p2204_p10)
}
  0x86   : > { %1902 = dma.hbm_to_vmem [thread:$0]  (!%p2570_p5), %s3188_s4, 64, %s368_s24, [#allocation14]  }
  0x87   : > { %s3189_s7 = sld [smem:[#allocation36_spill]] }
  0x8d   : > { %s2208_s17 = scalar_lea.hbm %s3189_s7, 16 }
  0x8e   : > { %p2209_p1 = scmp.ne.s32.totalorder %s3189_s7, %s2208_s17  ;;  %p2215_p12 = scmp.lt.u32.totalorder %s2208_s17, %s3189_s7 }
  0x90   : > { %p2211_p3 = pnand %p2209_p1, %p2586_p7 }
  0x92   : > { %p2212_p11 = pneg %p2211_p3 }
  0x94   : > { %p2217_p13 = pnand %p2215_p12, %p2212_p11 }
  0x96   : > { %2220 = shalt.err (!%p2217_p13)
}
  0x97   : > { %s2221_s18 = scalar_lea.vmem %s393_s14, 16  ;;  %s2228_s24 = scalar_lea.vmem %s393_s14, 32 }
  0x98   : > { %p2222_p0 = scmp.ne.s32.totalorder %s393_s14, %s2221_s18  ;;  %p2229_p6 = scmp.lt.s32.totalorder %s393_s14, %s393_s14 }
  0x99   : > { %p2230_p8 = scmp.lt.s32.totalorder %s2228_s24, %s2221_s18 }
  0x9a   : > { %p2224_p2 = pnand %p2222_p0, %p2586_p7 }
  0x9b   : > { %p2231_p9 = por %p2230_p8, %p2229_p6 }
  0x9c   : > { %p2225_p4 = pneg %p2224_p2 }
  0x9e   : > { %p2232_p10 = pnand %p2231_p9, %p2225_p4 }
  0xa0   : > { %2235 = shalt.err (!%p2232_p10)
}
  0xa1   : > { %1908 = dma.hbm_to_vmem [thread:$0]  (!%p2570_p5), %s3189_s7, 16, %s393_s14, [#allocation17]  }
  0xa2   : > { %s2437_s6 = smov [#allocation21]   ;;  %s2236_s19 = scalar_lea.hbm %s3156_s9, 16 }
  0xa3   : > { %s416_s2 = sshll.u32 %s2437_s6, 4  ;;  %p2237_p1 = scmp.ne.s32.totalorder %s3156_s9, %s2236_s19  ;;  %s417_s2 = int_to_ptr.vmem [resolvable:$true] %s416_s2 }
  0xa4   : > { %p2243_p12 = scmp.lt.u32.totalorder %s2236_s19, %s3156_s9 }
  0xa5   : > { %p2239_p3 = pnand %p2237_p1, %p2586_p7 }
  0xa7   : > { %p2240_p11 = pneg %p2239_p3 }
  0xa9   : > { %p2245_p13 = pnand %p2243_p12, %p2240_p11 }
  0xab   : > { %2248 = shalt.err (!%p2245_p13)
}
  0xac   : > { %s2249_s14 = scalar_lea.vmem %s417_s2, 16  ;;  %s2256_s24 = scalar_lea.vmem %s417_s2, 32 }
  0xad   : > { %p2250_p0 = scmp.ne.s32.totalorder %s417_s2, %s2249_s14  ;;  %p2257_p6 = scmp.lt.s32.totalorder %s417_s2, %s417_s2 }
  0xae   : > { %p2258_p8 = scmp.lt.s32.totalorder %s2256_s24, %s2249_s14 }
  0xaf   : > { %p2252_p2 = pnand %p2250_p0, %p2586_p7 }
  0xb0   : > { %p2259_p9 = por %p2258_p8, %p2257_p6 }
  0xb1   : > { %p2253_p4 = pneg %p2252_p2 }
  0xb3   : > { %p2260_p10 = pnand %p2259_p9, %p2253_p4 }
  0xb5   : > { %2263 = shalt.err (!%p2260_p10)
}
  0xb6   : > { %1914 = dma.hbm_to_vmem [thread:$0]  (!%p2570_p5), %s3156_s9, 16, %s417_s2, [#allocation20]  }
  0xb7   : > { %s1771_s25 = sadd.s32 4294967294, %s2416_s28   ;;  %s40_s6 = sadd.s32 1, %s2408_s26 }
  0xb8   : > { %p41_p7 = scmp.ge.s32.totalorder %s40_s6, 2  ;;  %s43_s16 = sadd.s32 1, %s2412_s27 }
  0xb9   : > { %s52_s29 = sadd.s32 1, %s2396_s23  ;;  %p59_p1 = scmp.ne.s32.totalorder %s2396_s23, %s2392_s22 }
  0xba   : > { %s3225_s6 = smov (%p41_p7, %s40_s6), 0  ;;  %s3227_s16 = smov (!%p41_p7, %s43_s16), %s2412_s27 }
  0xbb   : > { %s48_s17 = ssub.s32 %s2408_s26, %s3225_s6  ;;  %p60_p3 = scmp.eq.s32.totalorder %s2416_s28, 0 }
  0xbc   : > { %p45_p11 = scmp.ge.s32.totalorder %s3227_s16, 2  ;;  %p65_p5 = scmp.ne.s32.totalorder %s2392_s22, %s2388_s21 }
  0xbd   : > { %p2724_p12 = por %p60_p3, %p59_p1  ;;  %s3191_s19 = sadd.s32 4294967295, %s2416_s28  }
  0xbe   : > { %p322_p13 = scmp.eq.s32.totalorder %s3191_s19, 3  ;;  %s3229_s16 = smov (%p45_p11, %s3227_s16), 0 }
  0xbf   : > { %p3192_p0 = scmp.ne.s32.totalorder %s3182_s30, 0  ;;  %s47_s3 = ssub.s32 %s2412_s27, %s3229_s16 }
  0xc0   : > { %p2738_p4 = por %p322_p13, %p59_p1  ;;  %p328_p6 = scmp.eq.s32.totalorder %s1771_s25, 3 }
  0xc1   : > { %p2734_p2 = por %p3192_p0, %p65_p5  ;;  %s49_s18 = sor.u32 %s48_s17, %s47_s3 }
  0xc2   : > { %s3194_s15 = scalar_select %p2738_p4, 1, 0 }
  0xc3   : > { %p1929_p8 = scmp.lt.s32.totalorder %s2416_s28, 4  ;;  %p50_p9 = scmp.eq.s32.totalorder %s49_s18, 0 }
  0xc4   : > { %p2745_p10 = por %p328_p6, %p65_p5  ;;  %s433_s24 = sand.u32 1, %s2396_s23  }
  0xc5   : > { %s1781_s20 = sshll.u32 %s2408_s26, 1  ;;  %s1780_s19 = sshll.u32 %s433_s24, 4 }
  0xc6   : > { %s3195_s14 = scalar_select %p2745_p10, 1, 0 }
  0xc7   : > { %s2752_s1 = scalar_select %p50_p9, %s2396_s23, %s52_s29  }
  0xc8   : > { %s1782_s11 = sshll.u32 %s2412_s27, 2  ;;  %s437_s4 = scalar_lea.vmem [#allocation10], %s1780_s19 }
  0xc9   : > { %s443_s12 = sadd.s32 %s1782_s11, %s1781_s20  ;;  %s446_s5 = sshll.u32 %s437_s4, 4  ;;  %s2755_s5 = int_to_ptr.vmem [resolvable:$true] %s446_s5 }
  0xca   : > { %s1783_s7 = sshll.u32 %s443_s12, 7  ;;  %p2766_p7 = pnand %p1929_p8, %p2724_p12 }
  0xcb   : > { %s2760_s3 = scalar_lea.hbm %s3147_s0, %s1783_s7  ;;  %s2770_s4 = scalar_lea.sflag [#allocation11], %s433_s24 }
  0xcc   : > { %s2264_s11 = scalar_lea.hbm %s2760_s3, 256  ;;  %p2266_p3 = pneg %p2766_p7 }
  0xcd   : > { %p2265_p1 = scmp.ne.s32.totalorder %s2760_s3, %s2264_s11  ;;  %s2269_s2 = scalar_lea.hbm %s3147_s0, 1024 }
  0xce   : > { %p2270_p12 = scmp.lt.u32.totalorder %s2760_s3, %s3147_s0  ;;  %p2271_p13 = scmp.lt.u32.totalorder %s2269_s2, %s2264_s11 }
  0xcf   : > { %p2267_p11 = pnand %p2266_p3, %p2265_p1  ;;  %p2273_p6 = scmp.lt.u32.totalorder %s2264_s11, %s2760_s3 }
  0xd0   : > { %p2272_p0 = por %p2271_p13, %p2270_p12 }
  0xd1   : > { %p2268_p5 = pneg %p2267_p11 }
  0xd2   : > { %p2274_p8 = por %p2273_p6, %p2272_p0 }
  0xd4   : > { %p2275_p9 = pnand %p2274_p8, %p2268_p5 }
  0xd6   : > { %2278 = shalt.err (!%p2275_p9)
}
  0xd7   : > { %s2279_s24 = scalar_lea.vmem %s2755_s5, 256  ;;  %s2438_s19 = smov [#allocation10]  }
  0xd8   : > { %p2280_p1 = scmp.ne.s32.totalorder %s2755_s5, %s2279_s24  ;;  %s2284_s25 = sshll.u32 %s2438_s19, 4  ;;  %s2285_s25 = int_to_ptr.vmem [resolvable:$false] %s2284_s25 }
  0xd9   : > { %s2286_s17 = scalar_lea.vmem %s2285_s25, 512  ;;  %p2287_p4 = scmp.lt.s32.totalorder %s2755_s5, %s2285_s25 }
  0xda   : > { %p2282_p11 = pnand %p2280_p1, %p2266_p3  ;;  %p2288_p12 = scmp.lt.s32.totalorder %s2286_s17, %s2279_s24 }
  0xdc   : > { %p2283_p10 = pneg %p2282_p11  ;;  %p2289_p13 = por %p2288_p12, %p2287_p4 }
  0xde   : > { %p2290_p0 = pnand %p2289_p13, %p2283_p10 }
  0xe0   : > { %2293 = shalt.err (!%p2290_p0)
}
  0xe1   : > { %s3197_s11 = smov 8   ;;  %s3198_s7 = smov 128  }
  0xe2   : > { %1918 = dma.hbm_to_vmem [thread:$0]  (!%p2766_p7), %s2760_s3, 256, %s2755_s5, %s2770_s4, %s3198_s7, %s3198_s7, %s3197_s11  }
  0xe3   : > { %p3199_p3 = scmp.ne.s32.totalorder %s3183_s13, 0 }
  0xe4   : > { %s2804_s12 = sand.u32 (!%p3199_p3), 1, %s2392_s22  }
  0xe5   : > { %458 = sbr.rel (%p3199_p3) target bundleno = 1466 (0x5ba), region = 68  ;;  %s1785_s2 = sshll.u32 (!%p3199_p3), %s2804_s12, 4 }
  0xe6   : > { %s461_s18 = scalar_lea.sflag (!%p3199_p3), [#allocation11], %s2804_s12  ;;  %s464_s20 = scalar_lea.vmem (!%p3199_p3), [#allocation10], %s1785_s2 }
  0xec   : > { %2367 = dma.done.wait (%p2734_p2), %s461_s18, 256  }
  0xed   : > { %2369 = vsyncadd (%p2734_p2), %s461_s18, 4294967040  ;;  %p3200_p4 = scmp.ne.s32.totalorder %s3182_s30, 0 }
  0xef   : > { %2371 = dma.done.wait (%p3200_p4), [#allocation14], 576  }
  0xf0   : > { %2373 = vsyncadd (%p3200_p4), [#allocation14], 4294966720 }
  0xf1   : > { %2375 = dma.done.wait (%p3200_p4), [#allocation17], 32  }
  0xf2   : > { %2377 = vsyncadd (%p3200_p4), [#allocation17], 4294967264 }
  0xf3   : > { %2379 = dma.done.wait (%p3200_p4), [#allocation20], 272  }
  0xf4   : > { %2381 = vsyncadd (%p3200_p4), [#allocation20], 4294967024  ;;  %s2824_s5 = scalar_lea.vmem [#allocation22], %s1785_s2  ;;  %s3201_s13 = sld [smem:[#allocation28_spill]] }
  0xfa   : > { %p1793_p2 = scmp.ne.s32.totalorder %s3201_s13, 0 }
  0xfb   : > { %vm535_vm0 = vcmask (!%p1793_p2), 130048   ;;  %v2439_v0 = vmov (!%p1793_p2), 0.0  }
  0xfc   : > { %534 = sbr.rel (%p1793_p2) target bundleno = 259 (0x103), region = 100  ;;  %536 = vst.msk [vmem:[#allocation8] sm:$0xff] (!%p1793_p2), %vm535_vm0, %v2439_v0  ;;  %537 = vst.msk [vmem:[#allocation8 + $0x8] sm:$0xff] (!%p1793_p2), %vm535_vm0, %v2439_v0 }
  0xfd   : > { %538 = vst.msk [vmem:[#allocation9] sm:$0xff] (!%p1793_p2), %vm535_vm0, %v2439_v0 }
 0x103 PF: > { %v539_v1 = vld [vmem:[%s464_s20] sm:$0xff]  ;;  %vm544_vm1 = vcmask 261120   ;;  %v540_v2 = vld [vmem:[%s464_s20 + $0x8] sm:$0xff]  ;;  %s3202_s3 = sld [smem:[#allocation30_spill]]  ;;  %s3203_s24 = sld [smem:[#allocation35_spill]]  ;;  %v674_v29 = vlaneseq  ;;  %vm668_vm2 = vcmask 130048  }
 0x104   : > { %v542_v3 = vmul.f32 %v539_v1, %v539_v1  ;;  %v543_v4 = vmul.f32 %v540_v2, %v540_v2  ;;  %v568_v7 = vld [vmem:[#allocation13] sm:$0xff]  ;;  %v569_v8 = vld [vmem:[#allocation13 + $0x8] sm:$0xff]  ;;  %v570_v9 = vld [vmem:[#allocation13 + $0x10] sm:$0xff]  ;;  %s3205_s2 = sld [smem:[#allocation32_spill]]  ;;  %s2440_s18 = smov 112   ;;  %vm690_vm3 = vcmask 1042432  }
 0x105   : > { %v1852_v10 = vpack.c.bf16 %v569_v8, %v568_v7  ;;  %v571_v11 = vld [vmem:[#allocation13 + $0x18] sm:$0xff]  ;;  %v2846_v30 = vshrl.u32 %v674_v29, 7  ;;  %v673_v32 = vld [vmem:[#allocation15] sm:$0xf]  ;;  %vm710_vm4 = vcmask 1041408   ;;  %vm730_vm5 = vcmask 1040384  }
 0x106   : > { %v545_v5 = vsel %vm544_vm1, %v542_v3, 0.0  ;;  %v548_v6 = vsel %vm544_vm1, %v543_v4, 0.0  ;;  %v1856_v12 = vpack.c.bf16 %v571_v11, %v570_v9  ;;  %v671_v37 = vld [vmem:[#allocation9] sm:$0xff]  ;;  %s2441_s20 = smov 96   ;;  %s2900_s13 = smov 0  }
 0x107   : > { %546 = vadd.xlane.f32.xlu0 %v545_v5  ;;  %1853 = vmatprep.subr.bf16.mxu0 %v1852_v10  ;;  %v2849_v31 = vsub.s32 0, %v2846_v30  ;;  %v2852_v33 = vsub.s32 1, %v2846_v30  ;;  %v2856_v35 = vsub.s32 2, %v2846_v30  ;;  %v2863_v39 = vsub.s32 3, %v2846_v30 }
 0x108   : > { %1855 = vmatpush3.bf16.msra.mxu0 %v1852_v10 }
 0x109   : > { %1857 = vmatprep.subr.bf16.mxu0 %v1856_v12  ;;  %v1794_v20 = vld [vmem:[%s3202_s3] ss:$0 sm:$0xff]  ;;  %s3204_s19 = smov %s3203_s24  ;;  %v683_v34 = vrot.slane %v673_v32, %v2849_v31  ;;  %v703_v36 = vrot.slane %v673_v32, %v2852_v33  ;;  %v723_v41 = vrot.slane %v673_v32, %v2856_v35  ;;  %v677_v47 = vrot.slane %v673_v32, %v2863_v39 }
 0x10a   : > { %v763_v26 = vld [vmem:[%s3203_s24] sm:$0xff]  ;;  %v764_v27 = vld [vmem:[%s3204_s19 + $0x8] sm:$0xff] }
 0x10b   : > { %549 = vadd.xlane.f32.xlu0 %v548_v6  ;;  %v1860_v28 = vpack.c.bf16 %v764_v27, %v763_v26  ;;  %v1795_v38 = vld [vmem:[%s3205_s2] ss:$0 sm:$0xff]  ;;  %v684_v40 = vmul.f32 %v683_v34, %v671_v37  ;;  %v704_v42 = vmul.f32 %v703_v36, %v671_v37  ;;  %v724_v49 = vmul.f32 %v723_v41, %v671_v37 }
 0x10c   : > { %1859 = vmatpush3.bf16.msra.mxu0 %v1856_v12  ;;  %v1798_v12 = vld [vmem:[#allocation16] ss:$0 sm:$0xff]  ;;  %v893_v37 = vld [vmem:[#allocation19] sm:$0xff] }
 0x10d   : > { %1861 = vmatprep.subr.bf16.mxu1 %v1860_v28  ;;  %v691_v48 = vrot.slane %v684_v40, 5  ;;  %v711_v52 = vrot.slane %v704_v42, 6  ;;  %v731_v4 = vrot.slane %v724_v49, 7  ;;  %v895_v40 = vmul.f32 1.442695, %v893_v37 }
 0x10e   : > { %1863 = vmatpush3.bf16.msra.mxu1 %v1860_v28 }
 0x194   : > { %v547_v13 = vpop.xlane.xlu0 %546 }
 0x195   : > { %v552_v14 = vmul.f32 0.03125, %v547_v13 }
 0x197   : > { %v554_v15 = vadd.f32 1e-06, %v552_v14 }
 0x198   : > { %v550_v16 = vpop.xlane.xlu0 %549 }
 0x199   : > { %2039 = vrsqrt.f32 %v554_v15  ;;  %v553_v17 = vmul.f32 0.03125, %v550_v16 }
 0x19b   : > { %v555_v18 = vadd.f32 1e-06, %v553_v17 }
 0x19d   : > { %2041 = vrsqrt.f32 %v555_v18 }
 0x1a3   : > { %v2040_v19 = vpop.eup %2039 }
 0x1a4   : > { %v558_v21 = vmul.f32 %v2040_v19, %v539_v1 }
 0x1a6   : > { %v2832_v22 = vmul.f32 %v1794_v20, %v558_v21 }
 0x1a7   : > { %v2042_v23 = vpop.eup %2041 }
 0x1a8   : > { %v559_v24 = vmul.f32 %v2042_v23, %v540_v2  ;;  %1835 = vmatprep.mubr.msk.f32.mxu0 %vm544_vm1, %v2832_v22 }
 0x1aa   : > { %v2836_v25 = vmul.f32 %v1794_v20, %v559_v24 }
 0x1ac   : > { %1836 = vmatmul.mubr.msk.f32.vlgmr.msra.gmra.mrb[0].mxu0 %vm544_vm1, %v2836_v25 }
 0x27f   : > { %v1837_v43 = vpop.f32.mrb[0].mxu0 }
 0x280   : > { %v657_v44 = vadd.f32 %v1837_v43, %v1795_v38  ;;  %v651_v45 = vpop.f32.mrb[1].mxu0  ;;  %v2882_v43 = vld [vmem:[#allocation21] ss:$0 sm:$0xff] }
 0x281   : > { %v652_v46 = vadd.f32 %v1795_v38, %v651_v45  ;;  %v894_v38 = vld [vmem:[#allocation19 + $0x8] sm:$0xff] }
 0x282   : > { %664 = vrot.lane.b32.xlu1 %v657_v44, %s2440_s18  ;;  %672 = vst.msk [vmem:[#allocation9] sm:$0xff] %vm668_vm2, %v657_v44  ;;  %v686_v50 = vmul.f32 %v683_v34, %v657_v44  ;;  %v706_v51 = vmul.f32 %v703_v36, %v657_v44  ;;  %v726_v53 = vmul.f32 %v723_v41, %v657_v44  ;;  %v903_v45 = vld [vmem:[#allocation8 + $0x8] sm:$0xff]  }
 0x283   : > { %v685_v54 = vmul.f32 %v683_v34, %v652_v46  ;;  %v705_v55 = vmul.f32 %v703_v36, %v652_v46  ;;  %v725_v56 = vmul.f32 %v723_v41, %v652_v46  ;;  %v678_v63 = vmul.f32 %v677_v47, %v652_v46 }
 0x284   : > { %v694_v57 = vrot.slane %v686_v50, 5  ;;  %v714_v58 = vrot.slane %v706_v51, 6  ;;  %v734_v59 = vrot.slane %v726_v53, 7  ;;  %v679_v0 = vmul.f32 %v677_v47, %v657_v44  ;;  %v902_v44 = vld [vmem:[#allocation8] sm:$0xff]  }
 0x285   : > { %v692_v60 = vrot.slane %v685_v54, 5  ;;  %v712_v61 = vrot.slane %v705_v55, 6  ;;  %v732_v62 = vrot.slane %v725_v56, 7  ;;  %v897_v41 = vmul.f32 1.442695, %v894_v38 }
 0x286   : > { %662 = vrot.lane.b32.xlu1 %v652_v46, %s2440_s18 }
 0x287   : > { %v693_v1 = vsel %vm690_vm3, %v691_v48, %v692_v60  ;;  %v695_v2 = vsel %vm690_vm3, %v692_v60, %v694_v57  ;;  %v715_v3 = vsel %vm710_vm4, %v712_v61, %v714_v58  ;;  %v735_v7 = vsel %vm730_vm5, %v732_v62, %v734_v59  ;;  %v1801_v48 = vld [vmem:[#allocation18] ss:$0 sm:$0xff] }
 0x288   : > { %v698_v5 = vadd.f32 %v693_v1, %v678_v63  ;;  %v699_v6 = vadd.f32 %v695_v2, %v679_v0  ;;  %v713_v8 = vsel %vm710_vm4, %v711_v52, %v712_v61  ;;  %v733_v11 = vsel %vm730_vm5, %v731_v4, %v732_v62 }
 0x28a   : > { %v718_v9 = vadd.f32 %v713_v8, %v698_v5  ;;  %v719_v10 = vadd.f32 %v715_v3, %v699_v6 }
 0x28c   : > { %v738_v13 = vadd.f32 %v733_v11, %v718_v9  ;;  %v739_v14 = vadd.f32 %v735_v7, %v719_v10 }
 0x28e   : > { %v747_v15 = vadd.f32 %v1798_v12, %v738_v13  ;;  %v748_v16 = vadd.f32 %v1798_v12, %v739_v14 }
 0x290   : > { %v749_v17 = vsub.f32 0.0, %v747_v15  ;;  %v750_v18 = vsub.f32 0.0, %v748_v16 }
 0x292   : > { %v751_v19 = vmul.f32 1.442695, %v749_v17  ;;  %v753_v20 = vmul.f32 1.442695, %v750_v18 }
 0x294   : > { %2043 = vpow2.f32 %v751_v19 }
 0x295   : > { %2045 = vpow2.f32 %v753_v20 }
 0x29e   : > { %v2044_v21 = vpop.eup %2043 }
 0x29f   : > { %v2046_v23 = vpop.eup %2045  ;;  %v755_v24 = vadd.f32 1.0, %v2044_v21 }
 0x2a0   : > { %v756_v26 = vadd.f32 1.0, %v2046_v23 }
 0x2a1   : > { %2047 = vrcp.f32 %v755_v24 }
 0x2a2   : > { %2049 = vrcp.f32 %v756_v26 }
 0x2a3   : > { %2051 = vpow2.f32 %v895_v40 }
 0x2a4   : > { %2053 = vpow2.f32 %v897_v41 }
 0x2ab   : > { %v2048_v27 = vpop.eup %2047 }
 0x2ac   : > { %v2050_v28 = vpop.eup %2049  ;;  %v759_v29 = vmul.f32 %v2048_v27, %v747_v15 }
 0x2ad   : > { %v760_v32 = vmul.f32 %v2050_v28, %v748_v16  ;;  %v2052_v42 = vpop.eup %2051 }
 0x2ae   : > { %761 = vst.msk [vmem:[#allocation3] sm:$0xff] %vm668_vm2, %v759_v29  ;;  %1842 = vmatprep.mubr.msk.f32.mxu1 %vm668_vm2, %v759_v29  ;;  %v2054_v46 = vpop.eup %2053  ;;  %v2884_v47 = vsub.f32 0.0, %v2052_v42 }
 0x2af   : > { %762 = vst.msk [vmem:[#allocation3 + $0x8] sm:$0xff] %vm668_vm2, %v760_v32  ;;  %1843 = vmatmul.mubr.msk.f32.vlgmr.msra.gmra.mrb[0].mxu1 %vm668_vm2, %v760_v32  ;;  %v2886_v49 = vsub.f32 0.0, %v2054_v46 }
 0x2f4   : > { %v665_v34 = vpop.permute.xlu1 %664 }
 0x2f5   : > { %670 = vst.msk [vmem:[#allocation4 + $0x8] sm:$0xff] %vm668_vm2, %v665_v34 }
 0x2f8   : > { %v663_v36 = vpop.permute.xlu1 %662 }
 0x2f9   : > { %669 = vst.msk [vmem:[#allocation4] sm:$0xff] %vm668_vm2, %v663_v36 }
 0x382   : > { %v1844_v50 = vpop.f32.mrb[0].mxu1 }
 0x383   : > { %879 = vrot.lane.b32.xlu1 %v1844_v50, %s2440_s18  ;;  %v837_v51 = vpop.f32.mrb[1].mxu1  ;;  %v854_v52 = vadd.f32 %v1844_v50, %v1801_v48 }
 0x384   : > { %v853_v53 = vadd.f32 %v1801_v48, %v837_v51  ;;  %877 = vrot.lane.b32.xlu0 %v837_v51, %s2440_s18 }
 0x385   : > { %v858_v54 = vand.u32 2147483647, %v854_v52  ;;  %v856_v2 = vmax.f32 %v854_v52, 0.0 }
 0x386   : > { %v857_v55 = vand.u32 2147483647, %v853_v53  ;;  %v855_v4 = vmax.f32 %v853_v53, 0.0 }
 0x387   : > { %v860_v56 = vsub.f32 0.0, %v858_v54  ;;  %885 = vrot.lane.b32.xlu1 %v837_v51, %s2441_s20 }
 0x388   : > { %v859_v57 = vsub.f32 0.0, %v857_v55 }
 0x389   : > { %v863_v58 = vmul.f32 1.442695, %v860_v56 }
 0x38a   : > { %v861_v59 = vmul.f32 1.442695, %v859_v57 }
 0x38b   : > { %2055 = vpow2.f32 %v863_v58  ;;  %887 = vrot.lane.b32.xlu1 %v1844_v50, %s2441_s20 }
 0x38c   : > { %2057 = vpow2.f32 %v861_v59 }
 0x395   : > { %v2056_v60 = vpop.eup %2055 }
 0x396   : > { %v2058_v61 = vpop.eup %2057  ;;  %v866_v62 = vadd.f32 1.0, %v2056_v60 }
 0x397   : > { %v865_v63 = vadd.f32 1.0, %v2058_v61 }
 0x398   : > { %2059 = vlog2.f32 %v866_v62 }
 0x399   : > { %2061 = vlog2.f32 %v865_v63 }
 0x3a2   : > { %v2060_v0 = vpop.eup %2059 }
 0x3a3   : > { %v2062_v1 = vpop.eup %2061  ;;  %v870_v3 = vmul.f32 0.6931472, %v2060_v0 }
 0x3a4   : > { %v868_v5 = vmul.f32 0.6931472, %v2062_v1 }
 0x3a5   : > { %v872_v6 = vadd.f32 %v870_v3, %v856_v2 }
 0x3a6   : > { %v871_v7 = vadd.f32 %v868_v5, %v855_v4 }
 0x3a7   : > { %874 = vst.msk [vmem:[#allocation2 + $0x8] sm:$0xff] %vm668_vm2, %v872_v6 }
 0x3a8   : > { %873 = vst.msk [vmem:[#allocation2] sm:$0xff] %vm668_vm2, %v871_v7 }
 0x3f5   : > { %v880_v8 = vpop.permute.xlu1 %879 }
 0x3f6   : > { %884 = vst.msk [vmem:[#allocation5 + $0x8] sm:$0xff] %vm668_vm2, %v880_v8  ;;  %v878_v9 = vpop.permute.xlu0 %877 }
 0x3f7   : > { %883 = vst.msk [vmem:[#allocation5] sm:$0xff] %vm668_vm2, %v878_v9 }
 0x3f9   : > { %v886_v10 = vpop.permute.xlu1 %885 }
 0x3fa   : > { %891 = vst.msk [vmem:[#allocation6] sm:$0xff] %vm668_vm2, %v886_v10 }
 0x3fd   : > { %v888_v11 = vpop.permute.xlu1 %887 }
 0x3fe   : > { %892 = vst.msk [vmem:[#allocation6 + $0x8] sm:$0xff] %vm668_vm2, %v888_v11 }
 0x3ff LB: >> { %s2912_s30 = sshll.u32 %s2428_s13, 3  ;;  %v1158_v17 = vsub.s32 4, %v2846_v30  ;;  %v1169_v19 = vsub.s32 5, %v2846_v30  ;;  %v1180_v21 = vsub.s32 6, %v2846_v30  ;;  %v1191_v29 = vsub.s32 7, %v2846_v30  ;;  %s909_s13 = sadd.s32 1, %s2428_s13   ;;  %s2428_s13 = sphi %s2900_s13, %s909_s13   ;;  %v2424_v44 = vphi %v902_v44, %v3209_v44   ;;  %v2420_v45 = vphi %v903_v45, %v3208_v45  }
 0x400   : >> { %s919_s10 = scalar_lea.vmem [#allocation5], %s2912_s30  ;;  %s921_s3 = scalar_lea.vmem [#allocation6], %s2912_s30  ;;  %v2442_v41 = vmov 1966171168   ;;  %vm1467_vm6 = vcmask 1043456   ;;  %vm1469_vm7 = vcmask 1044480  }
 0x401   : >> { %v920_v12 = vld [vmem:[%s919_s10] sm:$0xff]  ;;  %v926_v42 = vunpack.c.l.s4 %v2442_v41  ;;  %s913_s29 = scalar_lea.vmem [#allocation2], %s2912_s30  ;;  %s915_s4 = scalar_lea.vmem [#allocation3], %s2912_s30  ;;  %vm1471_vm8 = vcmask 1045504   ;;  %vm1473_vm9 = vcmask 1046528  }
 0x402   : >> { %v1126_v13 = vrot.slane %v920_v12, %v2852_v33  ;;  %v1115_v14 = vrot.slane %v920_v12, %v2849_v31  ;;  %v1137_v15 = vrot.slane %v920_v12, %v2856_v35  ;;  %v1148_v16 = vrot.slane %v920_v12, %v2863_v39  ;;  %v914_v50 = vld [vmem:[%s913_s29] sm:$0xff]  ;;  %s917_s24 = scalar_lea.vmem [#allocation4], %s2912_s30  ;;  %s1484_s25 = scalar_lea.vmem [#allocation7], %s2912_s30 }
 0x403   : >> { %v1159_v18 = vrot.slane %v920_v12, %v1158_v17  ;;  %v1170_v20 = vrot.slane %v920_v12, %v1169_v19  ;;  %v1181_v23 = vrot.slane %v920_v12, %v1180_v21  ;;  %v1192_v32 = vrot.slane %v920_v12, %v1191_v29  ;;  %v2939_v58 = vld [vmem:[%s915_s4] sm:$0xff]  ;;  %p906_p10 = scmp.ge.s32.totalorder %s909_s13, 2  }
 0x404   : >> { %1128 = vbcast.lane.b32.xlu1 %v1126_v13, 256  ;;  %1117 = vbcast.lane.b32.xlu0 %v1115_v14, 256  ;;  %v927_v46 = vunpack.c.0.s8 %v926_v42  ;;  %v2943_v62 = vmul.f32 %v2939_v58, %v914_v50  ;;  %v924_v8 = vcombine.high %v914_v50, %v914_v50  ;;  %s3210_s17 = sld [smem:[#allocation28_spill]] (%p906_p10)  ;;  %s3211_s11 = sld [smem:[#allocation29_spill]] (%p906_p10) }
 0x405   : >> { %v922_v24 = vld [vmem:[%s921_s3] sm:$0xff]  ;;  %s3212_s18 = sld [smem:[#allocation37_spill]] (%p906_p10)  ;;  %s1600_s7 = sshll.u32 (%p906_p10), %s2824_s5, 4  ;;  %s3088_s7 = int_to_ptr.vmem [resolvable:$true] %s1600_s7 }
 0x406   : >> { %v1259_v26 = vrot.slane %v922_v24, %v2849_v31  ;;  %v1270_v27 = vrot.slane %v922_v24, %v2852_v33  ;;  %v1281_v28 = vrot.slane %v922_v24, %v2856_v35  ;;  %v1292_v34 = vrot.slane %v922_v24, %v2863_v39  ;;  %s3214_s30 = sld [smem:[#allocation39_spill]] (%p906_p10)  ;;  %p3215_p5 = scmp.ne.s32.totalorder (%p906_p10), %s3194_s15, 0 }
 0x407   : >> { %v1303_v36 = vrot.slane %v922_v24, %v1158_v17  ;;  %v1314_v37 = vrot.slane %v922_v24, %v1169_v19  ;;  %v1325_v38 = vrot.slane %v922_v24, %v1180_v21  ;;  %v1336_v40 = vrot.slane %v922_v24, %v1191_v29 }
 0x408   : >> { %1132 = vbcast.lane.b32.xlu1 %v1126_v13, 264  ;;  %1121 = vbcast.lane.b32.xlu0 %v1115_v14, 264  ;;  %v2929_v48 = vsub.s32 %v927_v46, %v2846_v30 }
 0x40a   : >> { %v931_v51 = vrot.slane %v914_v50, %v2929_v48  ;;  %v1070_v2 = vrot.slane %v2943_v62, %v2929_v48  ;;  %v938_v17 = vrot.slane %v924_v8, %v2929_v48  ;;  %s1808_s13 = sshll.u32 (%p906_p10), %s3210_s17, 1  ;;  %s1809_s10 = sshll.u32 (%p906_p10), %s3211_s11, 2 }
 0x40b   : > { %s1597_s3 = sadd.s32 (%p906_p10), %s1809_s10, %s1808_s13  ;;  %s1585_s11 = scalar_lea.sflag (%p906_p10), [#allocation12], %s2804_s12 }
 0x40c   : >> { %1143 = vbcast.lane.b32.xlu1 %v1137_v15, 264  ;;  %1139 = vbcast.lane.b32.xlu0 %v1137_v15, 256  ;;  %v947_v52 = vrot.slane %v931_v51, %v2929_v48  ;;  %v939_v53 = vcombine.high %v931_v51, %v931_v51  ;;  %v1086_v6 = vrot.slane %v1070_v2, %v2929_v48  ;;  %s2294_s13 = scalar_lea.vmem (%p906_p10), %s3088_s7, 256  ;;  %s2443_s10 = smov (%p906_p10), [#allocation22]  }
 0x40d   : >> { %v1078_v13 = vcombine.high %v1070_v2, %v1070_v2  ;;  %v940_v42 = vcombine.high %v938_v17, %v938_v17  ;;  %p2295_p7 = scmp.ne.s32.totalorder (%p906_p10), %s3088_s7, %s2294_s13 }
 0x40e   : >> { %v976_v54 = vrot.slane %v947_v52, %v2849_v31  ;;  %v961_v55 = vrot.slane %v939_v53, %v2929_v48  ;;  %v969_v1 = vcombine.high %v947_v52, %v947_v52  ;;  %v1203_v11 = vrot.slane %v1086_v6, %v2849_v31 }
 0x40f   : >> { %v1100_v24 = vrot.slane %v1078_v13, %v2929_v48  ;;  %v1108_v53 = vcombine.high %v1086_v6, %v1086_v6  ;;  %p2296_p6 = pnand (%p906_p10), %p2295_p7, %p3215_p5 }
 0x410   : >> { %1154 = vbcast.lane.b32.xlu1 %v1148_v16, 264  ;;  %1150 = vbcast.lane.b32.xlu0 %v1148_v16, 256  ;;  %v1013_v56 = vmul.f32 %v976_v54, %v2884_v47  ;;  %v1014_v57 = vmul.f32 %v976_v54, %v2886_v49  ;;  %v980_v60 = vrot.slane %v961_v55, %v2849_v31 }
 0x411   : >> { %v984_v5 = vrot.slane %v969_v1, %v2849_v31  ;;  %v971_v10 = vcombine.high %v961_v55, %v961_v55  ;;  %v968_v1 = vrot.slane %v940_v42, %v2929_v48  ;;  %v1110_v13 = vcombine.high %v1100_v24, %v1100_v24  ;;  %p2297_p8 = pneg (%p906_p10), %p2296_p6 }
 0x412   : >> { %v1029_v59 = vmul.f32 1.442695, %v1013_v56  ;;  %v1031_v61 = vmul.f32 1.442695, %v1014_v57  ;;  %v1016_v63 = vmul.f32 %v980_v60, %v2886_v49  ;;  %v1015_v0 = vmul.f32 %v980_v60, %v2884_v47 }
 0x413   : >> { %v1018_v7 = vmul.f32 %v984_v5, %v2886_v49  ;;  %v1017_v9 = vmul.f32 %v984_v5, %v2884_v47 }
 0x414   : >> { %1165 = vbcast.lane.b32.xlu1 %v1159_v18, 264  ;;  %1161 = vbcast.lane.b32.xlu0 %v1159_v18, 256  ;;  %2064 = vpow2.f32 %v1029_v59  ;;  %v1035_v3 = vmul.f32 1.442695, %v1016_v63  ;;  %v1033_v4 = vmul.f32 1.442695, %v1015_v0 }
 0x415   : >> { %2066 = vpow2.f32 %v1031_v61  ;;  %v1039_v14 = vmul.f32 1.442695, %v1018_v7  ;;  %v1037_v19 = vmul.f32 1.442695, %v1017_v9 }
 0x416   : >> { %2068 = vpow2.f32 %v1035_v3  ;;  %v1211_v3 = vrot.slane %v1108_v53, %v2849_v31 }
 0x417   : >> { %2070 = vpow2.f32 %v1033_v4 }
 0x418   : >> { %1176 = vbcast.lane.b32.xlu1 %v1170_v20, 264  ;;  %1172 = vbcast.lane.b32.xlu0 %v1170_v20, 256  ;;  %v988_v20 = vrot.slane %v971_v10, %v2849_v31  ;;  %2072 = vpow2.f32 %v1039_v14  ;;  %v1063_v14 = vcombine.high %v2943_v62, %v2943_v62  ;;  %v1215_v62 = vrot.slane %v1110_v13, %v2849_v31 }
 0x419   : >> { %2074 = vpow2.f32 %v1037_v19 }
 0x41c   : >> { %1187 = vbcast.lane.b32.xlu1 %v1181_v23, 264  ;;  %1183 = vbcast.lane.b32.xlu0 %v1181_v23, 256 }
 0x41e   : >> { %v2065_v12 = vpop.eup %2064 }
 0x41f   : >> { %v2067_v15 = vpop.eup %2066  ;;  %v1344_v23 = vmul.f32 %v2424_v44, %v2065_v12 }
 0x420   : >> { %1265 = vbcast.lane.b32.xlu1 %v1259_v26, 264  ;;  %1261 = vbcast.lane.b32.xlu0 %v1259_v26, 256  ;;  %v1345_v26 = vmul.f32 %v2420_v45, %v2067_v15 }
 0x424   : >> { %1276 = vbcast.lane.b32.xlu1 %v1270_v27, 264  ;;  %1272 = vbcast.lane.b32.xlu0 %v1270_v27, 256  ;;  %v1020_v27 = vmul.f32 %v988_v20, %v2886_v49 }
 0x426   : >> { %v1043_v45 = vmul.f32 1.442695, %v1020_v27 }
 0x428   : >> { %1287 = vbcast.lane.b32.xlu1 %v1281_v28, 264  ;;  %1283 = vbcast.lane.b32.xlu0 %v1281_v28, 256  ;;  %v2961_v28 = vrot.slane %v938_v17, %v2929_v48  ;;  %2076 = vpow2.f32 %v1043_v45 }
 0x42a   : >> { %v992_v52 = vrot.slane %v2961_v28, %v2849_v31 }
 0x42c   : >> { %1198 = vbcast.lane.b32.xlu1 %v1192_v32, 264  ;;  %1194 = vbcast.lane.b32.xlu0 %v1192_v32, 256  ;;  %v1022_v59 = vmul.f32 %v992_v52, %v2886_v49  ;;  %v1021_v0 = vmul.f32 %v992_v52, %v2884_v47 }
 0x42e   : >> { %v1047_v6 = vmul.f32 1.442695, %v1022_v59  ;;  %v1045_v10 = vmul.f32 1.442695, %v1021_v0 }
 0x430   : >> { %1298 = vbcast.lane.b32.xlu1 %v1292_v34, 264  ;;  %1294 = vbcast.lane.b32.xlu0 %v1292_v34, 256  ;;  %v1019_v34 = vmul.f32 %v988_v20, %v2884_v47 }
 0x432   : >> { %v1041_v51 = vmul.f32 1.442695, %v1019_v34 }
 0x434   : >> { %1309 = vbcast.lane.b32.xlu1 %v1303_v36, 264  ;;  %1305 = vbcast.lane.b32.xlu0 %v1303_v36, 256  ;;  %v2069_v36 = vpop.eup %2068  ;;  %2078 = vpow2.f32 %v1041_v51 }
 0x435   : >> { %v2071_v44 = vpop.eup %2070  ;;  %2080 = vpow2.f32 %v1047_v6 }
 0x436   : >> { %v2073_v2 = vpop.eup %2072  ;;  %2082 = vpow2.f32 %v1045_v10 }
 0x437   : >> { %v2075_v5 = vpop.eup %2074 }
 0x438   : >> { %1320 = vbcast.lane.b32.xlu1 %v1314_v37, 264  ;;  %1316 = vbcast.lane.b32.xlu0 %v1314_v37, 256 }
 0x43c   : >> { %1331 = vbcast.lane.b32.xlu1 %v1325_v38, 264  ;;  %1327 = vbcast.lane.b32.xlu0 %v1325_v38, 256 }
 0x440   : >> { %1342 = vbcast.lane.b32.xlu1 %v1336_v40, 264  ;;  %1338 = vbcast.lane.b32.xlu0 %v1336_v40, 256  ;;  %v1207_v40 = vrot.slane %v1100_v24, %v2849_v31  ;;  %v2077_v24 = vpop.eup %2076 }
 0x476   : >> { %v1129_v16 = vpop.permute.xlu1 %1128  ;;  %v1118_v18 = vpop.permute.xlu0 %1117 }
 0x477   : >> { %v1240_v21 = vmul.f32 %v1203_v11, %v1118_v18  ;;  %v1242_v57 = vmul.f32 %v1207_v40, %v1129_v16 }
 0x479   : >> { %v2964_v38 = vadd.f32 %v1344_v23, %v1240_v21  ;;  %v970_v23 = vcombine.high %v2961_v28, %v2961_v28 }
 0x47a   : >> { %v1133_v29 = vpop.permute.xlu1 %1132  ;;  %v1122_v32 = vpop.permute.xlu0 %1121 }
 0x47b   : >> { %v1241_v37 = vmul.f32 %v1203_v11, %v1122_v32  ;;  %v1359_v55 = vmul.f32 %v2071_v44, %v2964_v38  ;;  %v1243_v56 = vmul.f32 %v1207_v40, %v1133_v29  ;;  %v996_v11 = vrot.slane %v968_v1, %v2849_v31  ;;  %v2079_v29 = vpop.eup %2078 }
 0x47c   : >> { %v1000_v40 = vrot.slane %v970_v23, %v2849_v31 }
 0x47d   : >> { %v2967_v41 = vadd.f32 %v1345_v26, %v1241_v37  ;;  %v2979_v4 = vadd.f32 %v1359_v55, %v1242_v57  ;;  %v1024_v17 = vmul.f32 %v996_v11, %v2886_v49  ;;  %v1023_v21 = vmul.f32 %v996_v11, %v2884_v47 }
 0x47e   : >> { %v1144_v46 = vpop.permute.xlu1 %1143  ;;  %v1140_v50 = vpop.permute.xlu0 %1139  ;;  %v1077_v26 = vrot.slane %v1063_v14, %v2929_v48  ;;  %v972_v55 = vcombine.high %v968_v1, %v968_v1 }
 0x47f   : >> { %v1360_v54 = vmul.f32 %v2069_v36, %v2967_v41  ;;  %v1244_v12 = vmul.f32 %v1211_v3, %v1140_v50  ;;  %v1374_v15 = vmul.f32 %v2075_v5, %v2979_v4  ;;  %v1245_v16 = vmul.f32 %v1211_v3, %v1144_v46 }
 0x480   : >> { %v1051_v32 = vmul.f32 1.442695, %v1024_v17  ;;  %v1049_v44 = vmul.f32 1.442695, %v1023_v21  ;;  %v1093_v42 = vrot.slane %v1077_v26, %v2929_v48  ;;  %v1026_v50 = vmul.f32 %v1000_v40, %v2886_v49 }
 0x481   : >> { %v2974_v63 = vadd.f32 %v1360_v54, %v1243_v56  ;;  %v1376_v27 = vadd.f32 %v1374_v15, %v1244_v12  ;;  %v1025_v54 = vmul.f32 %v1000_v40, %v2884_v47  ;;  %v2081_v56 = vpop.eup %2080  ;;  %v1079_v59 = vcombine.high %v1077_v26, %v1077_v26 }
 0x482   : >> { %v1155_v60 = vpop.permute.xlu1 %1154  ;;  %v1151_v61 = vpop.permute.xlu0 %1150  ;;  %2084 = vpow2.f32 %v1051_v32  ;;  %v1219_v57 = vrot.slane %v1093_v42, %v2849_v31 }
 0x483   : >> { %v1375_v9 = vmul.f32 %v2073_v2, %v2974_v63  ;;  %v1246_v45 = vmul.f32 %v1215_v62, %v1151_v61  ;;  %v1389_v28 = vmul.f32 %v2079_v29, %v1376_v27  ;;  %v1247_v46 = vmul.f32 %v1215_v62, %v1155_v60  ;;  %v2083_v61 = vpop.eup %2082 }
 0x484   : >> { %2086 = vpow2.f32 %v1049_v44  ;;  %v1055_v2 = vmul.f32 1.442695, %v1026_v50  ;;  %v1053_v6 = vmul.f32 1.442695, %v1025_v54  ;;  %v3007_v11 = vrot.slane %v1079_v59, %v2929_v48 }
 0x485   : >> { %v1377_v20 = vadd.f32 %v1375_v9, %v1245_v16  ;;  %v1391_v0 = vadd.f32 %v1389_v28, %v1246_v45  ;;  %v1004_v9 = vrot.slane %v972_v55, %v2849_v31  ;;  %v1109_v44 = vcombine.high %v1093_v42, %v1093_v42 }
 0x486   : >> { %v1166_v7 = vpop.permute.xlu1 %1165  ;;  %v1162_v8 = vpop.permute.xlu0 %1161  ;;  %2088 = vpow2.f32 %v1055_v2  ;;  %v1223_v23 = vrot.slane %v3007_v11, %v2849_v31 }
 0x487   : >> { %v1390_v37 = vmul.f32 %v2077_v24, %v1377_v20  ;;  %v1248_v10 = vmul.f32 %v1219_v57, %v1162_v8  ;;  %v1404_v12 = vmul.f32 %v2083_v61, %v1391_v0  ;;  %v1249_v13 = vmul.f32 %v1219_v57, %v1166_v7 }
 0x488   : >> { %v1028_v1 = vmul.f32 %v1004_v9, %v2886_v49  ;;  %2090 = vpow2.f32 %v1053_v6  ;;  %v1027_v17 = vmul.f32 %v1004_v9, %v2884_v47 }
 0x489   : >> { %v1392_v53 = vadd.f32 %v1390_v37, %v1247_v46  ;;  %v1406_v24 = vadd.f32 %v1404_v12, %v1248_v10 }
 0x48a   : >> { %v2987_v18 = vpop.permute.xlu1 %1176  ;;  %v2989_v19 = vpop.permute.xlu0 %1172  ;;  %v1059_v37 = vmul.f32 1.442695, %v1028_v1  ;;  %v1057_v46 = vmul.f32 1.442695, %v1027_v17 }
 0x48b   : >> { %v1405_v60 = vmul.f32 %v2081_v56, %v1392_v53  ;;  %v1250_v50 = vmul.f32 %v1223_v23, %v2989_v19 }
 0x48c   : >> { %v2085_v21 = vpop.eup %2084  ;;  %2092 = vpow2.f32 %v1059_v37 }
 0x48d   : >> { %v1407_v16 = vadd.f32 %v1405_v60, %v1249_v13  ;;  %2094 = vpow2.f32 %v1057_v46  ;;  %v1111_v60 = vcombine.high %v3007_v11, %v3007_v11 }
 0x48e   : >> { %v2996_v34 = vpop.permute.xlu1 %1187  ;;  %v2998_v36 = vpop.permute.xlu0 %1183 }
 0x48f   : >> { %v2087_v62 = vpop.eup %2086  ;;  %v1420_v28 = vmul.f32 %v2085_v21, %v1407_v16  ;;  %v1231_v11 = vrot.slane %v1111_v60, %v2849_v31 }
 0x490   : >> { %v1419_v54 = vmul.f32 %v2087_v62, %v1406_v24  ;;  %v2089_v57 = vpop.eup %2088 }
 0x492   : >> { %v1266_v51 = vpop.permute.xlu1 %1265  ;;  %v1262_v52 = vpop.permute.xlu0 %1261  ;;  %v1421_v2 = vadd.f32 %v1419_v54, %v1250_v50 }
 0x493   : >> { %v1349_v29 = vmul.f32 %v2967_v41, %v1266_v51  ;;  %v1348_v32 = vmul.f32 %v2964_v38, %v1262_v52  ;;  %v1227_v51 = vrot.slane %v1109_v44, %v2849_v31 }
 0x495   : >> { %v1351_v38 = vsel %vm668_vm2, %v1349_v29, 0.0  ;;  %v1350_v42 = vsel %vm668_vm2, %v1348_v32, 0.0  ;;  %v1252_v10 = vmul.f32 %v1227_v51, %v2998_v36 }
 0x496   : >> { %v1277_v3 = vpop.permute.xlu1 %1276  ;;  %v1273_v5 = vpop.permute.xlu0 %1272 }
 0x497   : >> { %v1364_v8 = vmul.f32 %v2974_v63, %v1277_v3  ;;  %v1363_v48 = vmul.f32 %v2979_v4, %v1273_v5  ;;  %v2091_v3 = vpop.eup %2090  ;;  %v1352_v5 = vadd.f32 %v1351_v38, %v1350_v42 }
 0x498   : >> { %v1434_v21 = vmul.f32 %v2091_v3, %v1421_v2  ;;  %v2093_v44 = vpop.eup %2092 }
 0x499   : >> { %v1366_v63 = vsel %vm668_vm2, %v1364_v8, 0.0  ;;  %v1365_v4 = vsel %vm668_vm2, %v1363_v48, 0.0  ;;  %v1353_v8 = vrot.slane %v1352_v5, 4  ;;  %v2095_v50 = vpop.eup %2094 }
 0x49a   : >> { %v1288_v14 = vpop.permute.xlu1 %1287  ;;  %v1284_v15 = vpop.permute.xlu0 %1283  ;;  %v1367_v52 = vadd.f32 %v1366_v63, %v1365_v4  ;;  %v1436_v46 = vadd.f32 %v1434_v21, %v1252_v10 }
 0x49b   : >> { %v1379_v7 = vmul.f32 %v1377_v20, %v1288_v14  ;;  %v1378_v26 = vmul.f32 %v1376_v27, %v1284_v15  ;;  %v1251_v20 = vmul.f32 %v1223_v23, %v2987_v18  ;;  %v1253_v23 = vmul.f32 %v1227_v51, %v2996_v34 }
 0x49c   : >> { %v1368_v12 = vrot.slane %v1367_v52, 4  ;;  %v1354_v34 = vadd.f32 %v1353_v8, %v1352_v5 }
 0x49d   : >> { %v1381_v27 = vsel %vm668_vm2, %v1379_v7, 0.0  ;;  %v1380_v41 = vsel %vm668_vm2, %v1378_v26, 0.0  ;;  %v1422_v56 = vadd.f32 %v1420_v28, %v1251_v20 }
 0x49e   : >> { %v1199_v40 = vpop.permute.xlu1 %1198  ;;  %v1195_v45 = vpop.permute.xlu0 %1194  ;;  %v1382_v59 = vadd.f32 %v1381_v27, %v1380_v41  ;;  %v1369_v36 = vadd.f32 %v1368_v12, %v1367_v52 }
 0x49f   : >> { %v1435_v15 = vmul.f32 %v2089_v57, %v1422_v56  ;;  %v1255_v63 = vmul.f32 %v1231_v11, %v1199_v40  ;;  %v1254_v20 = vmul.f32 %v1231_v11, %v1195_v45 }
 0x4a0   : >> { %v1383_v17 = vrot.slane %v1382_v59, 4  ;;  %v1370_v38 = vrot.slane %v1369_v36, 2 }
 0x4a1   : >> { %v1437_v37 = vadd.f32 %v1435_v15, %v1253_v23 }
 0x4a2   : >> { %v1299_v19 = vpop.permute.xlu1 %1298  ;;  %v1295_v55 = vpop.permute.xlu0 %1294  ;;  %v1384_v28 = vadd.f32 %v1383_v17, %v1382_v59  ;;  %v1371_v10 = vadd.f32 %v1370_v38, %v1369_v36 }
 0x4a3   : >> { %v1394_v61 = vmul.f32 %v1392_v53, %v1299_v19  ;;  %v1393_v18 = vmul.f32 %v1391_v0, %v1295_v55  ;;  %v1450_v55 = vmul.f32 %v2093_v44, %v1437_v37 }
 0x4a4   : >> { %v1385_v57 = vrot.slane %v1384_v28, 2 }
 0x4a5   : >> { %v1396_v6 = vsel %vm668_vm2, %v1394_v61, 0.0  ;;  %v1395_v9 = vsel %vm668_vm2, %v1393_v18, 0.0  ;;  %v1449_v61 = vmul.f32 %v2095_v50, %v1436_v46  ;;  %v1355_v18 = vrot.slane %v1354_v34, 2 }
 0x4a6   : >> { %v1397_v13 = vadd.f32 %v1396_v6, %v1395_v9  ;;  %v1310_v1 = vpop.permute.xlu1 %1309  ;;  %v1306_v14 = vpop.permute.xlu0 %1305  ;;  %v3037_v45 = vadd.f32 %v1450_v55, %v1255_v63   ;;  %v1386_v15 = vadd.f32 %v1385_v57, %v1384_v28 }
 0x4a7   : >> { %v1409_v53 = vmul.f32 %v1407_v16, %v1310_v1  ;;  %v1408_v0 = vmul.f32 %v1406_v24, %v1306_v14  ;;  %v3041_v44 = vadd.f32 %v1449_v61, %v1254_v20  }
 0x4a8   : >> { %v1398_v48 = vrot.slane %v1397_v13, 4  ;;  %v3206_v3 = vmov %v3037_v45 }
 0x4a9   : >> { %v1411_v62 = vsel %vm668_vm2, %v1409_v53, 0.0  ;;  %v1410_v7 = vsel %vm668_vm2, %v1408_v0, 0.0  ;;  %v3207_v9 = vmov %v3041_v44  ;;  %v1356_v0 = vadd.f32 %v1355_v18, %v1354_v34  ;;  %1487 = vst.msk [vmem:[#allocation8 + $0x8] sm:$0xff] (%p906_p10), %vm668_vm2, %v3206_v3 }
 0x4aa   : >> { %v1412_v26 = vadd.f32 %v1411_v62, %v1410_v7  ;;  %v1321_v29 = vpop.permute.xlu1 %1320  ;;  %v1317_v32 = vpop.permute.xlu0 %1316  ;;  %v1399_v4 = vadd.f32 %v1398_v48, %v1397_v13  ;;  %v1372_v62 = vrot.slane %v1371_v10, 1  ;;  %1486 = vst.msk [vmem:[#allocation8] sm:$0xff] (%p906_p10), %vm668_vm2, %v3207_v9 }
 0x4ab   : >> { %v1424_v16 = vmul.f32 %v1422_v56, %v1321_v29  ;;  %v1423_v24 = vmul.f32 %v1421_v2, %v1317_v32  ;;  %v1387_v29 = vrot.slane %v1386_v15, 1  ;;  %v1357_v32 = vrot.slane %v1356_v0, 1 }
 0x4ac   : >> { %v1413_v54 = vrot.slane %v1412_v26, 4  ;;  %v1400_v2 = vrot.slane %v1399_v4, 2 }
 0x4ad   : >> { %v1426_v27 = vsel %vm668_vm2, %v1424_v16, 0.0  ;;  %v1425_v41 = vsel %vm668_vm2, %v1423_v24, 0.0  ;;  %v1373_v24 = vadd.f32 %v1372_v62, %v1371_v10  ;;  %v1388_v63 = vadd.f32 %v1387_v29, %v1386_v15  ;;  %v1491_v10 = vld [vmem:[%s3212_s18 + $0x8] sm:$0xff] (%p906_p10) }
 0x4ae   : >> { %v1414_v42 = vadd.f32 %v1413_v54, %v1412_v26  ;;  %v1427_v51 = vadd.f32 %v1426_v27, %v1425_v41  ;;  %v1332_v52 = vpop.permute.xlu1 %1331  ;;  %v1328_v19 = vpop.permute.xlu0 %1327  ;;  %v1401_v21 = vadd.f32 %v1400_v2, %v1399_v4  ;;  %v1358_v4 = vadd.f32 %v1357_v32, %v1356_v0 }
 0x4af   : >> { %v1439_v56 = vmul.f32 %v1437_v37, %v1332_v52  ;;  %v1438_v59 = vmul.f32 %v1436_v46, %v1328_v19 }
 0x4b0   : >> { %v1428_v40 = vrot.slane %v1427_v51, 4  ;;  %v1415_v5 = vrot.slane %v1414_v42, 2  ;;  %v1402_v37 = vrot.slane %v1401_v21, 1  ;;  %v1464_v38 = vsel %vm730_vm5, %v1358_v4, %v1373_v24 }
 0x4b1   : >> { %v1441_v60 = vsel %vm668_vm2, %v1439_v56, 0.0  ;;  %v1440_v6 = vsel %vm668_vm2, %v1438_v59, 0.0  ;;  %v1465_v52 = vsel %vm710_vm4, %v1464_v38, %v1388_v63  ;;  %v1481_v56 = vmul.f32 %v2882_v43, %v2939_v58  ;;  %v1490_v58 = vld [vmem:[%s3212_s18] sm:$0xff] (%p906_p10) }
 0x4b2   : >> { %v1429_v12 = vadd.f32 %v1428_v40, %v1427_v51  ;;  %v1442_v13 = vadd.f32 %v1441_v60, %v1440_v6  ;;  %v1343_v1 = vpop.permute.xlu1 %1342  ;;  %v1339_v14 = vpop.permute.xlu0 %1338  ;;  %v1416_v8 = vadd.f32 %v1415_v5, %v1414_v42  ;;  %v1403_v54 = vadd.f32 %v1402_v37, %v1401_v21  ;;  %v918_v40 = vld [vmem:[%s917_s24] sm:$0xff]  ;;  %s3213_s24 = sld [smem:[#allocation38_spill]] (%p906_p10) }
 0x4b3   : >> { %v1454_v17 = vmul.f32 %v3206_v3, %v1343_v1  ;;  %v1453_v53 = vmul.f32 %v3207_v9, %v1339_v14 }
 0x4b4   : >> { %v1430_v45 = vrot.slane %v1429_v12, 2  ;;  %v1443_v23 = vrot.slane %v1442_v13, 4  ;;  %v1417_v16 = vrot.slane %v1416_v8, 1  ;;  %v1466_v55 = vsel %vm690_vm3, %v1465_v52, %v1403_v54 }
 0x4b5   : >> { %v1456_v11 = vsel %vm668_vm2, %v1454_v17, 0.0  ;;  %v1455_v48 = vsel %vm668_vm2, %v1453_v53, 0.0 }
 0x4b6   : >> { %v1431_v7 = vadd.f32 %v1430_v45, %v1429_v12  ;;  %v1444_v36 = vadd.f32 %v1443_v23, %v1442_v13  ;;  %v1457_v26 = vadd.f32 %v1456_v11, %v1455_v48  ;;  %v1418_v41 = vadd.f32 %v1417_v16, %v1416_v8 }
 0x4b7   : >> { %v3208_v45 = vmov %v3206_v3  ;;  %v1864_v13 = vpack.c.bf16 (%p906_p10), %v1491_v10, %v1490_v58 }
 0x4b8   : >> { %v1445_v44 = vrot.slane %v1444_v36, 2  ;;  %v1458_v28 = vrot.slane %v1457_v26, 4  ;;  %v1432_v46 = vrot.slane %v1431_v7, 1  ;;  %v1468_v59 = vsel %vm1467_vm6, %v1466_v55, %v1418_v41  ;;  %v1804_v31 = vld [vmem:[%s3213_s24] ss:$0 sm:$0xff] (%p906_p10) }
 0x4b9   : > { %1865 = vmatprep.subr.bf16.mxu1 (%p906_p10), %v1864_v13 }
 0x4ba   : >> { %v1446_v50 = vadd.f32 %v1445_v44, %v1444_v36  ;;  %v1459_v34 = vadd.f32 %v1458_v28, %v1457_v26  ;;  %v1433_v42 = vadd.f32 %v1432_v46, %v1431_v7  ;;  %v3209_v44 = vmov %v3207_v9  ;;  %1867 = vmatpush3.bf16.msra.mxu1 (%p906_p10), %v1864_v13 }
 0x4bc   : >> { %v1447_v20 = vrot.slane %v1446_v50, 1  ;;  %v1460_v27 = vrot.slane %v1459_v34, 2  ;;  %v1470_v61 = vsel %vm1469_vm7, %v1468_v59, %v1433_v42 }
 0x4be   : >> { %v1461_v51 = vadd.f32 %v1460_v27, %v1459_v34  ;;  %v1448_v19 = vadd.f32 %v1447_v20, %v1446_v50 }
 0x4c0   : >> { %v1462_v57 = vrot.slane %v1461_v51, 1  ;;  %v1472_v2 = vsel %vm1471_vm8, %v1470_v61, %v1448_v19 }
 0x4c2   : >> { %v1463_v18 = vadd.f32 %v1462_v57, %v1461_v51 }
 0x4c3   : > { %908 = sbr.rel (!%p906_p10) target bundleno = 1023 (0x3ff), region = 154 }
 0x4c4   : >> { %v1474_v5 = vsel %vm1473_vm9, %v1472_v2, %v1463_v18 }
 0x4c5   : >> { %v1482_v60 = vadd.f32 %v1481_v56, %v1474_v5 }
 0x4c7   : >> { %v1483_v6 = vmul.f32 %v1482_v60, %v918_v40 }
 0x4c9   : >> { %1485 = vst.msk [vmem:[%s1484_s25] sm:$0xff] %vm668_vm2, %v1483_v6  ;;  %s1810_s25 = sshll.u32 (%p906_p10), %s1597_s3, 7  ;;  %s2298_s3 = sshll.u32 (%p906_p10), %s2443_s10, 4  ;;  %s2299_s3 = int_to_ptr.vmem [resolvable:$false] %s2298_s3 }
 0x4ca   : > { %s3086_s17 = scalar_lea.hbm %s3214_s30, %s1810_s25  ;;  %s2300_s29 = scalar_lea.vmem %s2299_s3, 512 }
 0x4cb   : > { %p2301_p9 = scmp.lt.s32.totalorder %s3088_s7, %s2299_s3  ;;  %p2302_p1 = scmp.lt.s32.totalorder %s2300_s29, %s2294_s13 }
 0x4cd   : > { %p2303_p11 = por %p2302_p1, %p2301_p9 }
 0x4cf   : > { %p2304_p12 = pnand %p2303_p11, %p2297_p8 }
 0x4d0   : > { %v1488_v12 = vld [vmem:[#allocation7] sm:$0xff]  ;;  %v1489_v30 = vld [vmem:[#allocation7 + $0x8] sm:$0xff] }
 0x4d1   : > { %1849 = vmatprep.mubr.msk.f32.mxu1 %vm668_vm2, %v1488_v12 }
 0x4d2   : > { %1850 = vmatmul.mubr.msk.f32.vlgmr.msra.gmra.mrb[2].mxu1 %vm668_vm2, %v1489_v30 }
 0x5a5   : > { %v1851_v33 = vpop.f32.mrb[2].mxu1 }
 0x5a6   : > { %v1577_v35 = vadd.f32 %v1851_v33, %v1804_v31  ;;  %v1571_v39 = vpop.f32.mrb[3].mxu1 }
 0x5a7   : > { %v1572_v43 = vadd.f32 %v1804_v31, %v1571_v39 }
 0x5a8   : > { %v1581_v47 = vadd.f32 %v1577_v35, %v2836_v25 }
 0x5a9   : > { %v1580_v49 = vadd.f32 %v1572_v43, %v2832_v22 }
 0x5aa   : > { %1583 = vst.msk [vmem:[%s2824_s5 + $0x8] sm:$0xff] %vm544_vm1, %v1581_v47 }
 0x5ab   : > { %1582 = vst.msk [vmem:[%s2824_s5] sm:$0xff] %vm544_vm1, %v1580_v49 }
 0x5ac   : > { %2307 = shalt.err (!%p2304_p12)
}
 0x5ad   : > { %s2308_s5 = scalar_lea.hbm %s3086_s17, 256  ;;  %s2312_s25 = scalar_lea.hbm %s3214_s30, 1024 }
 0x5ae   : > { %p2309_p13 = scmp.ne.s32.totalorder %s3086_s17, %s2308_s5  ;;  %p2313_p4 = scmp.lt.u32.totalorder %s3086_s17, %s3214_s30 }
 0x5af   : > { %p2314_p2 = scmp.lt.u32.totalorder %s2312_s25, %s2308_s5  ;;  %p2316_p7 = scmp.lt.u32.totalorder %s2308_s5, %s3086_s17 }
 0x5b0   : > { %p2310_p0 = pnand %p2309_p13, %p3215_p5 }
 0x5b1   : > { %p2315_p10 = por %p2314_p2, %p2313_p4 }
 0x5b2   : > { %p2311_p3 = pneg %p2310_p0 }
 0x5b3   : > { %p2317_p6 = por %p2316_p7, %p2315_p10 }
 0x5b5   : > { %p2318_p8 = pnand %p2317_p6, %p2311_p3 }
 0x5b7   : > { %2321 = shalt.err (!%p2318_p8)
}
 0x5b8   : > { %s2444_s13 = smov 128   ;;  %s2445_s10 = smov 8  }
 0x5b9   : > { %1894 = dma.vmem_to_hbm [thread:$0]  (%p3215_p5), %s3088_s7, 256, %s3086_s17, %s1585_s11, %s2444_s13, %s2444_s13, %s2445_s10  }
 0x5ba PF: > { %p1936_p9 = scmp.ge.s32.totalorder %s2416_s28, 2  ;;  %s1615_s3 = sand.u32 1, %s2388_s21  }
 0x5bb   : > { %p3216_p1 = scmp.ne.s32.totalorder %s3195_s14, 0  ;;  %s1616_s29 = scalar_lea.sflag [#allocation12], %s1615_s3 }
 0x5bd   : > { %p1920_p11 = pnand %p1936_p9, %p3216_p1 }
 0x5bf   : > { %2383 = dma.done.wait (!%p1920_p11), %s1616_s29, 256  }
 0x5c0   : > { %2385 = vsyncadd (!%p1920_p11), %s1616_s29, 4294967040  ;;  %s31_s28 = sadd.s32 1, %s2416_s28   ;;  %s3217_s21 = smov %s2392_s22 }
 0x5c1   : > { %p28_p12 = scmp.ge.s32.totalorder %s31_s28, 6   ;;  %s3218_s22 = smov %s2396_s23 }
 0x5c2   : > { %s3219_s23 = smov %s2752_s1  ;;  %s3220_s24 = smov %s2408_s26 }
 0x5c3   : > { %s3221_s25 = smov %s2412_s27  ;;  %s3222_s26 = smov %s3225_s6 }
 0x5c4   : > { %s3223_s27 = smov %s3229_s16  ;;  %30 = sbr.rel (!%p28_p12) target bundleno = 21 (0x15), region = 165 }
 0x5cb   :  { %1621 = vsyncpa [#allocation11], 1 }
 0x5cc   :  { %1623 = vsyncpa [#allocation11 + $0x1], 1 }
 0x5cd   :  { %1624 = vsyncpa [#allocation14], 1 }
 0x5ce   :  { %1625 = vsyncpa [#allocation17], 1 }
 0x5cf   :  { %1626 = vsyncpa [#allocation20], 1 }
 0x5d0   :  { %1627 = vsyncpa [#allocation12], 1 }
 0x5d1   :  { %1629 = vsyncpa [#allocation12 + $0x1], 1 }

// kernel: tpu_custom_call.1
= control target key start
LH: loop header
LB: loop body
LE: loop exit
PB: predicated region body
PF: predicated region fallthrough
CT: control target
= control target key end

     0   :  { %s3147_s0 = inlined_call_operand.hbm [shape: f32[2,32,32], index: 0, kind: input, shape index: {}]   ;;  %s3148_s1 = inlined_call_operand.vmem [shape: f32[1,32], index: 1, kind: input, shape index: {}]   ;;  %s3149_s2 = inlined_call_operand.hbm [shape: f32[32,32], index: 2, kind: input, shape index: {}]   ;;  %s3150_s3 = inlined_call_operand.vmem [shape: f32[1,32], index: 3, kind: input, shape index: {}]   ;;  %s3151_s4 = inlined_call_operand.hbm [shape: f32[4,16], index: 4, kind: input, shape index: {}]   ;;  %s3152_s5 = inlined_call_operand.hbm [shape: f32[1,16], index: 5, kind: input, shape index: {}]   ;;  %s3153_s6 = inlined_call_operand.vmem [shape: f32[16,48], index: 6, kind: input, shape index: {}]   ;;  %s3154_s7 = inlined_call_operand.hbm [shape: f32[1,16], index: 7, kind: input, shape index: {}]   ;;  %s3155_s8 = inlined_call_operand.hbm [shape: f32[16,16], index: 8, kind: input, shape index: {}]   ;;  %s3156_s9 = inlined_call_operand.hbm [shape: f32[1,16], index: 9, kind: input, shape index: {}]   ;;  %s3157_s10 = inlined_call_operand.vmem [shape: f32[16,32], index: 10, kind: input, shape index: {}]   ;;  %s3158_s11 = inlined_call_operand.vmem [shape: f32[1,32], index: 11, kind: input, shape index: {}]   ;;  %s3159_s12 = inlined_call_operand.hbm [shape: f32[2,32,32], index: 12, kind: output, shape index: {}]  }
   0x1   :  { %3170 = sst [smem:[#allocation30_spill]] %s3148_s1 }
   0x2   :  { %3171 = sst [smem:[#allocation31_spill]] %s3149_s2 }
   0x3   :  { %3172 = sst [smem:[#allocation32_spill]] %s3150_s3 }
   0x4   :  { %3173 = sst [smem:[#allocation33_spill]] %s3151_s4 }
   0x5   :  { %3174 = sst [smem:[#allocation34_spill]] %s3152_s5 }
   0x6   :  { %3175 = sst [smem:[#allocation35_spill]] %s3153_s6 }
   0x7   :  { %3176 = sst [smem:[#allocation36_spill]] %s3154_s7 }
   0x8   :  { %3177 = sst [smem:[#allocation37_spill]] %s3157_s10 }
   0x9   :  { %3178 = sst [smem:[#allocation38_spill]] %s3158_s11 }
   0xa   :  { %3179 = sst [smem:[#allocation39_spill]] %s3159_s12 }
   0xb   :  { %17 = vsyncpa [#allocation11], 0 }
   0xc   :  { %19 = vsyncpa [#allocation11 + $0x1], 0 }
   0xd   :  { %20 = vsyncpa [#allocation14], 0 }
   0xe   :  { %21 = vsyncpa [#allocation17], 0 }
   0xf   :  { %22 = vsyncpa [#allocation20], 0 }
  0x10   :  { %23 = vsyncpa [#allocation12], 0 }
  0x11   :  { %25 = vsyncpa [#allocation12 + $0x1], 0  ;;  %s2511_s21 = smov 0   ;;  %s2513_s22 = smov 0  }
  0x12   :  { %s2515_s23 = smov 0   ;;  %s2517_s24 = smov 0  }
  0x13   :  { %s2519_s25 = smov 0   ;;  %s2521_s26 = smov 0  }
  0x14   :  { %s2523_s27 = smov 0   ;;  %s2525_s28 = smov 0  }
  0x15 LB: > { %3180 = sst [smem:[#allocation28_spill]] %s2400_s24  ;;  %s3160_s29 = sadd.s32 4294967295, %s2416_s28   ;;  %s2416_s28 = sphi %s2525_s28, %s31_s28   ;;  %s2412_s27 = sphi %s2523_s27, %s3223_s27   ;;  %s2408_s26 = sphi %s2521_s26, %s3222_s26   ;;  %s2404_s25 = sphi %s2519_s25, %s3221_s25   ;;  %s2400_s24 = sphi %s2517_s24, %s3220_s24   ;;  %s2396_s23 = sphi %s2515_s23, %s3219_s23   ;;  %s2392_s22 = sphi %s2513_s22, %s3218_s22   ;;  %s2388_s21 = sphi %s2511_s21, %s3217_s21  }
  0x16   : > { %3181 = sst [smem:[#allocation29_spill]] %s2404_s25  ;;  %p1772_p0 = scmp.ge.s32.totalorder %s2416_s28, 1 }
  0x17   : > { %p2555_p1 = scmp.eq.s32.totalorder %s3160_s29, 0  ;;  %p335_p2 = scmp.lt.s32.totalorder %s2416_s28, 5 }
  0x18   : > { %s2430_s14 = smov [#allocation13]   ;;  %s2431_s17 = smov [#allocation16]  }
  0x19   : > { %s3182_s30 = scalar_select %p2555_p1, 1, 0 }
  0x1a   : > { %p2560_p3 = pnand %p1772_p0, %p335_p2  ;;  %s350_s15 = sshll.u32 %s2430_s14, 4  ;;  %s2564_s15 = int_to_ptr.vmem [resolvable:$true] %s350_s15 }
  0x1b   : > { %s378_s18 = sshll.u32 %s2431_s17, 4  ;;  %s2432_s19 = smov [#allocation19]   ;;  %s2574_s18 = int_to_ptr.vmem [resolvable:$true] %s378_s18 }
  0x1c   : > { %s3183_s13 = scalar_select %p2560_p3, 1, 0 }
  0x1d   : > { %p1896_p4 = pneg %p2560_p3  ;;  %s2576_s20 = sshll.u32 %s2432_s19, 4  ;;  %s403_s20 = int_to_ptr.vmem [resolvable:$true] %s2576_s20 }
  0x1e   : > { %s3185_s2 = sld [smem:[#allocation31_spill]] }
  0x1f   : > { %p2570_p5 = pnand %p1896_p4, %p2555_p1 }
  0x21   : > { %p2586_p7 = pneg %p2570_p5 }
  0x24   : > { %s2096_s14 = scalar_lea.hbm %s3185_s2, 512 }
  0x25   : > { %p2097_p6 = scmp.ne.s32.totalorder %s3185_s2, %s2096_s14  ;;  %p2103_p10 = scmp.lt.u32.totalorder %s2096_s14, %s3185_s2 }
  0x27   : > { %p2099_p8 = pnand %p2586_p7, %p2097_p6 }
  0x29   : > { %p2100_p9 = pneg %p2099_p8 }
  0x2b   : > { %p2105_p11 = pnand %p2103_p10, %p2100_p9 }
  0x2d   : > { %2108 = shalt.err (!%p2105_p11)
}
  0x2e   : > { %s2109_s10 = scalar_lea.vmem %s2564_s15, 512  ;;  %p2117_p2 = scmp.lt.s32.totalorder %s2564_s15, %s2564_s15 }
  0x2f   : > { %p2110_p12 = scmp.ne.s32.totalorder %s2564_s15, %s2109_s10  ;;  %p2118_p4 = scmp.lt.s32.totalorder %s2109_s10, %s2109_s10 }
  0x31   : > { %p2112_p13 = pnand %p2110_p12, %p2586_p7  ;;  %p2119_p6 = por %p2118_p4, %p2117_p2 }
  0x33   : > { %p2113_p0 = pneg %p2112_p13 }
  0x35   : > { %p2120_p8 = pnand %p2119_p6, %p2113_p0 }
  0x37   : > { %2123 = shalt.err (!%p2120_p8)
}
  0x38   : > { %s3167_s11 = smov 128   ;;  %s3168_s12 = smov 8  }
  0x39   : > { %1899 = dma.hbm_to_vmem [thread:$0]  (!%p2570_p5), %s3185_s2, 512, %s2564_s15, [#allocation14], %s3167_s11, %s3167_s11, %s3168_s12  }
  0x3a   : > { %s3187_s5 = sld [smem:[#allocation34_spill]] }
  0x40   : > { %s2124_s10 = scalar_lea.hbm %s3187_s5, 16 }
  0x41   : > { %p2125_p9 = scmp.ne.s32.totalorder %s3187_s5, %s2124_s10  ;;  %p2131_p12 = scmp.lt.u32.totalorder %s2124_s10, %s3187_s5 }
  0x43   : > { %p2127_p10 = pnand %p2125_p9, %p2586_p7 }
  0x45   : > { %p2128_p11 = pneg %p2127_p10 }
  0x47   : > { %p2133_p13 = pnand %p2131_p12, %p2128_p11 }
  0x49   : > { %2136 = shalt.err (!%p2133_p13)
}
  0x4a   : > { %s2137_s15 = scalar_lea.vmem %s2574_s18, 16  ;;  %s2144_s3 = scalar_lea.vmem %s2574_s18, 32 }
  0x4b   : > { %p2138_p0 = scmp.ne.s32.totalorder %s2574_s18, %s2137_s15  ;;  %p2145_p6 = scmp.lt.s32.totalorder %s2574_s18, %s2574_s18 }
  0x4c   : > { %p2146_p8 = scmp.lt.s32.totalorder %s2144_s3, %s2137_s15 }
  0x4d   : > { %p2140_p2 = pnand %p2138_p0, %p2586_p7 }
  0x4e   : > { %p2147_p9 = por %p2146_p8, %p2145_p6 }
  0x4f   : > { %p2141_p4 = pneg %p2140_p2 }
  0x51   : > { %p2148_p10 = pnand %p2147_p9, %p2141_p4 }
  0x53   : > { %2151 = shalt.err (!%p2148_p10)
}
  0x54   : > { %1905 = dma.hbm_to_vmem [thread:$0]  (!%p2570_p5), %s3187_s5, 16, %s2574_s18, [#allocation17]  }
  0x55   : > { %s2152_s14 = scalar_lea.hbm %s3155_s8, 256 }
  0x56   : > { %p2153_p11 = scmp.ne.s32.totalorder %s3155_s8, %s2152_s14  ;;  %p2159_p0 = scmp.lt.u32.totalorder %s2152_s14, %s3155_s8 }
  0x58   : > { %p2155_p12 = pnand %p2153_p11, %p2586_p7 }
  0x5a   : > { %p2156_p13 = pneg %p2155_p12 }
  0x5c   : > { %p2161_p2 = pnand %p2159_p0, %p2156_p13 }
  0x5e   : > { %2164 = shalt.err (!%p2161_p2)
}
  0x5f   : > { %s2165_s3 = scalar_lea.vmem %s403_s20, 256  ;;  %p2173_p9 = scmp.lt.s32.totalorder %s403_s20, %s403_s20 }
  0x60   : > { %p2166_p4 = scmp.ne.s32.totalorder %s403_s20, %s2165_s3  ;;  %p2174_p10 = scmp.lt.s32.totalorder %s2165_s3, %s2165_s3 }
  0x62   : > { %p2168_p6 = pnand %p2166_p4, %p2586_p7  ;;  %p2175_p3 = por %p2174_p10, %p2173_p9 }
  0x64   : > { %p2169_p8 = pneg %p2168_p6 }
  0x66   : > { %p2176_p1 = pnand %p2175_p3, %p2169_p8 }
  0x68   : > { %2179 = shalt.err (!%p2176_p1)
}
  0x69   : > { %1911 = dma.hbm_to_vmem [thread:$0]  (!%p2570_p5), %s3155_s8, 256, %s403_s20, [#allocation20], %s3167_s11, %s3167_s11, %s3168_s12  }
  0x6a   : > { %s2435_s6 = smov [#allocation15]   ;;  %s2436_s29 = smov [#allocation18]  }
  0x6b   : > { %s367_s24 = sshll.u32 %s2435_s6, 4  ;;  %s392_s14 = sshll.u32 %s2436_s29, 4  ;;  %s368_s24 = int_to_ptr.vmem [resolvable:$true] %s367_s24  ;;  %s393_s14 = int_to_ptr.vmem [resolvable:$true] %s392_s14 }
  0x6c   : > { %s3188_s4 = sld [smem:[#allocation33_spill]] }
  0x72   : > { %s2180_s10 = scalar_lea.hbm %s3188_s4, 64 }
  0x73   : > { %p2181_p1 = scmp.ne.s32.totalorder %s3188_s4, %s2180_s10  ;;  %p2187_p12 = scmp.lt.u32.totalorder %s2180_s10, %s3188_s4 }
  0x75   : > { %p2183_p3 = pnand %p2181_p1, %p2586_p7 }
  0x77   : > { %p2184_p11 = pneg %p2183_p3 }
  0x79   : > { %p2189_p13 = pnand %p2187_p12, %p2184_p11 }
  0x7b   : > { %2192 = shalt.err (!%p2189_p13)
}
  0x7c   : > { %s2193_s20 = scalar_lea.vmem %s368_s24, 64  ;;  %p2201_p6 = scmp.lt.s32.totalorder %s368_s24, %s368_s24 }
  0x7d   : > { %p2194_p0 = scmp.ne.s32.totalorder %s368_s24, %s2193_s20  ;;  %p2202_p8 = scmp.lt.s32.totalorder %s2193_s20, %s2193_s20 }
  0x7f   : > { %p2196_p2 = pnand %p2194_p0, %p2586_p7  ;;  %p2203_p9 = por %p2202_p8, %p2201_p6 }
  0x81   : > { %p2197_p4 = pneg %p2196_p2 }
  0x83   : > { %p2204_p10 = pnand %p2203_p9, %p2197_p4 }
  0x85   : > { %2207 = shalt.err (!%p2204_p10)
}
  0x86   : > { %1902 = dma.hbm_to_vmem [thread:$0]  (!%p2570_p5), %s3188_s4, 64, %s368_s24, [#allocation14]  }
  0x87   : > { %s3189_s7 = sld [smem:[#allocation36_spill]] }
  0x8d   : > { %s2208_s17 = scalar_lea.hbm %s3189_s7, 16 }
  0x8e   : > { %p2209_p1 = scmp.ne.s32.totalorder %s3189_s7, %s2208_s17  ;;  %p2215_p12 = scmp.lt.u32.totalorder %s2208_s17, %s3189_s7 }
  0x90   : > { %p2211_p3 = pnand %p2209_p1, %p2586_p7 }
  0x92   : > { %p2212_p11 = pneg %p2211_p3 }
  0x94   : > { %p2217_p13 = pnand %p2215_p12, %p2212_p11 }
  0x96   : > { %2220 = shalt.err (!%p2217_p13)
}
  0x97   : > { %s2221_s18 = scalar_lea.vmem %s393_s14, 16  ;;  %s2228_s24 = scalar_lea.vmem %s393_s14, 32 }
  0x98   : > { %p2222_p0 = scmp.ne.s32.totalorder %s393_s14, %s2221_s18  ;;  %p2229_p6 = scmp.lt.s32.totalorder %s393_s14, %s393_s14 }
  0x99   : > { %p2230_p8 = scmp.lt.s32.totalorder %s2228_s24, %s2221_s18 }
  0x9a   : > { %p2224_p2 = pnand %p2222_p0, %p2586_p7 }
  0x9b   : > { %p2231_p9 = por %p2230_p8, %p2229_p6 }
  0x9c   : > { %p2225_p4 = pneg %p2224_p2 }
  0x9e   : > { %p2232_p10 = pnand %p2231_p9, %p2225_p4 }
  0xa0   : > { %2235 = shalt.err (!%p2232_p10)
}
  0xa1   : > { %1908 = dma.hbm_to_vmem [thread:$0]  (!%p2570_p5), %s3189_s7, 16, %s393_s14, [#allocation17]  }
  0xa2   : > { %s2437_s6 = smov [#allocation21]   ;;  %s2236_s19 = scalar_lea.hbm %s3156_s9, 16 }
  0xa3   : > { %s416_s2 = sshll.u32 %s2437_s6, 4  ;;  %p2237_p1 = scmp.ne.s32.totalorder %s3156_s9, %s2236_s19  ;;  %s417_s2 = int_to_ptr.vmem [resolvable:$true] %s416_s2 }
  0xa4   : > { %p2243_p12 = scmp.lt.u32.totalorder %s2236_s19, %s3156_s9 }
  0xa5   : > { %p2239_p3 = pnand %p2237_p1, %p2586_p7 }
  0xa7   : > { %p2240_p11 = pneg %p2239_p3 }
  0xa9   : > { %p2245_p13 = pnand %p2243_p12, %p2240_p11 }
  0xab   : > { %2248 = shalt.err (!%p2245_p13)
}
  0xac   : > { %s2249_s14 = scalar_lea.vmem %s417_s2, 16  ;;  %s2256_s24 = scalar_lea.vmem %s417_s2, 32 }
  0xad   : > { %p2250_p0 = scmp.ne.s32.totalorder %s417_s2, %s2249_s14  ;;  %p2257_p6 = scmp.lt.s32.totalorder %s417_s2, %s417_s2 }
  0xae   : > { %p2258_p8 = scmp.lt.s32.totalorder %s2256_s24, %s2249_s14 }
  0xaf   : > { %p2252_p2 = pnand %p2250_p0, %p2586_p7 }
  0xb0   : > { %p2259_p9 = por %p2258_p8, %p2257_p6 }
  0xb1   : > { %p2253_p4 = pneg %p2252_p2 }
  0xb3   : > { %p2260_p10 = pnand %p2259_p9, %p2253_p4 }
  0xb5   : > { %2263 = shalt.err (!%p2260_p10)
}
  0xb6   : > { %1914 = dma.hbm_to_vmem [thread:$0]  (!%p2570_p5), %s3156_s9, 16, %s417_s2, [#allocation20]  }
  0xb7   : > { %s1771_s25 = sadd.s32 4294967294, %s2416_s28   ;;  %s40_s6 = sadd.s32 1, %s2408_s26 }
  0xb8   : > { %p41_p7 = scmp.ge.s32.totalorder %s40_s6, 2  ;;  %s43_s16 = sadd.s32 1, %s2412_s27 }
  0xb9   : > { %s52_s29 = sadd.s32 1, %s2396_s23  ;;  %p59_p1 = scmp.ne.s32.totalorder %s2396_s23, %s2392_s22 }
  0xba   : > { %s3225_s6 = smov (%p41_p7, %s40_s6), 0  ;;  %s3227_s16 = smov (!%p41_p7, %s43_s16), %s2412_s27 }
  0xbb   : > { %s48_s17 = ssub.s32 %s2408_s26, %s3225_s6  ;;  %p60_p3 = scmp.eq.s32.totalorder %s2416_s28, 0 }
  0xbc   : > { %p45_p11 = scmp.ge.s32.totalorder %s3227_s16, 2  ;;  %p65_p5 = scmp.ne.s32.totalorder %s2392_s22, %s2388_s21 }
  0xbd   : > { %p2724_p12 = por %p60_p3, %p59_p1  ;;  %s3191_s19 = sadd.s32 4294967295, %s2416_s28  }
  0xbe   : > { %p322_p13 = scmp.eq.s32.totalorder %s3191_s19, 3  ;;  %s3229_s16 = smov (%p45_p11, %s3227_s16), 0 }
  0xbf   : > { %p3192_p0 = scmp.ne.s32.totalorder %s3182_s30, 0  ;;  %s47_s3 = ssub.s32 %s2412_s27, %s3229_s16 }
  0xc0   : > { %p2738_p4 = por %p322_p13, %p59_p1  ;;  %p328_p6 = scmp.eq.s32.totalorder %s1771_s25, 3 }
  0xc1   : > { %p2734_p2 = por %p3192_p0, %p65_p5  ;;  %s49_s18 = sor.u32 %s48_s17, %s47_s3 }
  0xc2   : > { %s3194_s15 = scalar_select %p2738_p4, 1, 0 }
  0xc3   : > { %p1929_p8 = scmp.lt.s32.totalorder %s2416_s28, 4  ;;  %p50_p9 = scmp.eq.s32.totalorder %s49_s18, 0 }
  0xc4   : > { %p2745_p10 = por %p328_p6, %p65_p5  ;;  %s433_s24 = sand.u32 1, %s2396_s23  }
  0xc5   : > { %s1781_s20 = sshll.u32 %s2408_s26, 1  ;;  %s1780_s19 = sshll.u32 %s433_s24, 4 }
  0xc6   : > { %s3195_s14 = scalar_select %p2745_p10, 1, 0 }
  0xc7   : > { %s2752_s1 = scalar_select %p50_p9, %s2396_s23, %s52_s29  }
  0xc8   : > { %s1782_s11 = sshll.u32 %s2412_s27, 2  ;;  %s437_s4 = scalar_lea.vmem [#allocation10], %s1780_s19 }
  0xc9   : > { %s443_s12 = sadd.s32 %s1782_s11, %s1781_s20  ;;  %s446_s5 = sshll.u32 %s437_s4, 4  ;;  %s2755_s5 = int_to_ptr.vmem [resolvable:$true] %s446_s5 }
  0xca   : > { %s1783_s7 = sshll.u32 %s443_s12, 7  ;;  %p2766_p7 = pnand %p1929_p8, %p2724_p12 }
  0xcb   : > { %s2760_s3 = scalar_lea.hbm %s3147_s0, %s1783_s7  ;;  %s2770_s4 = scalar_lea.sflag [#allocation11], %s433_s24 }
  0xcc   : > { %s2264_s11 = scalar_lea.hbm %s2760_s3, 256  ;;  %p2266_p3 = pneg %p2766_p7 }
  0xcd   : > { %p2265_p1 = scmp.ne.s32.totalorder %s2760_s3, %s2264_s11  ;;  %s2269_s2 = scalar_lea.hbm %s3147_s0, 1024 }
  0xce   : > { %p2270_p12 = scmp.lt.u32.totalorder %s2760_s3, %s3147_s0  ;;  %p2271_p13 = scmp.lt.u32.totalorder %s2269_s2, %s2264_s11 }
  0xcf   : > { %p2267_p11 = pnand %p2266_p3, %p2265_p1  ;;  %p2273_p6 = scmp.lt.u32.totalorder %s2264_s11, %s2760_s3 }
  0xd0   : > { %p2272_p0 = por %p2271_p13, %p2270_p12 }
  0xd1   : > { %p2268_p5 = pneg %p2267_p11 }
  0xd2   : > { %p2274_p8 = por %p2273_p6, %p2272_p0 }
  0xd4   : > { %p2275_p9 = pnand %p2274_p8, %p2268_p5 }
  0xd6   : > { %2278 = shalt.err (!%p2275_p9)
}
  0xd7   : > { %s2279_s24 = scalar_lea.vmem %s2755_s5, 256  ;;  %s2438_s19 = smov [#allocation10]  }
  0xd8   : > { %p2280_p1 = scmp.ne.s32.totalorder %s2755_s5, %s2279_s24  ;;  %s2284_s25 = sshll.u32 %s2438_s19, 4  ;;  %s2285_s25 = int_to_ptr.vmem [resolvable:$false] %s2284_s25 }
  0xd9   : > { %s2286_s17 = scalar_lea.vmem %s2285_s25, 512  ;;  %p2287_p4 = scmp.lt.s32.totalorder %s2755_s5, %s2285_s25 }
  0xda   : > { %p2282_p11 = pnand %p2280_p1, %p2266_p3  ;;  %p2288_p12 = scmp.lt.s32.totalorder %s2286_s17, %s2279_s24 }
  0xdc   : > { %p2283_p10 = pneg %p2282_p11  ;;  %p2289_p13 = por %p2288_p12, %p2287_p4 }
  0xde   : > { %p2290_p0 = pnand %p2289_p13, %p2283_p10 }
  0xe0   : > { %2293 = shalt.err (!%p2290_p0)
}
  0xe1   : > { %s3197_s11 = smov 8   ;;  %s3198_s7 = smov 128  }
  0xe2   : > { %1918 = dma.hbm_to_vmem [thread:$0]  (!%p2766_p7), %s2760_s3, 256, %s2755_s5, %s2770_s4, %s3198_s7, %s3198_s7, %s3197_s11  }
  0xe3   : > { %p3199_p3 = scmp.ne.s32.totalorder %s3183_s13, 0 }
  0xe4   : > { %s2804_s12 = sand.u32 (!%p3199_p3), 1, %s2392_s22  }
  0xe5   : > { %458 = sbr.rel (%p3199_p3) target bundleno = 1466 (0x5ba), region = 68  ;;  %s1785_s2 = sshll.u32 (!%p3199_p3), %s2804_s12, 4 }
  0xe6   : > { %s461_s18 = scalar_lea.sflag (!%p3199_p3), [#allocation11], %s2804_s12  ;;  %s464_s20 = scalar_lea.vmem (!%p3199_p3), [#allocation10], %s1785_s2 }
  0xec   : > { %2367 = dma.done.wait (%p2734_p2), %s461_s18, 256  }
  0xed   : > { %2369 = vsyncadd (%p2734_p2), %s461_s18, 4294967040  ;;  %p3200_p4 = scmp.ne.s32.totalorder %s3182_s30, 0 }
  0xef   : > { %2371 = dma.done.wait (%p3200_p4), [#allocation14], 576  }
  0xf0   : > { %2373 = vsyncadd (%p3200_p4), [#allocation14], 4294966720 }
  0xf1   : > { %2375 = dma.done.wait (%p3200_p4), [#allocation17], 32  }
  0xf2   : > { %2377 = vsyncadd (%p3200_p4), [#allocation17], 4294967264 }
  0xf3   : > { %2379 = dma.done.wait (%p3200_p4), [#allocation20], 272  }
  0xf4   : > { %2381 = vsyncadd (%p3200_p4), [#allocation20], 4294967024  ;;  %s2824_s5 = scalar_lea.vmem [#allocation22], %s1785_s2  ;;  %s3201_s13 = sld [smem:[#allocation28_spill]] }
  0xfa   : > { %p1793_p2 = scmp.ne.s32.totalorder %s3201_s13, 0 }
  0xfb   : > { %vm535_vm0 = vcmask (!%p1793_p2), 130048   ;;  %v2439_v0 = vmov (!%p1793_p2), 0.0  }
  0xfc   : > { %534 = sbr.rel (%p1793_p2) target bundleno = 259 (0x103), region = 100  ;;  %536 = vst.msk [vmem:[#allocation8] sm:$0xff] (!%p1793_p2), %vm535_vm0, %v2439_v0  ;;  %537 = vst.msk [vmem:[#allocation8 + $0x8] sm:$0xff] (!%p1793_p2), %vm535_vm0, %v2439_v0 }
  0xfd   : > { %538 = vst.msk [vmem:[#allocation9] sm:$0xff] (!%p1793_p2), %vm535_vm0, %v2439_v0 }
 0x103 PF: > { %v539_v1 = vld [vmem:[%s464_s20] sm:$0xff]  ;;  %vm544_vm1 = vcmask 261120   ;;  %v540_v2 = vld [vmem:[%s464_s20 + $0x8] sm:$0xff]  ;;  %s3202_s3 = sld [smem:[#allocation30_spill]]  ;;  %s3203_s24 = sld [smem:[#allocation35_spill]]  ;;  %v674_v29 = vlaneseq  ;;  %vm668_vm2 = vcmask 130048  }
 0x104   : > { %v542_v3 = vmul.f32 %v539_v1, %v539_v1  ;;  %v543_v4 = vmul.f32 %v540_v2, %v540_v2  ;;  %v568_v7 = vld [vmem:[#allocation13] sm:$0xff]  ;;  %v569_v8 = vld [vmem:[#allocation13 + $0x8] sm:$0xff]  ;;  %v570_v9 = vld [vmem:[#allocation13 + $0x10] sm:$0xff]  ;;  %s3205_s2 = sld [smem:[#allocation32_spill]]  ;;  %s2440_s18 = smov 112   ;;  %vm690_vm3 = vcmask 1042432  }
 0x105   : > { %v1852_v10 = vpack.c.bf16 %v569_v8, %v568_v7  ;;  %v571_v11 = vld [vmem:[#allocation13 + $0x18] sm:$0xff]  ;;  %v2846_v30 = vshrl.u32 %v674_v29, 7  ;;  %v673_v32 = vld [vmem:[#allocation15] sm:$0xf]  ;;  %vm710_vm4 = vcmask 1041408   ;;  %vm730_vm5 = vcmask 1040384  }
 0x106   : > { %v545_v5 = vsel %vm544_vm1, %v542_v3, 0.0  ;;  %v548_v6 = vsel %vm544_vm1, %v543_v4, 0.0  ;;  %v1856_v12 = vpack.c.bf16 %v571_v11, %v570_v9  ;;  %v671_v37 = vld [vmem:[#allocation9] sm:$0xff]  ;;  %s2441_s20 = smov 96   ;;  %s2900_s13 = smov 0  }
 0x107   : > { %546 = vadd.xlane.f32.xlu0 %v545_v5  ;;  %1853 = vmatprep.subr.bf16.mxu0 %v1852_v10  ;;  %v2849_v31 = vsub.s32 0, %v2846_v30  ;;  %v2852_v33 = vsub.s32 1, %v2846_v30  ;;  %v2856_v35 = vsub.s32 2, %v2846_v30  ;;  %v2863_v39 = vsub.s32 3, %v2846_v30 }
 0x108   : > { %1855 = vmatpush3.bf16.msra.mxu0 %v1852_v10 }
 0x109   : > { %1857 = vmatprep.subr.bf16.mxu0 %v1856_v12  ;;  %v1794_v20 = vld [vmem:[%s3202_s3] ss:$0 sm:$0xff]  ;;  %s3204_s19 = smov %s3203_s24  ;;  %v683_v34 = vrot.slane %v673_v32, %v2849_v31  ;;  %v703_v36 = vrot.slane %v673_v32, %v2852_v33  ;;  %v723_v41 = vrot.slane %v673_v32, %v2856_v35  ;;  %v677_v47 = vrot.slane %v673_v32, %v2863_v39 }
 0x10a   : > { %v763_v26 = vld [vmem:[%s3203_s24] sm:$0xff]  ;;  %v764_v27 = vld [vmem:[%s3204_s19 + $0x8] sm:$0xff] }
 0x10b   : > { %549 = vadd.xlane.f32.xlu0 %v548_v6  ;;  %v1860_v28 = vpack.c.bf16 %v764_v27, %v763_v26  ;;  %v1795_v38 = vld [vmem:[%s3205_s2] ss:$0 sm:$0xff]  ;;  %v684_v40 = vmul.f32 %v683_v34, %v671_v37  ;;  %v704_v42 = vmul.f32 %v703_v36, %v671_v37  ;;  %v724_v49 = vmul.f32 %v723_v41, %v671_v37 }
 0x10c   : > { %1859 = vmatpush3.bf16.msra.mxu0 %v1856_v12  ;;  %v1798_v12 = vld [vmem:[#allocation16] ss:$0 sm:$0xff]  ;;  %v893_v37 = vld [vmem:[#allocation19] sm:$0xff] }
 0x10d   : > { %1861 = vmatprep.subr.bf16.mxu1 %v1860_v28  ;;  %v691_v48 = vrot.slane %v684_v40, 5  ;;  %v711_v52 = vrot.slane %v704_v42, 6  ;;  %v731_v4 = vrot.slane %v724_v49, 7  ;;  %v895_v40 = vmul.f32 1.442695, %v893_v37 }
 0x10e   : > { %1863 = vmatpush3.bf16.msra.mxu1 %v1860_v28 }
 0x194   : > { %v547_v13 = vpop.xlane.xlu0 %546 }
 0x195   : > { %v552_v14 = vmul.f32 0.03125, %v547_v13 }
 0x197   : > { %v554_v15 = vadd.f32 1e-06, %v552_v14 }
 0x198   : > { %v550_v16 = vpop.xlane.xlu0 %549 }
 0x199   : > { %2039 = vrsqrt.f32 %v554_v15  ;;  %v553_v17 = vmul.f32 0.03125, %v550_v16 }
 0x19b   : > { %v555_v18 = vadd.f32 1e-06, %v553_v17 }
 0x19d   : > { %2041 = vrsqrt.f32 %v555_v18 }
 0x1a3   : > { %v2040_v19 = vpop.eup %2039 }
 0x1a4   : > { %v558_v21 = vmul.f32 %v2040_v19, %v539_v1 }
 0x1a6   : > { %v2832_v22 = vmul.f32 %v1794_v20, %v558_v21 }
 0x1a7   : > { %v2042_v23 = vpop.eup %2041 }
 0x1a8   : > { %v559_v24 = vmul.f32 %v2042_v23, %v540_v2  ;;  %1835 = vmatprep.mubr.msk.f32.mxu0 %vm544_vm1, %v2832_v22 }
 0x1aa   : > { %v2836_v25 = vmul.f32 %v1794_v20, %v559_v24 }
 0x1ac   : > { %1836 = vmatmul.mubr.msk.f32.vlgmr.msra.gmra.mrb[0].mxu0 %vm544_vm1, %v2836_v25 }
 0x27f   : > { %v1837_v43 = vpop.f32.mrb[0].mxu0 }
 0x280   : > { %v657_v44 = vadd.f32 %v1837_v43, %v1795_v38  ;;  %v651_v45 = vpop.f32.mrb[1].mxu0  ;;  %v2882_v43 = vld [vmem:[#allocation21] ss:$0 sm:$0xff] }
 0x281   : > { %v652_v46 = vadd.f32 %v1795_v38, %v651_v45  ;;  %v894_v38 = vld [vmem:[#allocation19 + $0x8] sm:$0xff] }
 0x282   : > { %664 = vrot.lane.b32.xlu1 %v657_v44, %s2440_s18  ;;  %672 = vst.msk [vmem:[#allocation9] sm:$0xff] %vm668_vm2, %v657_v44  ;;  %v686_v50 = vmul.f32 %v683_v34, %v657_v44  ;;  %v706_v51 = vmul.f32 %v703_v36, %v657_v44  ;;  %v726_v53 = vmul.f32 %v723_v41, %v657_v44  ;;  %v903_v45 = vld [vmem:[#allocation8 + $0x8] sm:$0xff]  }
 0x283   : > { %v685_v54 = vmul.f32 %v683_v34, %v652_v46  ;;  %v705_v55 = vmul.f32 %v703_v36, %v652_v46  ;;  %v725_v56 = vmul.f32 %v723_v41, %v652_v46  ;;  %v678_v63 = vmul.f32 %v677_v47, %v652_v46 }
 0x284   : > { %v694_v57 = vrot.slane %v686_v50, 5  ;;  %v714_v58 = vrot.slane %v706_v51, 6  ;;  %v734_v59 = vrot.slane %v726_v53, 7  ;;  %v679_v0 = vmul.f32 %v677_v47, %v657_v44  ;;  %v902_v44 = vld [vmem:[#allocation8] sm:$0xff]  }
 0x285   : > { %v692_v60 = vrot.slane %v685_v54, 5  ;;  %v712_v61 = vrot.slane %v705_v55, 6  ;;  %v732_v62 = vrot.slane %v725_v56, 7  ;;  %v897_v41 = vmul.f32 1.442695, %v894_v38 }
 0x286   : > { %662 = vrot.lane.b32.xlu1 %v652_v46, %s2440_s18 }
 0x287   : > { %v693_v1 = vsel %vm690_vm3, %v691_v48, %v692_v60  ;;  %v695_v2 = vsel %vm690_vm3, %v692_v60, %v694_v57  ;;  %v715_v3 = vsel %vm710_vm4, %v712_v61, %v714_v58  ;;  %v735_v7 = vsel %vm730_vm5, %v732_v62, %v734_v59  ;;  %v1801_v48 = vld [vmem:[#allocation18] ss:$0 sm:$0xff] }
 0x288   : > { %v698_v5 = vadd.f32 %v693_v1, %v678_v63  ;;  %v699_v6 = vadd.f32 %v695_v2, %v679_v0  ;;  %v713_v8 = vsel %vm710_vm4, %v711_v52, %v712_v61  ;;  %v733_v11 = vsel %vm730_vm5, %v731_v4, %v732_v62 }
 0x28a   : > { %v718_v9 = vadd.f32 %v713_v8, %v698_v5  ;;  %v719_v10 = vadd.f32 %v715_v3, %v699_v6 }
 0x28c   : > { %v738_v13 = vadd.f32 %v733_v11, %v718_v9  ;;  %v739_v14 = vadd.f32 %v735_v7, %v719_v10 }
 0x28e   : > { %v747_v15 = vadd.f32 %v1798_v12, %v738_v13  ;;  %v748_v16 = vadd.f32 %v1798_v12, %v739_v14 }
 0x290   : > { %v749_v17 = vsub.f32 0.0, %v747_v15  ;;  %v750_v18 = vsub.f32 0.0, %v748_v16 }
 0x292   : > { %v751_v19 = vmul.f32 1.442695, %v749_v17  ;;  %v753_v20 = vmul.f32 1.442695, %v750_v18 }
 0x294   : > { %2043 = vpow2.f32 %v751_v19 }
 0x295   : > { %2045 = vpow2.f32 %v753_v20 }
 0x29e   : > { %v2044_v21 = vpop.eup %2043 }
 0x29f   : > { %v2046_v23 = vpop.eup %2045  ;;  %v755_v24 = vadd.f32 1.0, %v2044_v21 }
 0x2a0   : > { %v756_v26 = vadd.f32 1.0, %v2046_v23 }
 0x2a1   : > { %2047 = vrcp.f32 %v755_v24 }
 0x2a2   : > { %2049 = vrcp.f32 %v756_v26 }
 0x2a3   : > { %2051 = vpow2.f32 %v895_v40 }
 0x2a4   : > { %2053 = vpow2.f32 %v897_v41 }
 0x2ab   : > { %v2048_v27 = vpop.eup %2047 }
 0x2ac   : > { %v2050_v28 = vpop.eup %2049  ;;  %v759_v29 = vmul.f32 %v2048_v27, %v747_v15 }
 0x2ad   : > { %v760_v32 = vmul.f32 %v2050_v28, %v748_v16  ;;  %v2052_v42 = vpop.eup %2051 }
 0x2ae   : > { %761 = vst.msk [vmem:[#allocation3] sm:$0xff] %vm668_vm2, %v759_v29  ;;  %1842 = vmatprep.mubr.msk.f32.mxu1 %vm668_vm2, %v759_v29  ;;  %v2054_v46 = vpop.eup %2053  ;;  %v2884_v47 = vsub.f32 0.0, %v2052_v42 }
 0x2af   : > { %762 = vst.msk [vmem:[#allocation3 + $0x8] sm:$0xff] %vm668_vm2, %v760_v32  ;;  %1843 = vmatmul.mubr.msk.f32.vlgmr.msra.gmra.mrb[0].mxu1 %vm668_vm2, %v760_v32  ;;  %v2886_v49 = vsub.f32 0.0, %v2054_v46 }
 0x2f4   : > { %v665_v34 = vpop.permute.xlu1 %664 }
 0x2f5   : > { %670 = vst.msk [vmem:[#allocation4 + $0x8] sm:$0xff] %vm668_vm2, %v665_v34 }
 0x2f8   : > { %v663_v36 = vpop.permute.xlu1 %662 }
 0x2f9   : > { %669 = vst.msk [vmem:[#allocation4] sm:$0xff] %vm668_vm2, %v663_v36 }
 0x382   : > { %v1844_v50 = vpop.f32.mrb[0].mxu1 }
 0x383   : > { %879 = vrot.lane.b32.xlu1 %v1844_v50, %s2440_s18  ;;  %v837_v51 = vpop.f32.mrb[1].mxu1  ;;  %v854_v52 = vadd.f32 %v1844_v50, %v1801_v48 }
 0x384   : > { %v853_v53 = vadd.f32 %v1801_v48, %v837_v51  ;;  %877 = vrot.lane.b32.xlu0 %v837_v51, %s2440_s18 }
 0x385   : > { %v858_v54 = vand.u32 2147483647, %v854_v52  ;;  %v856_v2 = vmax.f32 %v854_v52, 0.0 }
 0x386   : > { %v857_v55 = vand.u32 2147483647, %v853_v53  ;;  %v855_v4 = vmax.f32 %v853_v53, 0.0 }
 0x387   : > { %v860_v56 = vsub.f32 0.0, %v858_v54  ;;  %885 = vrot.lane.b32.xlu1 %v837_v51, %s2441_s20 }
 0x388   : > { %v859_v57 = vsub.f32 0.0, %v857_v55 }
 0x389   : > { %v863_v58 = vmul.f32 1.442695, %v860_v56 }
 0x38a   : > { %v861_v59 = vmul.f32 1.442695, %v859_v57 }
 0x38b   : > { %2055 = vpow2.f32 %v863_v58  ;;  %887 = vrot.lane.b32.xlu1 %v1844_v50, %s2441_s20 }
 0x38c   : > { %2057 = vpow2.f32 %v861_v59 }
 0x395   : > { %v2056_v60 = vpop.eup %2055 }
 0x396   : > { %v2058_v61 = vpop.eup %2057  ;;  %v866_v62 = vadd.f32 1.0, %v2056_v60 }
 0x397   : > { %v865_v63 = vadd.f32 1.0, %v2058_v61 }
 0x398   : > { %2059 = vlog2.f32 %v866_v62 }
 0x399   : > { %2061 = vlog2.f32 %v865_v63 }
 0x3a2   : > { %v2060_v0 = vpop.eup %2059 }
 0x3a3   : > { %v2062_v1 = vpop.eup %2061  ;;  %v870_v3 = vmul.f32 0.6931472, %v2060_v0 }
 0x3a4   : > { %v868_v5 = vmul.f32 0.6931472, %v2062_v1 }
 0x3a5   : > { %v872_v6 = vadd.f32 %v870_v3, %v856_v2 }
 0x3a6   : > { %v871_v7 = vadd.f32 %v868_v5, %v855_v4 }
 0x3a7   : > { %874 = vst.msk [vmem:[#allocation2 + $0x8] sm:$0xff] %vm668_vm2, %v872_v6 }
 0x3a8   : > { %873 = vst.msk [vmem:[#allocation2] sm:$0xff] %vm668_vm2, %v871_v7 }
 0x3f5   : > { %v880_v8 = vpop.permute.xlu1 %879 }
 0x3f6   : > { %884 = vst.msk [vmem:[#allocation5 + $0x8] sm:$0xff] %vm668_vm2, %v880_v8  ;;  %v878_v9 = vpop.permute.xlu0 %877 }
 0x3f7   : > { %883 = vst.msk [vmem:[#allocation5] sm:$0xff] %vm668_vm2, %v878_v9 }
 0x3f9   : > { %v886_v10 = vpop.permute.xlu1 %885 }
 0x3fa   : > { %891 = vst.msk [vmem:[#allocation6] sm:$0xff] %vm668_vm2, %v886_v10 }
 0x3fd   : > { %v888_v11 = vpop.permute.xlu1 %887 }
 0x3fe   : > { %892 = vst.msk [vmem:[#allocation6 + $0x8] sm:$0xff] %vm668_vm2, %v888_v11 }
 0x3ff LB: >> { %s2912_s30 = sshll.u32 %s2428_s13, 3  ;;  %v1158_v17 = vsub.s32 4, %v2846_v30  ;;  %v1169_v19 = vsub.s32 5, %v2846_v30  ;;  %v1180_v21 = vsub.s32 6, %v2846_v30  ;;  %v1191_v29 = vsub.s32 7, %v2846_v30  ;;  %s909_s13 = sadd.s32 1, %s2428_s13   ;;  %s2428_s13 = sphi %s2900_s13, %s909_s13   ;;  %v2424_v44 = vphi %v902_v44, %v3209_v44   ;;  %v2420_v45 = vphi %v903_v45, %v3208_v45  }
 0x400   : >> { %s919_s10 = scalar_lea.vmem [#allocation5], %s2912_s30  ;;  %s921_s3 = scalar_lea.vmem [#allocation6], %s2912_s30  ;;  %v2442_v41 = vmov 1966171168   ;;  %vm1467_vm6 = vcmask 1043456   ;;  %vm1469_vm7 = vcmask 1044480  }
 0x401   : >> { %v920_v12 = vld [vmem:[%s919_s10] sm:$0xff]  ;;  %v926_v42 = vunpack.c.l.s4 %v2442_v41  ;;  %s913_s29 = scalar_lea.vmem [#allocation2], %s2912_s30  ;;  %s915_s4 = scalar_lea.vmem [#allocation3], %s2912_s30  ;;  %vm1471_vm8 = vcmask 1045504   ;;  %vm1473_vm9 = vcmask 1046528  }
 0x402   : >> { %v1126_v13 = vrot.slane %v920_v12, %v2852_v33  ;;  %v1115_v14 = vrot.slane %v920_v12, %v2849_v31  ;;  %v1137_v15 = vrot.slane %v920_v12, %v2856_v35  ;;  %v1148_v16 = vrot.slane %v920_v12, %v2863_v39  ;;  %v914_v50 = vld [vmem:[%s913_s29] sm:$0xff]  ;;  %s917_s24 = scalar_lea.vmem [#allocation4], %s2912_s30  ;;  %s1484_s25 = scalar_lea.vmem [#allocation7], %s2912_s30 }
 0x403   : >> { %v1159_v18 = vrot.slane %v920_v12, %v1158_v17  ;;  %v1170_v20 = vrot.slane %v920_v12, %v1169_v19  ;;  %v1181_v23 = vrot.slane %v920_v12, %v1180_v21  ;;  %v1192_v32 = vrot.slane %v920_v12, %v1191_v29  ;;  %v2939_v58 = vld [vmem:[%s915_s4] sm:$0xff]  ;;  %p906_p10 = scmp.ge.s32.totalorder %s909_s13, 2  }
 0x404   : >> { %1128 = vbcast.lane.b32.xlu1 %v1126_v13, 256  ;;  %1117 = vbcast.lane.b32.xlu0 %v1115_v14, 256  ;;  %v927_v46 = vunpack.c.0.s8 %v926_v42  ;;  %v2943_v62 = vmul.f32 %v2939_v58, %v914_v50  ;;  %v924_v8 = vcombine.high %v914_v50, %v914_v50  ;;  %s3210_s17 = sld [smem:[#allocation28_spill]] (%p906_p10)  ;;  %s3211_s11 = sld [smem:[#allocation29_spill]] (%p906_p10) }
 0x405   : >> { %v922_v24 = vld [vmem:[%s921_s3] sm:$0xff]  ;;  %s3212_s18 = sld [smem:[#allocation37_spill]] (%p906_p10)  ;;  %s1600_s7 = sshll.u32 (%p906_p10), %s2824_s5, 4  ;;  %s3088_s7 = int_to_ptr.vmem [resolvable:$true] %s1600_s7 }
 0x406   : >> { %v1259_v26 = vrot.slane %v922_v24, %v2849_v31  ;;  %v1270_v27 = vrot.slane %v922_v24, %v2852_v33  ;;  %v1281_v28 = vrot.slane %v922_v24, %v2856_v35  ;;  %v1292_v34 = vrot.slane %v922_v24, %v2863_v39  ;;  %s3214_s30 = sld [smem:[#allocation39_spill]] (%p906_p10)  ;;  %p3215_p5 = scmp.ne.s32.totalorder (%p906_p10), %s3194_s15, 0 }
 0x407   : >> { %v1303_v36 = vrot.slane %v922_v24, %v1158_v17  ;;  %v1314_v37 = vrot.slane %v922_v24, %v1169_v19  ;;  %v1325_v38 = vrot.slane %v922_v24, %v1180_v21  ;;  %v1336_v40 = vrot.slane %v922_v24, %v1191_v29 }
 0x408   : >> { %1132 = vbcast.lane.b32.xlu1 %v1126_v13, 264  ;;  %1121 = vbcast.lane.b32.xlu0 %v1115_v14, 264  ;;  %v2929_v48 = vsub.s32 %v927_v46, %v2846_v30 }
 0x40a   : >> { %v931_v51 = vrot.slane %v914_v50, %v2929_v48  ;;  %v1070_v2 = vrot.slane %v2943_v62, %v2929_v48  ;;  %v938_v17 = vrot.slane %v924_v8, %v2929_v48  ;;  %s1808_s13 = sshll.u32 (%p906_p10), %s3210_s17, 1  ;;  %s1809_s10 = sshll.u32 (%p906_p10), %s3211_s11, 2 }
 0x40b   : > { %s1597_s3 = sadd.s32 (%p906_p10), %s1809_s10, %s1808_s13  ;;  %s1585_s11 = scalar_lea.sflag (%p906_p10), [#allocation12], %s2804_s12 }
 0x40c   : >> { %1143 = vbcast.lane.b32.xlu1 %v1137_v15, 264  ;;  %1139 = vbcast.lane.b32.xlu0 %v1137_v15, 256  ;;  %v947_v52 = vrot.slane %v931_v51, %v2929_v48  ;;  %v939_v53 = vcombine.high %v931_v51, %v931_v51  ;;  %v1086_v6 = vrot.slane %v1070_v2, %v2929_v48  ;;  %s2294_s13 = scalar_lea.vmem (%p906_p10), %s3088_s7, 256  ;;  %s2443_s10 = smov (%p906_p10), [#allocation22]  }
 0x40d   : >> { %v1078_v13 = vcombine.high %v1070_v2, %v1070_v2  ;;  %v940_v42 = vcombine.high %v938_v17, %v938_v17  ;;  %p2295_p7 = scmp.ne.s32.totalorder (%p906_p10), %s3088_s7, %s2294_s13 }
 0x40e   : >> { %v976_v54 = vrot.slane %v947_v52, %v2849_v31  ;;  %v961_v55 = vrot.slane %v939_v53, %v2929_v48  ;;  %v969_v1 = vcombine.high %v947_v52, %v947_v52  ;;  %v1203_v11 = vrot.slane %v1086_v6, %v2849_v31 }
 0x40f   : >> { %v1100_v24 = vrot.slane %v1078_v13, %v2929_v48  ;;  %v1108_v53 = vcombine.high %v1086_v6, %v1086_v6  ;;  %p2296_p6 = pnand (%p906_p10), %p2295_p7, %p3215_p5 }
 0x410   : >> { %1154 = vbcast.lane.b32.xlu1 %v1148_v16, 264  ;;  %1150 = vbcast.lane.b32.xlu0 %v1148_v16, 256  ;;  %v1013_v56 = vmul.f32 %v976_v54, %v2884_v47  ;;  %v1014_v57 = vmul.f32 %v976_v54, %v2886_v49  ;;  %v980_v60 = vrot.slane %v961_v55, %v2849_v31 }
 0x411   : >> { %v984_v5 = vrot.slane %v969_v1, %v2849_v31  ;;  %v971_v10 = vcombine.high %v961_v55, %v961_v55  ;;  %v968_v1 = vrot.slane %v940_v42, %v2929_v48  ;;  %v1110_v13 = vcombine.high %v1100_v24, %v1100_v24  ;;  %p2297_p8 = pneg (%p906_p10), %p2296_p6 }
 0x412   : >> { %v1029_v59 = vmul.f32 1.442695, %v1013_v56  ;;  %v1031_v61 = vmul.f32 1.442695, %v1014_v57  ;;  %v1016_v63 = vmul.f32 %v980_v60, %v2886_v49  ;;  %v1015_v0 = vmul.f32 %v980_v60, %v2884_v47 }
 0x413   : >> { %v1018_v7 = vmul.f32 %v984_v5, %v2886_v49  ;;  %v1017_v9 = vmul.f32 %v984_v5, %v2884_v47 }
 0x414   : >> { %1165 = vbcast.lane.b32.xlu1 %v1159_v18, 264  ;;  %1161 = vbcast.lane.b32.xlu0 %v1159_v18, 256  ;;  %2064 = vpow2.f32 %v1029_v59  ;;  %v1035_v3 = vmul.f32 1.442695, %v1016_v63  ;;  %v1033_v4 = vmul.f32 1.442695, %v1015_v0 }
 0x415   : >> { %2066 = vpow2.f32 %v1031_v61  ;;  %v1039_v14 = vmul.f32 1.442695, %v1018_v7  ;;  %v1037_v19 = vmul.f32 1.442695, %v1017_v9 }
 0x416   : >> { %2068 = vpow2.f32 %v1035_v3  ;;  %v1211_v3 = vrot.slane %v1108_v53, %v2849_v31 }
 0x417   : >> { %2070 = vpow2.f32 %v1033_v4 }
 0x418   : >> { %1176 = vbcast.lane.b32.xlu1 %v1170_v20, 264  ;;  %1172 = vbcast.lane.b32.xlu0 %v1170_v20, 256  ;;  %v988_v20 = vrot.slane %v971_v10, %v2849_v31  ;;  %2072 = vpow2.f32 %v1039_v14  ;;  %v1063_v14 = vcombine.high %v2943_v62, %v2943_v62  ;;  %v1215_v62 = vrot.slane %v1110_v13, %v2849_v31 }
 0x419   : >> { %2074 = vpow2.f32 %v1037_v19 }
 0x41c   : >> { %1187 = vbcast.lane.b32.xlu1 %v1181_v23, 264  ;;  %1183 = vbcast.lane.b32.xlu0 %v1181_v23, 256 }
 0x41e   : >> { %v2065_v12 = vpop.eup %2064 }
 0x41f   : >> { %v2067_v15 = vpop.eup %2066  ;;  %v1344_v23 = vmul.f32 %v2424_v44, %v2065_v12 }
 0x420   : >> { %1265 = vbcast.lane.b32.xlu1 %v1259_v26, 264  ;;  %1261 = vbcast.lane.b32.xlu0 %v1259_v26, 256  ;;  %v1345_v26 = vmul.f32 %v2420_v45, %v2067_v15 }
 0x424   : >> { %1276 = vbcast.lane.b32.xlu1 %v1270_v27, 264  ;;  %1272 = vbcast.lane.b32.xlu0 %v1270_v27, 256  ;;  %v1020_v27 = vmul.f32 %v988_v20, %v2886_v49 }
 0x426   : >> { %v1043_v45 = vmul.f32 1.442695, %v1020_v27 }
 0x428   : >> { %1287 = vbcast.lane.b32.xlu1 %v1281_v28, 264  ;;  %1283 = vbcast.lane.b32.xlu0 %v1281_v28, 256  ;;  %v2961_v28 = vrot.slane %v938_v17, %v2929_v48  ;;  %2076 = vpow2.f32 %v1043_v45 }
 0x42a   : >> { %v992_v52 = vrot.slane %v2961_v28, %v2849_v31 }
 0x42c   : >> { %1198 = vbcast.lane.b32.xlu1 %v1192_v32, 264  ;;  %1194 = vbcast.lane.b32.xlu0 %v1192_v32, 256  ;;  %v1022_v59 = vmul.f32 %v992_v52, %v2886_v49  ;;  %v1021_v0 = vmul.f32 %v992_v52, %v2884_v47 }
 0x42e   : >> { %v1047_v6 = vmul.f32 1.442695, %v1022_v59  ;;  %v1045_v10 = vmul.f32 1.442695, %v1021_v0 }
 0x430   : >> { %1298 = vbcast.lane.b32.xlu1 %v1292_v34, 264  ;;  %1294 = vbcast.lane.b32.xlu0 %v1292_v34, 256  ;;  %v1019_v34 = vmul.f32 %v988_v20, %v2884_v47 }
 0x432   : >> { %v1041_v51 = vmul.f32 1.442695, %v1019_v34 }
 0x434   : >> { %1309 = vbcast.lane.b32.xlu1 %v1303_v36, 264  ;;  %1305 = vbcast.lane.b32.xlu0 %v1303_v36, 256  ;;  %v2069_v36 = vpop.eup %2068  ;;  %2078 = vpow2.f32 %v1041_v51 }
 0x435   : >> { %v2071_v44 = vpop.eup %2070  ;;  %2080 = vpow2.f32 %v1047_v6 }
 0x436   : >> { %v2073_v2 = vpop.eup %2072  ;;  %2082 = vpow2.f32 %v1045_v10 }
 0x437   : >> { %v2075_v5 = vpop.eup %2074 }
 0x438   : >> { %1320 = vbcast.lane.b32.xlu1 %v1314_v37, 264  ;;  %1316 = vbcast.lane.b32.xlu0 %v1314_v37, 256 }
 0x43c   : >> { %1331 = vbcast.lane.b32.xlu1 %v1325_v38, 264  ;;  %1327 = vbcast.lane.b32.xlu0 %v1325_v38, 256 }
 0x440   : >> { %1342 = vbcast.lane.b32.xlu1 %v1336_v40, 264  ;;  %1338 = vbcast.lane.b32.xlu0 %v1336_v40, 256  ;;  %v1207_v40 = vrot.slane %v1100_v24, %v2849_v31  ;;  %v2077_v24 = vpop.eup %2076 }
 0x476   : >> { %v1129_v16 = vpop.permute.xlu1 %1128  ;;  %v1118_v18 = vpop.permute.xlu0 %1117 }
 0x477   : >> { %v1240_v21 = vmul.f32 %v1203_v11, %v1118_v18  ;;  %v1242_v57 = vmul.f32 %v1207_v40, %v1129_v16 }
 0x479   : >> { %v2964_v38 = vadd.f32 %v1344_v23, %v1240_v21  ;;  %v970_v23 = vcombine.high %v2961_v28, %v2961_v28 }
 0x47a   : >> { %v1133_v29 = vpop.permute.xlu1 %1132  ;;  %v1122_v32 = vpop.permute.xlu0 %1121 }
 0x47b   : >> { %v1241_v37 = vmul.f32 %v1203_v11, %v1122_v32  ;;  %v1359_v55 = vmul.f32 %v2071_v44, %v2964_v38  ;;  %v1243_v56 = vmul.f32 %v1207_v40, %v1133_v29  ;;  %v996_v11 = vrot.slane %v968_v1, %v2849_v31  ;;  %v2079_v29 = vpop.eup %2078 }
 0x47c   : >> { %v1000_v40 = vrot.slane %v970_v23, %v2849_v31 }
 0x47d   : >> { %v2967_v41 = vadd.f32 %v1345_v26, %v1241_v37  ;;  %v2979_v4 = vadd.f32 %v1359_v55, %v1242_v57  ;;  %v1024_v17 = vmul.f32 %v996_v11, %v2886_v49  ;;  %v1023_v21 = vmul.f32 %v996_v11, %v2884_v47 }
 0x47e   : >> { %v1144_v46 = vpop.permute.xlu1 %1143  ;;  %v1140_v50 = vpop.permute.xlu0 %1139  ;;  %v1077_v26 = vrot.slane %v1063_v14, %v2929_v48  ;;  %v972_v55 = vcombine.high %v968_v1, %v968_v1 }
 0x47f   : >> { %v1360_v54 = vmul.f32 %v2069_v36, %v2967_v41  ;;  %v1244_v12 = vmul.f32 %v1211_v3, %v1140_v50  ;;  %v1374_v15 = vmul.f32 %v2075_v5, %v2979_v4  ;;  %v1245_v16 = vmul.f32 %v1211_v3, %v1144_v46 }
 0x480   : >> { %v1051_v32 = vmul.f32 1.442695, %v1024_v17  ;;  %v1049_v44 = vmul.f32 1.442695, %v1023_v21  ;;  %v1093_v42 = vrot.slane %v1077_v26, %v2929_v48  ;;  %v1026_v50 = vmul.f32 %v1000_v40, %v2886_v49 }
 0x481   : >> { %v2974_v63 = vadd.f32 %v1360_v54, %v1243_v56  ;;  %v1376_v27 = vadd.f32 %v1374_v15, %v1244_v12  ;;  %v1025_v54 = vmul.f32 %v1000_v40, %v2884_v47  ;;  %v2081_v56 = vpop.eup %2080  ;;  %v1079_v59 = vcombine.high %v1077_v26, %v1077_v26 }
 0x482   : >> { %v1155_v60 = vpop.permute.xlu1 %1154  ;;  %v1151_v61 = vpop.permute.xlu0 %1150  ;;  %2084 = vpow2.f32 %v1051_v32  ;;  %v1219_v57 = vrot.slane %v1093_v42, %v2849_v31 }
 0x483   : >> { %v1375_v9 = vmul.f32 %v2073_v2, %v2974_v63  ;;  %v1246_v45 = vmul.f32 %v1215_v62, %v1151_v61  ;;  %v1389_v28 = vmul.f32 %v2079_v29, %v1376_v27  ;;  %v1247_v46 = vmul.f32 %v1215_v62, %v1155_v60  ;;  %v2083_v61 = vpop.eup %2082 }
 0x484   : >> { %2086 = vpow2.f32 %v1049_v44  ;;  %v1055_v2 = vmul.f32 1.442695, %v1026_v50  ;;  %v1053_v6 = vmul.f32 1.442695, %v1025_v54  ;;  %v3007_v11 = vrot.slane %v1079_v59, %v2929_v48 }
 0x485   : >> { %v1377_v20 = vadd.f32 %v1375_v9, %v1245_v16  ;;  %v1391_v0 = vadd.f32 %v1389_v28, %v1246_v45  ;;  %v1004_v9 = vrot.slane %v972_v55, %v2849_v31  ;;  %v1109_v44 = vcombine.high %v1093_v42, %v1093_v42 }
 0x486   : >> { %v1166_v7 = vpop.permute.xlu1 %1165  ;;  %v1162_v8 = vpop.permute.xlu0 %1161  ;;  %2088 = vpow2.f32 %v1055_v2  ;;  %v1223_v23 = vrot.slane %v3007_v11, %v2849_v31 }
 0x487   : >> { %v1390_v37 = vmul.f32 %v2077_v24, %v1377_v20  ;;  %v1248_v10 = vmul.f32 %v1219_v57, %v1162_v8  ;;  %v1404_v12 = vmul.f32 %v2083_v61, %v1391_v0  ;;  %v1249_v13 = vmul.f32 %v1219_v57, %v1166_v7 }
 0x488   : >> { %v1028_v1 = vmul.f32 %v1004_v9, %v2886_v49  ;;  %2090 = vpow2.f32 %v1053_v6  ;;  %v1027_v17 = vmul.f32 %v1004_v9, %v2884_v47 }
 0x489   : >> { %v1392_v53 = vadd.f32 %v1390_v37, %v1247_v46  ;;  %v1406_v24 = vadd.f32 %v1404_v12, %v1248_v10 }
 0x48a   : >> { %v2987_v18 = vpop.permute.xlu1 %1176  ;;  %v2989_v19 = vpop.permute.xlu0 %1172  ;;  %v1059_v37 = vmul.f32 1.442695, %v1028_v1  ;;  %v1057_v46 = vmul.f32 1.442695, %v1027_v17 }
 0x48b   : >> { %v1405_v60 = vmul.f32 %v2081_v56, %v1392_v53  ;;  %v1250_v50 = vmul.f32 %v1223_v23, %v2989_v19 }
 0x48c   : >> { %v2085_v21 = vpop.eup %2084  ;;  %2092 = vpow2.f32 %v1059_v37 }
 0x48d   : >> { %v1407_v16 = vadd.f32 %v1405_v60, %v1249_v13  ;;  %2094 = vpow2.f32 %v1057_v46  ;;  %v1111_v60 = vcombine.high %v3007_v11, %v3007_v11 }
 0x48e   : >> { %v2996_v34 = vpop.permute.xlu1 %1187  ;;  %v2998_v36 = vpop.permute.xlu0 %1183 }
 0x48f   : >> { %v2087_v62 = vpop.eup %2086  ;;  %v1420_v28 = vmul.f32 %v2085_v21, %v1407_v16  ;;  %v1231_v11 = vrot.slane %v1111_v60, %v2849_v31 }
 0x490   : >> { %v1419_v54 = vmul.f32 %v2087_v62, %v1406_v24  ;;  %v2089_v57 = vpop.eup %2088 }
 0x492   : >> { %v1266_v51 = vpop.permute.xlu1 %1265  ;;  %v1262_v52 = vpop.permute.xlu0 %1261  ;;  %v1421_v2 = vadd.f32 %v1419_v54, %v1250_v50 }
 0x493   : >> { %v1349_v29 = vmul.f32 %v2967_v41, %v1266_v51  ;;  %v1348_v32 = vmul.f32 %v2964_v38, %v1262_v52  ;;  %v1227_v51 = vrot.slane %v1109_v44, %v2849_v31 }
 0x495   : >> { %v1351_v38 = vsel %vm668_vm2, %v1349_v29, 0.0  ;;  %v1350_v42 = vsel %vm668_vm2, %v1348_v32, 0.0  ;;  %v1252_v10 = vmul.f32 %v1227_v51, %v2998_v36 }
 0x496   : >> { %v1277_v3 = vpop.permute.xlu1 %1276  ;;  %v1273_v5 = vpop.permute.xlu0 %1272 }
 0x497   : >> { %v1364_v8 = vmul.f32 %v2974_v63, %v1277_v3  ;;  %v1363_v48 = vmul.f32 %v2979_v4, %v1273_v5  ;;  %v2091_v3 = vpop.eup %2090  ;;  %v1352_v5 = vadd.f32 %v1351_v38, %v1350_v42 }
 0x498   : >> { %v1434_v21 = vmul.f32 %v2091_v3, %v1421_v2  ;;  %v2093_v44 = vpop.eup %2092 }
 0x499   : >> { %v1366_v63 = vsel %vm668_vm2, %v1364_v8, 0.0  ;;  %v1365_v4 = vsel %vm668_vm2, %v1363_v48, 0.0  ;;  %v1353_v8 = vrot.slane %v1352_v5, 4  ;;  %v2095_v50 = vpop.eup %2094 }
 0x49a   : >> { %v1288_v14 = vpop.permute.xlu1 %1287  ;;  %v1284_v15 = vpop.permute.xlu0 %1283  ;;  %v1367_v52 = vadd.f32 %v1366_v63, %v1365_v4  ;;  %v1436_v46 = vadd.f32 %v1434_v21, %v1252_v10 }
 0x49b   : >> { %v1379_v7 = vmul.f32 %v1377_v20, %v1288_v14  ;;  %v1378_v26 = vmul.f32 %v1376_v27, %v1284_v15  ;;  %v1251_v20 = vmul.f32 %v1223_v23, %v2987_v18  ;;  %v1253_v23 = vmul.f32 %v1227_v51, %v2996_v34 }
 0x49c   : >> { %v1368_v12 = vrot.slane %v1367_v52, 4  ;;  %v1354_v34 = vadd.f32 %v1353_v8, %v1352_v5 }
 0x49d   : >> { %v1381_v27 = vsel %vm668_vm2, %v1379_v7, 0.0  ;;  %v1380_v41 = vsel %vm668_vm2, %v1378_v26, 0.0  ;;  %v1422_v56 = vadd.f32 %v1420_v28, %v1251_v20 }
 0x49e   : >> { %v1199_v40 = vpop.permute.xlu1 %1198  ;;  %v1195_v45 = vpop.permute.xlu0 %1194  ;;  %v1382_v59 = vadd.f32 %v1381_v27, %v1380_v41  ;;  %v1369_v36 = vadd.f32 %v1368_v12, %v1367_v52 }
 0x49f   : >> { %v1435_v15 = vmul.f32 %v2089_v57, %v1422_v56  ;;  %v1255_v63 = vmul.f32 %v1231_v11, %v1199_v40  ;;  %v1254_v20 = vmul.f32 %v1231_v11, %v1195_v45 }
 0x4a0   : >> { %v1383_v17 = vrot.slane %v1382_v59, 4  ;;  %v1370_v38 = vrot.slane %v1369_v36, 2 }
 0x4a1   : >> { %v1437_v37 = vadd.f32 %v1435_v15, %v1253_v23 }
 0x4a2   : >> { %v1299_v19 = vpop.permute.xlu1 %1298  ;;  %v1295_v55 = vpop.permute.xlu0 %1294  ;;  %v1384_v28 = vadd.f32 %v1383_v17, %v1382_v59  ;;  %v1371_v10 = vadd.f32 %v1370_v38, %v1369_v36 }
 0x4a3   : >> { %v1394_v61 = vmul.f32 %v1392_v53, %v1299_v19  ;;  %v1393_v18 = vmul.f32 %v1391_v0, %v1295_v55  ;;  %v1450_v55 = vmul.f32 %v2093_v44, %v1437_v37 }
 0x4a4   : >> { %v1385_v57 = vrot.slane %v1384_v28, 2 }
 0x4a5   : >> { %v1396_v6 = vsel %vm668_vm2, %v1394_v61, 0.0  ;;  %v1395_v9 = vsel %vm668_vm2, %v1393_v18, 0.0  ;;  %v1449_v61 = vmul.f32 %v2095_v50, %v1436_v46  ;;  %v1355_v18 = vrot.slane %v1354_v34, 2 }
 0x4a6   : >> { %v1397_v13 = vadd.f32 %v1396_v6, %v1395_v9  ;;  %v1310_v1 = vpop.permute.xlu1 %1309  ;;  %v1306_v14 = vpop.permute.xlu0 %1305  ;;  %v3037_v45 = vadd.f32 %v1450_v55, %v1255_v63   ;;  %v1386_v15 = vadd.f32 %v1385_v57, %v1384_v28 }
 0x4a7   : >> { %v1409_v53 = vmul.f32 %v1407_v16, %v1310_v1  ;;  %v1408_v0 = vmul.f32 %v1406_v24, %v1306_v14  ;;  %v3041_v44 = vadd.f32 %v1449_v61, %v1254_v20  }
 0x4a8   : >> { %v1398_v48 = vrot.slane %v1397_v13, 4  ;;  %v3206_v3 = vmov %v3037_v45 }
 0x4a9   : >> { %v1411_v62 = vsel %vm668_vm2, %v1409_v53, 0.0  ;;  %v1410_v7 = vsel %vm668_vm2, %v1408_v0, 0.0  ;;  %v3207_v9 = vmov %v3041_v44  ;;  %v1356_v0 = vadd.f32 %v1355_v18, %v1354_v34  ;;  %1487 = vst.msk [vmem:[#allocation8 + $0x8] sm:$0xff] (%p906_p10), %vm668_vm2, %v3206_v3 }
 0x4aa   : >> { %v1412_v26 = vadd.f32 %v1411_v62, %v1410_v7  ;;  %v1321_v29 = vpop.permute.xlu1 %1320  ;;  %v1317_v32 = vpop.permute.xlu0 %1316  ;;  %v1399_v4 = vadd.f32 %v1398_v48, %v1397_v13  ;;  %v1372_v62 = vrot.slane %v1371_v10, 1  ;;  %1486 = vst.msk [vmem:[#allocation8] sm:$0xff] (%p906_p10), %vm668_vm2, %v3207_v9 }
 0x4ab   : >> { %v1424_v16 = vmul.f32 %v1422_v56, %v1321_v29  ;;  %v1423_v24 = vmul.f32 %v1421_v2, %v1317_v32  ;;  %v1387_v29 = vrot.slane %v1386_v15, 1  ;;  %v1357_v32 = vrot.slane %v1356_v0, 1 }
 0x4ac   : >> { %v1413_v54 = vrot.slane %v1412_v26, 4  ;;  %v1400_v2 = vrot.slane %v1399_v4, 2 }
 0x4ad   : >> { %v1426_v27 = vsel %vm668_vm2, %v1424_v16, 0.0  ;;  %v1425_v41 = vsel %vm668_vm2, %v1423_v24, 0.0  ;;  %v1373_v24 = vadd.f32 %v1372_v62, %v1371_v10  ;;  %v1388_v63 = vadd.f32 %v1387_v29, %v1386_v15  ;;  %v1491_v10 = vld [vmem:[%s3212_s18 + $0x8] sm:$0xff] (%p906_p10) }
 0x4ae   : >> { %v1414_v42 = vadd.f32 %v1413_v54, %v1412_v26  ;;  %v1427_v51 = vadd.f32 %v1426_v27, %v1425_v41  ;;  %v1332_v52 = vpop.permute.xlu1 %1331  ;;  %v1328_v19 = vpop.permute.xlu0 %1327  ;;  %v1401_v21 = vadd.f32 %v1400_v2, %v1399_v4  ;;  %v1358_v4 = vadd.f32 %v1357_v32, %v1356_v0 }
 0x4af   : >> { %v1439_v56 = vmul.f32 %v1437_v37, %v1332_v52  ;;  %v1438_v59 = vmul.f32 %v1436_v46, %v1328_v19 }
 0x4b0   : >> { %v1428_v40 = vrot.slane %v1427_v51, 4  ;;  %v1415_v5 = vrot.slane %v1414_v42, 2  ;;  %v1402_v37 = vrot.slane %v1401_v21, 1  ;;  %v1464_v38 = vsel %vm730_vm5, %v1358_v4, %v1373_v24 }
 0x4b1   : >> { %v1441_v60 = vsel %vm668_vm2, %v1439_v56, 0.0  ;;  %v1440_v6 = vsel %vm668_vm2, %v1438_v59, 0.0  ;;  %v1465_v52 = vsel %vm710_vm4, %v1464_v38, %v1388_v63  ;;  %v1481_v56 = vmul.f32 %v2882_v43, %v2939_v58  ;;  %v1490_v58 = vld [vmem:[%s3212_s18] sm:$0xff] (%p906_p10) }
 0x4b2   : >> { %v1429_v12 = vadd.f32 %v1428_v40, %v1427_v51  ;;  %v1442_v13 = vadd.f32 %v1441_v60, %v1440_v6  ;;  %v1343_v1 = vpop.permute.xlu1 %1342  ;;  %v1339_v14 = vpop.permute.xlu0 %1338  ;;  %v1416_v8 = vadd.f32 %v1415_v5, %v1414_v42  ;;  %v1403_v54 = vadd.f32 %v1402_v37, %v1401_v21  ;;  %v918_v40 = vld [vmem:[%s917_s24] sm:$0xff]  ;;  %s3213_s24 = sld [smem:[#allocation38_spill]] (%p906_p10) }
 0x4b3   : >> { %v1454_v17 = vmul.f32 %v3206_v3, %v1343_v1  ;;  %v1453_v53 = vmul.f32 %v3207_v9, %v1339_v14 }
 0x4b4   : >> { %v1430_v45 = vrot.slane %v1429_v12, 2  ;;  %v1443_v23 = vrot.slane %v1442_v13, 4  ;;  %v1417_v16 = vrot.slane %v1416_v8, 1  ;;  %v1466_v55 = vsel %vm690_vm3, %v1465_v52, %v1403_v54 }
 0x4b5   : >> { %v1456_v11 = vsel %vm668_vm2, %v1454_v17, 0.0  ;;  %v1455_v48 = vsel %vm668_vm2, %v1453_v53, 0.0 }
 0x4b6   : >> { %v1431_v7 = vadd.f32 %v1430_v45, %v1429_v12  ;;  %v1444_v36 = vadd.f32 %v1443_v23, %v1442_v13  ;;  %v1457_v26 = vadd.f32 %v1456_v11, %v1455_v48  ;;  %v1418_v41 = vadd.f32 %v1417_v16, %v1416_v8 }
 0x4b7   : >> { %v3208_v45 = vmov %v3206_v3  ;;  %v1864_v13 = vpack.c.bf16 (%p906_p10), %v1491_v10, %v1490_v58 }
 0x4b8   : >> { %v1445_v44 = vrot.slane %v1444_v36, 2  ;;  %v1458_v28 = vrot.slane %v1457_v26, 4  ;;  %v1432_v46 = vrot.slane %v1431_v7, 1  ;;  %v1468_v59 = vsel %vm1467_vm6, %v1466_v55, %v1418_v41  ;;  %v1804_v31 = vld [vmem:[%s3213_s24] ss:$0 sm:$0xff] (%p906_p10) }
 0x4b9   : > { %1865 = vmatprep.subr.bf16.mxu1 (%p906_p10), %v1864_v13 }
 0x4ba   : >> { %v1446_v50 = vadd.f32 %v1445_v44, %v1444_v36  ;;  %v1459_v34 = vadd.f32 %v1458_v28, %v1457_v26  ;;  %v1433_v42 = vadd.f32 %v1432_v46, %v1431_v7  ;;  %v3209_v44 = vmov %v3207_v9  ;;  %1867 = vmatpush3.bf16.msra.mxu1 (%p906_p10), %v1864_v13 }
 0x4bc   : >> { %v1447_v20 = vrot.slane %v1446_v50, 1  ;;  %v1460_v27 = vrot.slane %v1459_v34, 2  ;;  %v1470_v61 = vsel %vm1469_vm7, %v1468_v59, %v1433_v42 }
 0x4be   : >> { %v1461_v51 = vadd.f32 %v1460_v27, %v1459_v34  ;;  %v1448_v19 = vadd.f32 %v1447_v20, %v1446_v50 }
 0x4c0   : >> { %v1462_v57 = vrot.slane %v1461_v51, 1  ;;  %v1472_v2 = vsel %vm1471_vm8, %v1470_v61, %v1448_v19 }
 0x4c2   : >> { %v1463_v18 = vadd.f32 %v1462_v57, %v1461_v51 }
 0x4c3   : > { %908 = sbr.rel (!%p906_p10) target bundleno = 1023 (0x3ff), region = 154 }
 0x4c4   : >> { %v1474_v5 = vsel %vm1473_vm9, %v1472_v2, %v1463_v18 }
 0x4c5   : >> { %v1482_v60 = vadd.f32 %v1481_v56, %v1474_v5 }
 0x4c7   : >> { %v1483_v6 = vmul.f32 %v1482_v60, %v918_v40 }
 0x4c9   : >> { %1485 = vst.msk [vmem:[%s1484_s25] sm:$0xff] %vm668_vm2, %v1483_v6  ;;  %s1810_s25 = sshll.u32 (%p906_p10), %s1597_s3, 7  ;;  %s2298_s3 = sshll.u32 (%p906_p10), %s2443_s10, 4  ;;  %s2299_s3 = int_to_ptr.vmem [resolvable:$false] %s2298_s3 }
 0x4ca   : > { %s3086_s17 = scalar_lea.hbm %s3214_s30, %s1810_s25  ;;  %s2300_s29 = scalar_lea.vmem %s2299_s3, 512 }
 0x4cb   : > { %p2301_p9 = scmp.lt.s32.totalorder %s3088_s7, %s2299_s3  ;;  %p2302_p1 = scmp.lt.s32.totalorder %s2300_s29, %s2294_s13 }
 0x4cd   : > { %p2303_p11 = por %p2302_p1, %p2301_p9 }
 0x4cf   : > { %p2304_p12 = pnand %p2303_p11, %p2297_p8 }
 0x4d0   : > { %v1488_v12 = vld [vmem:[#allocation7] sm:$0xff]  ;;  %v1489_v30 = vld [vmem:[#allocation7 + $0x8] sm:$0xff] }
 0x4d1   : > { %1849 = vmatprep.mubr.msk.f32.mxu1 %vm668_vm2, %v1488_v12 }
 0x4d2   : > { %1850 = vmatmul.mubr.msk.f32.vlgmr.msra.gmra.mrb[2].mxu1 %vm668_vm2, %v1489_v30 }
 0x5a5   : > { %v1851_v33 = vpop.f32.mrb[2].mxu1 }
 0x5a6   : > { %v1577_v35 = vadd.f32 %v1851_v33, %v1804_v31  ;;  %v1571_v39 = vpop.f32.mrb[3].mxu1 }
 0x5a7   : > { %v1572_v43 = vadd.f32 %v1804_v31, %v1571_v39 }
 0x5a8   : > { %v1581_v47 = vadd.f32 %v1577_v35, %v2836_v25 }
 0x5a9   : > { %v1580_v49 = vadd.f32 %v1572_v43, %v2832_v22 }
 0x5aa   : > { %1583 = vst.msk [vmem:[%s2824_s5 + $0x8] sm:$0xff] %vm544_vm1, %v1581_v47 }
 0x5ab   : > { %1582 = vst.msk [vmem:[%s2824_s5] sm:$0xff] %vm544_vm1, %v1580_v49 }
 0x5ac   : > { %2307 = shalt.err (!%p2304_p12)
}
 0x5ad   : > { %s2308_s5 = scalar_lea.hbm %s3086_s17, 256  ;;  %s2312_s25 = scalar_lea.hbm %s3214_s30, 1024 }
 0x5ae   : > { %p2309_p13 = scmp.ne.s32.totalorder %s3086_s17, %s2308_s5  ;;  %p2313_p4 = scmp.lt.u32.totalorder %s3086_s17, %s3214_s30 }
 0x5af   : > { %p2314_p2 = scmp.lt.u32.totalorder %s2312_s25, %s2308_s5  ;;  %p2316_p7 = scmp.lt.u32.totalorder %s2308_s5, %s3086_s17 }
 0x5b0   : > { %p2310_p0 = pnand %p2309_p13, %p3215_p5 }
 0x5b1   : > { %p2315_p10 = por %p2314_p2, %p2313_p4 }
 0x5b2   : > { %p2311_p3 = pneg %p2310_p0 }
 0x5b3   : > { %p2317_p6 = por %p2316_p7, %p2315_p10 }
 0x5b5   : > { %p2318_p8 = pnand %p2317_p6, %p2311_p3 }
 0x5b7   : > { %2321 = shalt.err (!%p2318_p8)
}
 0x5b8   : > { %s2444_s13 = smov 128   ;;  %s2445_s10 = smov 8  }
 0x5b9   : > { %1894 = dma.vmem_to_hbm [thread:$0]  (%p3215_p5), %s3088_s7, 256, %s3086_s17, %s1585_s11, %s2444_s13, %s2444_s13, %s2445_s10  }
 0x5ba PF: > { %p1936_p9 = scmp.ge.s32.totalorder %s2416_s28, 2  ;;  %s1615_s3 = sand.u32 1, %s2388_s21  }
 0x5bb   : > { %p3216_p1 = scmp.ne.s32.totalorder %s3195_s14, 0  ;;  %s1616_s29 = scalar_lea.sflag [#allocation12], %s1615_s3 }
 0x5bd   : > { %p1920_p11 = pnand %p1936_p9, %p3216_p1 }
 0x5bf   : > { %2383 = dma.done.wait (!%p1920_p11), %s1616_s29, 256  }
 0x5c0   : > { %2385 = vsyncadd (!%p1920_p11), %s1616_s29, 4294967040  ;;  %s31_s28 = sadd.s32 1, %s2416_s28   ;;  %s3217_s21 = smov %s2392_s22 }
 0x5c1   : > { %p28_p12 = scmp.ge.s32.totalorder %s31_s28, 6   ;;  %s3218_s22 = smov %s2396_s23 }
 0x5c2   : > { %s3219_s23 = smov %s2752_s1  ;;  %s3220_s24 = smov %s2408_s26 }
 0x5c3   : > { %s3221_s25 = smov %s2412_s27  ;;  %s3222_s26 = smov %s3225_s6 }
 0x5c4   : > { %s3223_s27 = smov %s3229_s16  ;;  %30 = sbr.rel (!%p28_p12) target bundleno = 21 (0x15), region = 165 }
 0x5cb   :  { %1621 = vsyncpa [#allocation11], 1 }
 0x5cc   :  { %1623 = vsyncpa [#allocation11 + $0x1], 1 }
 0x5cd   :  { %1624 = vsyncpa [#allocation14], 1 }
 0x5ce   :  { %1625 = vsyncpa [#allocation17], 1 }
 0x5cf   :  { %1626 = vsyncpa [#allocation20], 1 }
 0x5d0   :  { %1627 = vsyncpa [#allocation12], 1 }
 0x5d1   :  { %1629 = vsyncpa [#allocation12 + $0x1], 1 }

</bundles_post_ra>
